<compile_context>
chip_gen: v7x
topology: tpu7x:2x2x1
jax: 0.10.0
libtpu: 0.0.40
codegen_flags: <defaults>
</compile_context>

<pallas_src>
import functools

import jax
import jax.numpy as jnp
from jax import lax
from jax.experimental import pallas as pl
from jax.experimental.pallas import tpu as pltpu

HIDDEN = 128  # fixed by the module


# ----------------------------------------------------------------------------
# Pallas kernel: full 2-layer LSTM recurrence over the (identical) input steps.
# Gate column order inside the kernel is (i, f, o, g); the i/f/o columns of the
# packed weights/biases are pre-scaled by 0.5 (tanh-based sigmoid).
# ----------------------------------------------------------------------------
def _rae_dec_kernel(x_ref, wih0_ref, whh0_ref, b0_ref, wih1_ref, whh1_ref,
                    b1_ref, out_ref, acc_ref):
    B = x_ref.shape[0]
    H = HIDDEN
    T = out_ref.shape[-1]

    x = x_ref[...].astype(jnp.bfloat16)        # (B, dim)   cast in-kernel
    wih0 = wih0_ref[...]                       # (dim, 4H)  bf16
    whh0 = whh0_ref[...]                       # (H, 4H)    bf16
    wih1 = wih1_ref[...]                       # (H, 4H)    bf16
    whh1 = whh1_ref[...]                       # (H, 4H)    bf16

    # Layer-0 input contribution is identical at every step: compute once.
    xg0 = (jnp.dot(x, wih0, preferred_element_type=jnp.float32)
           + jnp.broadcast_to(b0_ref[...], (B, 4 * H)))      # (B, 4H) f32
    # Hoist the layer-1 bias broadcast out of the recurrence (JAX won't CSE it).
    b1b = jnp.broadcast_to(b1_ref[...], (B, 4 * H))          # (B, 4H) f32

    def gates(pre):
        # Columns are (i, f, o, g). The i/f/o columns were pre-scaled by 0.5 at
        # pack time, so one wide tanh gives sigmoid via 0.5*(1 + tanh(z/2)):
        # a single EUP pass over 4H lanes per layer per step.
        t_all = jnp.tanh(pre)
        i = 0.5 * t_all[:, 0:H] + 0.5
        f = 0.5 * t_all[:, H:2 * H] + 0.5
        o = 0.5 * t_all[:, 2 * H:3 * H] + 0.5
        g = t_all[:, 3 * H:]
        return i, f, o, g

    def body(t, carry):
        h0, c0, h1, c1 = carry                 # h0/h1 bf16, c0/c1 f32
        # Both recurrent matmuls issued up front (off the gates0 -> pre1 chain).
        rec0 = jnp.dot(h0, whh0, preferred_element_type=jnp.float32)
        rec1 = jnp.dot(h1, whh1, preferred_element_type=jnp.float32)
        # ---- layer 0 ----
        i0, f0, o0, g0 = gates(xg0 + rec0)
        c0n = f0 * c0 + i0 * g0
        h0n = o0 * jnp.tanh(c0n)
        h0n_b = h0n.astype(jnp.bfloat16)
        # ---- layer 1 ----
        pre1 = (jnp.dot(h0n_b, wih1, preferred_element_type=jnp.float32)
                + b1b + rec1)
        i1, f1, o1, g1 = gates(pre1)
        c1n = f1 * c1 + i1 * g1
        h1n = o1 * jnp.tanh(c1n)
        # time-major scratch store: H=128 lane-dense
        acc_ref[t] = h1n
        return (h0n_b, c0n, h1n.astype(jnp.bfloat16), c1n)

    zb = jnp.zeros((B, H), jnp.bfloat16)
    zf = jnp.zeros((B, H), jnp.float32)
    # Fully unroll short recurrences (LLO sees the whole chain); cap unroll for
    # longer seq_len to bound vreg pressure.
    unroll = True if T <= 16 else 8
    lax.fori_loop(0, T, body, (zb, zf, zb, zf), unroll=unroll)

    # Epilogue: (T, B, H) scratch -> (B, 1, H, T) output. Two tiny 2-D XLU
    # transposes replace the former wrapper-side permute dispatch.
    acc_all = acc_ref[...]                     # (T, B, H) f32
    for b in range(B):                         # B is a small static constant
        out_ref[b, 0, :, :] = jnp.transpose(acc_all[:, b, :])


def _vmem_spec():
    return pl.BlockSpec(memory_space=pltpu.MemorySpace.VMEM)


# ----------------------------------------------------------------------------
# One-time parameter packing -- keep OUT of the per-call hot path.
# ----------------------------------------------------------------------------
def prepare_params(params):
    """Pack PyTorch-layout LSTM params once:
       * fold bias_ih + bias_hh
       * permute gate blocks (i,f,g,o) -> (i,f,o,g)
       * pre-scale the i/f/o blocks by 0.5 (sigmoid via tanh identity)
       * transpose weights to (in_features, 4H) and cast to bf16 for the MXU
    """
    H = HIDDEN

    def permute_and_scale(w):
        w = jnp.concatenate([w[:2 * H], w[3 * H:], w[2 * H:3 * H]], axis=0)
        return jnp.concatenate([0.5 * w[:3 * H], w[3 * H:]], axis=0)

    def prep_w(w):
        return permute_and_scale(w).T.astype(jnp.bfloat16)

    def prep_b(bih, bhh):
        return permute_and_scale(bih + bhh)[None, :].astype(jnp.float32)

    return {
        "wih0": prep_w(params["weight_ih_l0"]),
        "whh0": prep_w(params["weight_hh_l0"]),
        "wih1": prep_w(params["weight_ih_l1"]),
        "whh1": prep_w(params["weight_hh_l1"]),
        "b0": prep_b(params["bias_ih_l0"], params["bias_hh_l0"]),
        "b1": prep_b(params["bias_ih_l1"], params["bias_hh_l1"]),
    }


@functools.partial(jax.jit, static_argnames=("seq_len",))
def rae_dec_forward(x, packed, *, seq_len):
    """x: (B, dim) float32, packed = prepare_params(...) -> (B, 1, 128, seq_len)."""
    B, _ = x.shape
    H = HIDDEN
    return pl.pallas_call(
        _rae_dec_kernel,
        out_shape=jax.ShapeDtypeStruct((B, 1, H, seq_len), jnp.float32),
        in_specs=[_vmem_spec() for _ in range(7)],
        out_specs=_vmem_spec(),
        scratch_shapes=[pltpu.VMEM((seq_len, B, H), jnp.float32)],
    )(x, packed["wih0"], packed["whh0"], packed["b0"],
      packed["wih1"], packed["whh1"], packed["b1"])


# ----------------------------------------------------------------------------
# Pure-JAX f32 reference (mirrors torch.nn.LSTM math) for a correctness check.
# ----------------------------------------------------------------------------
def _ref_forward(x, params, seq_len):
    B, dim = x.shape
    H = HIDDEN

    def cell(x_t, h, c, wih, whh, bih, bhh):
        pre = x_t @ wih.T + bih + h @ whh.T + bhh
        i, f, g, o = jnp.split(pre, 4, axis=-1)
        i, f, g, o = jax.nn.sigmoid(i), jax.nn.sigmoid(f), jnp.tanh(g), jax.nn.sigmoid(o)
        c = f * c + i * g
        h = o * jnp.tanh(c)
        return h, c

    def run_layer(inputs, wih, whh, bih, bhh):           # inputs: (T, B, I)
        def step(carry, x_t):
            h, c = carry
            h, c = cell(x_t, h, c, wih, whh, bih, bhh)
            return (h, c), h
        z = jnp.zeros((B, H), jnp.float32)
        _, outs = lax.scan(step, (z, z), inputs)
        return outs                                      # (T, B, H)

    inputs = jnp.broadcast_to(x[None], (seq_len, B, dim))
    h0 = run_layer(inputs, params["weight_ih_l0"], params["weight_hh_l0"],
                   params["bias_ih_l0"], params["bias_hh_l0"])
    h1 = run_layer(h0, params["weight_ih_l1"], params["weight_hh_l1"],
                   params["bias_ih_l1"], params["bias_hh_l1"])
    return jnp.transpose(h1, (1, 2, 0))[:, None, :, :]   # (B, 1, H, T)


def init_params(key, dim):
    H = HIDDEN
    scale = 1.0 / jnp.sqrt(H)
    names_shapes = [
        ("weight_ih_l0", (4 * H, dim)),
        ("weight_hh_l0", (4 * H, H)),
        ("bias_ih_l0", (4 * H,)),
        ("bias_hh_l0", (4 * H,)),
        ("weight_ih_l1", (4 * H, H)),
        ("weight_hh_l1", (4 * H, H)),
        ("bias_ih_l1", (4 * H,)),
        ("bias_hh_l1", (4 * H,)),
    ]
    keys = jax.random.split(key, len(names_shapes))
    return {
        name: jax.random.uniform(k, shape, jnp.float32, -scale, scale)
        for (name, shape), k in zip(names_shapes, keys)
    }


if __name__ == "__main__":
    B, DIM, SEQ_LEN = 2, 32, 8   # small shapes consistent with RAEdec(dim=32)

    key = jax.random.PRNGKey(0)
    kx, kp = jax.random.split(key)
    x = jax.random.normal(kx, (B, DIM), jnp.float32)
    params = init_params(kp, DIM)

    # One-time packing (outside the hot path); hot path = single pallas_call.
    packed = jax.block_until_ready(prepare_params(params))

    out = rae_dec_forward(x, packed, seq_len=SEQ_LEN)
    out = jax.block_until_ready(out)

    assert out.shape == (B, 1, HIDDEN, SEQ_LEN), out.shape

    ref = jax.block_until_ready(_ref_forward(x, params, SEQ_LEN))
    max_err = float(jnp.max(jnp.abs(out - ref)))
    # bf16 MXU operands + bf16 hidden-state rounding => loosened tolerance.
    if max_err > 3e-2:
        raise AssertionError(f"mismatch vs reference: max_err={max_err}")

    print("KERNEL_OK")
</pallas_src>

<mosaic_0001>
module attributes {stable_mosaic.version = 11 : i64} {
  func.func @_rae_dec_kernel(%arg0: memref<2x32xf32, #tpu.memory_space<vmem>>, %arg1: memref<32x512xbf16, #tpu.memory_space<vmem>>, %arg2: memref<128x512xbf16, #tpu.memory_space<vmem>>, %arg3: memref<1x512xf32, #tpu.memory_space<vmem>>, %arg4: memref<128x512xbf16, #tpu.memory_space<vmem>>, %arg5: memref<128x512xbf16, #tpu.memory_space<vmem>>, %arg6: memref<1x512xf32, #tpu.memory_space<vmem>>, %arg7: memref<2x1x128x8xf32, #tpu.memory_space<vmem>>, %arg8: memref<8x2x128xf32, #tpu.memory_space<vmem>>) attributes {dimension_semantics = [], scalar_prefetch = 0 : i64, scratch_operands = 1 : i64, tpu.core_type = #tpu.core_type<tc>} {
    %c0 = arith.constant 0 : index
    %c0_0 = arith.constant 0 : index
    %0 = vector.load %arg0[%c0, %c0_0] : memref<2x32xf32, #tpu.memory_space<vmem>>, vector<2x32xf32>
    %1 = arith.truncf %0 : vector<2x32xf32> to vector<2x32xbf16>
    %c0_1 = arith.constant 0 : index
    %c0_2 = arith.constant 0 : index
    %2 = vector.load %arg1[%c0_1, %c0_2] : memref<32x512xbf16, #tpu.memory_space<vmem>>, vector<32x512xbf16>
    %c0_3 = arith.constant 0 : index
    %c0_4 = arith.constant 0 : index
    %3 = vector.load %arg2[%c0_3, %c0_4] : memref<128x512xbf16, #tpu.memory_space<vmem>>, vector<128x512xbf16>
    %c0_5 = arith.constant 0 : index
    %c0_6 = arith.constant 0 : index
    %4 = vector.load %arg4[%c0_5, %c0_6] : memref<128x512xbf16, #tpu.memory_space<vmem>>, vector<128x512xbf16>
    %c0_7 = arith.constant 0 : index
    %c0_8 = arith.constant 0 : index
    %5 = vector.load %arg5[%c0_7, %c0_8] : memref<128x512xbf16, #tpu.memory_space<vmem>>, vector<128x512xbf16>
    %cst = arith.constant dense<0.000000e+00> : vector<2x512xf32>
    %6 = tpu.matmul %1, %2, %cst {dimension_numbers = #tpu.dot_dimension_numbers<[1], [0], [0], [1], [0, 0, 1, 1], [], []>} : vector<2x32xbf16>, vector<32x512xbf16>, vector<2x512xf32> -> vector<2x512xf32>
    %c0_9 = arith.constant 0 : index
    %c0_10 = arith.constant 0 : index
    %7 = vector.load %arg3[%c0_9, %c0_10] : memref<1x512xf32, #tpu.memory_space<vmem>>, vector<1x512xf32>
    %8 = vector.shape_cast %7 : vector<1x512xf32> to vector<1x512xf32>
    %9 = vector.broadcast %8 : vector<1x512xf32> to vector<2x512xf32>
    %10 = arith.addf %6, %9 : vector<2x512xf32>
    %c0_11 = arith.constant 0 : index
    %c0_12 = arith.constant 0 : index
    %11 = vector.load %arg6[%c0_11, %c0_12] : memref<1x512xf32, #tpu.memory_space<vmem>>, vector<1x512xf32>
    %12 = vector.shape_cast %11 : vector<1x512xf32> to vector<1x512xf32>
    %13 = vector.broadcast %12 : vector<1x512xf32> to vector<2x512xf32>
    %cst_13 = arith.constant 0.000000e+00 : bf16
    %14 = vector.broadcast %cst_13 : bf16 to vector<2x128xbf16>
    %cst_14 = arith.constant 0.000000e+00 : f32
    %15 = vector.broadcast %cst_14 : f32 to vector<2x128xf32>
    %c0_i32 = arith.constant 0 : i32
    %cst_15 = arith.constant dense<0.000000e+00> : vector<2x512xf32>
    %16 = tpu.matmul %14, %3, %cst_15 {dimension_numbers = #tpu.dot_dimension_numbers<[1], [0], [0], [1], [0, 0, 1, 1], [], []>} : vector<2x128xbf16>, vector<128x512xbf16>, vector<2x512xf32> -> vector<2x512xf32>
    %cst_16 = arith.constant dense<0.000000e+00> : vector<2x512xf32>
    %17 = tpu.matmul %14, %5, %cst_16 {dimension_numbers = #tpu.dot_dimension_numbers<[1], [0], [0], [1], [0, 0, 1, 1], [], []>} : vector<2x128xbf16>, vector<128x512xbf16>, vector<2x512xf32> -> vector<2x512xf32>
    %18 = arith.addf %10, %16 : vector<2x512xf32>
    %19 = math.tanh %18 : vector<2x512xf32>
    %20 = vector.extract_strided_slice %19 {offsets = [0, 0], sizes = [2, 128], strides = [1, 1]} : vector<2x512xf32> to vector<2x128xf32>
    %cst_17 = arith.constant 5.000000e-01 : f32
    %21 = vector.broadcast %cst_17 : f32 to vector<2x128xf32>
    %22 = arith.mulf %21, %20 : vector<2x128xf32>
    %cst_18 = arith.constant 5.000000e-01 : f32
    %23 = vector.broadcast %cst_18 : f32 to vector<2x128xf32>
    %24 = arith.addf %22, %23 : vector<2x128xf32>
    %25 = vector.extract_strided_slice %19 {offsets = [0, 128], sizes = [2, 128], strides = [1, 1]} : vector<2x512xf32> to vector<2x128xf32>
    %cst_19 = arith.constant 5.000000e-01 : f32
    %26 = vector.broadcast %cst_19 : f32 to vector<2x128xf32>
    %27 = arith.mulf %26, %25 : vector<2x128xf32>
    %cst_20 = arith.constant 5.000000e-01 : f32
    %28 = vector.broadcast %cst_20 : f32 to vector<2x128xf32>
    %29 = arith.addf %27, %28 : vector<2x128xf32>
    %30 = vector.extract_strided_slice %19 {offsets = [0, 256], sizes = [2, 128], strides = [1, 1]} : vector<2x512xf32> to vector<2x128xf32>
    %cst_21 = arith.constant 5.000000e-01 : f32
    %31 = vector.broadcast %cst_21 : f32 to vector<2x128xf32>
    %32 = arith.mulf %31, %30 : vector<2x128xf32>
    %cst_22 = arith.constant 5.000000e-01 : f32
    %33 = vector.broadcast %cst_22 : f32 to vector<2x128xf32>
    %34 = arith.addf %32, %33 : vector<2x128xf32>
    %35 = vector.extract_strided_slice %19 {offsets = [0, 384], sizes = [2, 128], strides = [1, 1]} : vector<2x512xf32> to vector<2x128xf32>
    %36 = arith.mulf %29, %15 : vector<2x128xf32>
    %37 = arith.mulf %24, %35 : vector<2x128xf32>
    %38 = arith.addf %36, %37 : vector<2x128xf32>
    %39 = math.tanh %38 : vector<2x128xf32>
    %40 = arith.mulf %34, %39 : vector<2x128xf32>
    %41 = arith.truncf %40 : vector<2x128xf32> to vector<2x128xbf16>
    %cst_23 = arith.constant dense<0.000000e+00> : vector<2x512xf32>
    %42 = tpu.matmul %41, %4, %cst_23 {dimension_numbers = #tpu.dot_dimension_numbers<[1], [0], [0], [1], [0, 0, 1, 1], [], []>} : vector<2x128xbf16>, vector<128x512xbf16>, vector<2x512xf32> -> vector<2x512xf32>
    %43 = arith.addf %42, %13 : vector<2x512xf32>
    %44 = arith.addf %43, %17 : vector<2x512xf32>
    %45 = math.tanh %44 : vector<2x512xf32>
    %46 = vector.extract_strided_slice %45 {offsets = [0, 0], sizes = [2, 128], strides = [1, 1]} : vector<2x512xf32> to vector<2x128xf32>
    %cst_24 = arith.constant 5.000000e-01 : f32
    %47 = vector.broadcast %cst_24 : f32 to vector<2x128xf32>
    %48 = arith.mulf %47, %46 : vector<2x128xf32>
    %cst_25 = arith.constant 5.000000e-01 : f32
    %49 = vector.broadcast %cst_25 : f32 to vector<2x128xf32>
    %50 = arith.addf %48, %49 : vector<2x128xf32>
    %51 = vector.extract_strided_slice %45 {offsets = [0, 128], sizes = [2, 128], strides = [1, 1]} : vector<2x512xf32> to vector<2x128xf32>
    %cst_26 = arith.constant 5.000000e-01 : f32
    %52 = vector.broadcast %cst_26 : f32 to vector<2x128xf32>
    %53 = arith.mulf %52, %51 : vector<2x128xf32>
    %cst_27 = arith.constant 5.000000e-01 : f32
    %54 = vector.broadcast %cst_27 : f32 to vector<2x128xf32>
    %55 = arith.addf %53, %54 : vector<2x128xf32>
    %56 = vector.extract_strided_slice %45 {offsets = [0, 256], sizes = [2, 128], strides = [1, 1]} : vector<2x512xf32> to vector<2x128xf32>
    %cst_28 = arith.constant 5.000000e-01 : f32
    %57 = vector.broadcast %cst_28 : f32 to vector<2x128xf32>
    %58 = arith.mulf %57, %56 : vector<2x128xf32>
    %cst_29 = arith.constant 5.000000e-01 : f32
    %59 = vector.broadcast %cst_29 : f32 to vector<2x128xf32>
    %60 = arith.addf %58, %59 : vector<2x128xf32>
    %61 = vector.extract_strided_slice %45 {offsets = [0, 384], sizes = [2, 128], strides = [1, 1]} : vector<2x512xf32> to vector<2x128xf32>
    %62 = arith.mulf %55, %15 : vector<2x128xf32>
    %63 = arith.mulf %50, %61 : vector<2x128xf32>
    %64 = arith.addf %62, %63 : vector<2x128xf32>
    %65 = math.tanh %64 : vector<2x128xf32>
    %66 = arith.mulf %60, %65 : vector<2x128xf32>
    %67 = arith.index_cast %c0_i32 : i32 to index
    %c0_30 = arith.constant 0 : index
    %c0_31 = arith.constant 0 : index
    %68 = vector.load %arg8[%67, %c0_30, %c0_31] : memref<8x2x128xf32, #tpu.memory_space<vmem>>, vector<1x2x128xf32>
    %69 = vector.shape_cast %68 : vector<1x2x128xf32> to vector<2x128xf32>
    %70 = vector.shape_cast %66 : vector<2x128xf32> to vector<1x2x128xf32>
    tpu.vector_store %arg8[%67, %c0_30, %c0_31], %70 {strides = array<i32>} : memref<8x2x128xf32, #tpu.memory_space<vmem>>, vector<1x2x128xf32>,
    %71 = arith.truncf %66 : vector<2x128xf32> to vector<2x128xbf16>
    %c1_i32 = arith.constant 1 : i32
    %cst_32 = arith.constant dense<0.000000e+00> : vector<2x512xf32>
    %72 = tpu.matmul %41, %3, %cst_32 {dimension_numbers = #tpu.dot_dimension_numbers<[1], [0], [0], [1], [0, 0, 1, 1], [], []>} : vector<2x128xbf16>, vector<128x512xbf16>, vector<2x512xf32> -> vector<2x512xf32>
    %cst_33 = arith.constant dense<0.000000e+00> : vector<2x512xf32>
    %73 = tpu.matmul %71, %5, %cst_33 {dimension_numbers = #tpu.dot_dimension_numbers<[1], [0], [0], [1], [0, 0, 1, 1], [], []>} : vector<2x128xbf16>, vector<128x512xbf16>, vector<2x512xf32> -> vector<2x512xf32>
    %74 = arith.addf %10, %72 : vector<2x512xf32>
    %75 = math.tanh %74 : vector<2x512xf32>
    %76 = vector.extract_strided_slice %75 {offsets = [0, 0], sizes = [2, 128], strides = [1, 1]} : vector<2x512xf32> to vector<2x128xf32>
    %cst_34 = arith.constant 5.000000e-01 : f32
    %77 = vector.broadcast %cst_34 : f32 to vector<2x128xf32>
    %78 = arith.mulf %77, %76 : vector<2x128xf32>
    %cst_35 = arith.constant 5.000000e-01 : f32
    %79 = vector.broadcast %cst_35 : f32 to vector<2x128xf32>
    %80 = arith.addf %78, %79 : vector<2x128xf32>
    %81 = vector.extract_strided_slice %75 {offsets = [0, 128], sizes = [2, 128], strides = [1, 1]} : vector<2x512xf32> to vector<2x128xf32>
    %cst_36 = arith.constant 5.000000e-01 : f32
    %82 = vector.broadcast %cst_36 : f32 to vector<2x128xf32>
    %83 = arith.mulf %82, %81 : vector<2x128xf32>
    %cst_37 = arith.constant 5.000000e-01 : f32
    %84 = vector.broadcast %cst_37 : f32 to vector<2x128xf32>
    %85 = arith.addf %83, %84 : vector<2x128xf32>
    %86 = vector.extract_strided_slice %75 {offsets = [0, 256], sizes = [2, 128], strides = [1, 1]} : vector<2x512xf32> to vector<2x128xf32>
    %cst_38 = arith.constant 5.000000e-01 : f32
    %87 = vector.broadcast %cst_38 : f32 to vector<2x128xf32>
    %88 = arith.mulf %87, %86 : vector<2x128xf32>
    %cst_39 = arith.constant 5.000000e-01 : f32
    %89 = vector.broadcast %cst_39 : f32 to vector<2x128xf32>
    %90 = arith.addf %88, %89 : vector<2x128xf32>
    %91 = vector.extract_strided_slice %75 {offsets = [0, 384], sizes = [2, 128], strides = [1, 1]} : vector<2x512xf32> to vector<2x128xf32>
    %92 = arith.mulf %85, %38 : vector<2x128xf32>
    %93 = arith.mulf %80, %91 : vector<2x128xf32>
    %94 = arith.addf %92, %93 : vector<2x128xf32>
    %95 = math.tanh %94 : vector<2x128xf32>
    %96 = arith.mulf %90, %95 : vector<2x128xf32>
    %97 = arith.truncf %96 : vector<2x128xf32> to vector<2x128xbf16>
    %cst_40 = arith.constant dense<0.000000e+00> : vector<2x512xf32>
    %98 = tpu.matmul %97, %4, %cst_40 {dimension_numbers = #tpu.dot_dimension_numbers<[1], [0], [0], [1], [0, 0, 1, 1], [], []>} : vector<2x128xbf16>, vector<128x512xbf16>, vector<2x512xf32> -> vector<2x512xf32>
    %99 = arith.addf %98, %13 : vector<2x512xf32>
    %100 = arith.addf %99, %73 : vector<2x512xf32>
    %101 = math.tanh %100 : vector<2x512xf32>
    %102 = vector.extract_strided_slice %101 {offsets = [0, 0], sizes = [2, 128], strides = [1, 1]} : vector<2x512xf32> to vector<2x128xf32>
    %cst_41 = arith.constant 5.000000e-01 : f32
    %103 = vector.broadcast %cst_41 : f32 to vector<2x128xf32>
    %104 = arith.mulf %103, %102 : vector<2x128xf32>
    %cst_42 = arith.constant 5.000000e-01 : f32
    %105 = vector.broadcast %cst_42 : f32 to vector<2x128xf32>
    %106 = arith.addf %104, %105 : vector<2x128xf32>
    %107 = vector.extract_strided_slice %101 {offsets = [0, 128], sizes = [2, 128], strides = [1, 1]} : vector<2x512xf32> to vector<2x128xf32>
    %cst_43 = arith.constant 5.000000e-01 : f32
    %108 = vector.broadcast %cst_43 : f32 to vector<2x128xf32>
    %109 = arith.mulf %108, %107 : vector<2x128xf32>
    %cst_44 = arith.constant 5.000000e-01 : f32
    %110 = vector.broadcast %cst_44 : f32 to vector<2x128xf32>
    %111 = arith.addf %109, %110 : vector<2x128xf32>
    %112 = vector.extract_strided_slice %101 {offsets = [0, 256], sizes = [2, 128], strides = [1, 1]} : vector<2x512xf32> to vector<2x128xf32>
    %cst_45 = arith.constant 5.000000e-01 : f32
    %113 = vector.broadcast %cst_45 : f32 to vector<2x128xf32>
    %114 = arith.mulf %113, %112 : vector<2x128xf32>
    %cst_46 = arith.constant 5.000000e-01 : f32
    %115 = vector.broadcast %cst_46 : f32 to vector<2x128xf32>
    %116 = arith.addf %114, %115 : vector<2x128xf32>
    %117 = vector.extract_strided_slice %101 {offsets = [0, 384], sizes = [2, 128], strides = [1, 1]} : vector<2x512xf32> to vector<2x128xf32>
    %118 = arith.mulf %111, %64 : vector<2x128xf32>
    %119 = arith.mulf %106, %117 : vector<2x128xf32>
    %120 = arith.addf %118, %119 : vector<2x128xf32>
    %121 = math.tanh %120 : vector<2x128xf32>
    %122 = arith.mulf %116, %121 : vector<2x128xf32>
    %123 = arith.index_cast %c1_i32 : i32 to index
    %c0_47 = arith.constant 0 : index
    %c0_48 = arith.constant 0 : index
    %124 = vector.load %arg8[%123, %c0_47, %c0_48] : memref<8x2x128xf32, #tpu.memory_space<vmem>>, vector<1x2x128xf32>
    %125 = vector.shape_cast %124 : vector<1x2x128xf32> to vector<2x128xf32>
    %126 = vector.shape_cast %122 : vector<2x128xf32> to vector<1x2x128xf32>
    tpu.vector_store %arg8[%123, %c0_47, %c0_48], %126 {strides = array<i32>} : memref<8x2x128xf32, #tpu.memory_space<vmem>>, vector<1x2x128xf32>,
    %127 = arith.truncf %122 : vector<2x128xf32> to vector<2x128xbf16>
    %c2_i32 = arith.constant 2 : i32
    %cst_49 = arith.constant dense<0.000000e+00> : vector<2x512xf32>
    %128 = tpu.matmul %97, %3, %cst_49 {dimension_numbers = #tpu.dot_dimension_numbers<[1], [0], [0], [1], [0, 0, 1, 1], [], []>} : vector<2x128xbf16>, vector<128x512xbf16>, vector<2x512xf32> -> vector<2x512xf32>
    %cst_50 = arith.constant dense<0.000000e+00> : vector<2x512xf32>
    %129 = tpu.matmul %127, %5, %cst_50 {dimension_numbers = #tpu.dot_dimension_numbers<[1], [0], [0], [1], [0, 0, 1, 1], [], []>} : vector<2x128xbf16>, vector<128x512xbf16>, vector<2x512xf32> -> vector<2x512xf32>
    %130 = arith.addf %10, %128 : vector<2x512xf32>
    %131 = math.tanh %130 : vector<2x512xf32>
    %132 = vector.extract_strided_slice %131 {offsets = [0, 0], sizes = [2, 128], strides = [1, 1]} : vector<2x512xf32> to vector<2x128xf32>
    %cst_51 = arith.constant 5.000000e-01 : f32
    %133 = vector.broadcast %cst_51 : f32 to vector<2x128xf32>
    %134 = arith.mulf %133, %132 : vector<2x128xf32>
    %cst_52 = arith.constant 5.000000e-01 : f32
    %135 = vector.broadcast %cst_52 : f32 to vector<2x128xf32>
    %136 = arith.addf %134, %135 : vector<2x128xf32>
    %137 = vector.extract_strided_slice %131 {offsets = [0, 128], sizes = [2, 128], strides = [1, 1]} : vector<2x512xf32> to vector<2x128xf32>
    %cst_53 = arith.constant 5.000000e-01 : f32
    %138 = vector.broadcast %cst_53 : f32 to vector<2x128xf32>
    %139 = arith.mulf %138, %137 : vector<2x128xf32>
    %cst_54 = arith.constant 5.000000e-01 : f32
    %140 = vector.broadcast %cst_54 : f32 to vector<2x128xf32>
    %141 = arith.addf %139, %140 : vector<2x128xf32>
    %142 = vector.extract_strided_slice %131 {offsets = [0, 256], sizes = [2, 128], strides = [1, 1]} : vector<2x512xf32> to vector<2x128xf32>
    %cst_55 = arith.constant 5.000000e-01 : f32
    %143 = vector.broadcast %cst_55 : f32 to vector<2x128xf32>
    %144 = arith.mulf %143, %142 : vector<2x128xf32>
    %cst_56 = arith.constant 5.000000e-01 : f32
    %145 = vector.broadcast %cst_56 : f32 to vector<2x128xf32>
    %146 = arith.addf %144, %145 : vector<2x128xf32>
    %147 = vector.extract_strided_slice %131 {offsets = [0, 384], sizes = [2, 128], strides = [1, 1]} : vector<2x512xf32> to vector<2x128xf32>
    %148 = arith.mulf %141, %94 : vector<2x128xf32>
    %149 = arith.mulf %136, %147 : vector<2x128xf32>
    %150 = arith.addf %148, %149 : vector<2x128xf32>
    %151 = math.tanh %150 : vector<2x128xf32>
    %152 = arith.mulf %146, %151 : vector<2x128xf32>
    %153 = arith.truncf %152 : vector<2x128xf32> to vector<2x128xbf16>
    %cst_57 = arith.constant dense<0.000000e+00> : vector<2x512xf32>
    %154 = tpu.matmul %153, %4, %cst_57 {dimension_numbers = #tpu.dot_dimension_numbers<[1], [0], [0], [1], [0, 0, 1, 1], [], []>} : vector<2x128xbf16>, vector<128x512xbf16>, vector<2x512xf32> -> vector<2x512xf32>
    %155 = arith.addf %154, %13 : vector<2x512xf32>
    %156 = arith.addf %155, %129 : vector<2x512xf32>
    %157 = math.tanh %156 : vector<2x512xf32>
    %158 = vector.extract_strided_slice %157 {offsets = [0, 0], sizes = [2, 128], strides = [1, 1]} : vector<2x512xf32> to vector<2x128xf32>
    %cst_58 = arith.constant 5.000000e-01 : f32
    %159 = vector.broadcast %cst_58 : f32 to vector<2x128xf32>
    %160 = arith.mulf %159, %158 : vector<2x128xf32>
    %cst_59 = arith.constant 5.000000e-01 : f32
    %161 = vector.broadcast %cst_59 : f32 to vector<2x128xf32>
    %162 = arith.addf %160, %161 : vector<2x128xf32>
    %163 = vector.extract_strided_slice %157 {offsets = [0, 128], sizes = [2, 128], strides = [1, 1]} : vector<2x512xf32> to vector<2x128xf32>
    %cst_60 = arith.constant 5.000000e-01 : f32
    %164 = vector.broadcast %cst_60 : f32 to vector<2x128xf32>
    %165 = arith.mulf %164, %163 : vector<2x128xf32>
    %cst_61 = arith.constant 5.000000e-01 : f32
    %166 = vector.broadcast %cst_61 : f32 to vector<2x128xf32>
    %167 = arith.addf %165, %166 : vector<2x128xf32>
    %168 = vector.extract_strided_slice %157 {offsets = [0, 256], sizes = [2, 128], strides = [1, 1]} : vector<2x512xf32> to vector<2x128xf32>
    %cst_62 = arith.constant 5.000000e-01 : f32
    %169 = vector.broadcast %cst_62 : f32 to vector<2x128xf32>
    %170 = arith.mulf %169, %168 : vector<2x128xf32>
    %cst_63 = arith.constant 5.000000e-01 : f32
    %171 = vector.broadcast %cst_63 : f32 to vector<2x128xf32>
    %172 = arith.addf %170, %171 : vector<2x128xf32>
    %173 = vector.extract_strided_slice %157 {offsets = [0, 384], sizes = [2, 128], strides = [1, 1]} : vector<2x512xf32> to vector<2x128xf32>
    %174 = arith.mulf %167, %120 : vector<2x128xf32>
    %175 = arith.mulf %162, %173 : vector<2x128xf32>
    %176 = arith.addf %174, %175 : vector<2x128xf32>
    %177 = math.tanh %176 : vector<2x128xf32>
    %178 = arith.mulf %172, %177 : vector<2x128xf32>
    %179 = arith.index_cast %c2_i32 : i32 to index
    %c0_64 = arith.constant 0 : index
    %c0_65 = arith.constant 0 : index
    %180 = vector.load %arg8[%179, %c0_64, %c0_65] : memref<8x2x128xf32, #tpu.memory_space<vmem>>, vector<1x2x128xf32>
    %181 = vector.shape_cast %180 : vector<1x2x128xf32> to vector<2x128xf32>
    %182 = vector.shape_cast %178 : vector<2x128xf32> to vector<1x2x128xf32>
    tpu.vector_store %arg8[%179, %c0_64, %c0_65], %182 {strides = array<i32>} : memref<8x2x128xf32, #tpu.memory_space<vmem>>, vector<1x2x128xf32>,
    %183 = arith.truncf %178 : vector<2x128xf32> to vector<2x128xbf16>
    %c3_i32 = arith.constant 3 : i32
    %cst_66 = arith.constant dense<0.000000e+00> : vector<2x512xf32>
    %184 = tpu.matmul %153, %3, %cst_66 {dimension_numbers = #tpu.dot_dimension_numbers<[1], [0], [0], [1], [0, 0, 1, 1], [], []>} : vector<2x128xbf16>, vector<128x512xbf16>, vector<2x512xf32> -> vector<2x512xf32>
    %cst_67 = arith.constant dense<0.000000e+00> : vector<2x512xf32>
    %185 = tpu.matmul %183, %5, %cst_67 {dimension_numbers = #tpu.dot_dimension_numbers<[1], [0], [0], [1], [0, 0, 1, 1], [], []>} : vector<2x128xbf16>, vector<128x512xbf16>, vector<2x512xf32> -> vector<2x512xf32>
    %186 = arith.addf %10, %184 : vector<2x512xf32>
    %187 = math.tanh %186 : vector<2x512xf32>
    %188 = vector.extract_strided_slice %187 {offsets = [0, 0], sizes = [2, 128], strides = [1, 1]} : vector<2x512xf32> to vector<2x128xf32>
    %cst_68 = arith.constant 5.000000e-01 : f32
    %189 = vector.broadcast %cst_68 : f32 to vector<2x128xf32>
    %190 = arith.mulf %189, %188 : vector<2x128xf32>
    %cst_69 = arith.constant 5.000000e-01 : f32
    %191 = vector.broadcast %cst_69 : f32 to vector<2x128xf32>
    %192 = arith.addf %190, %191 : vector<2x128xf32>
    %193 = vector.extract_strided_slice %187 {offsets = [0, 128], sizes = [2, 128], strides = [1, 1]} : vector<2x512xf32> to vector<2x128xf32>
    %cst_70 = arith.constant 5.000000e-01 : f32
    %194 = vector.broadcast %cst_70 : f32 to vector<2x128xf32>
    %195 = arith.mulf %194, %193 : vector<2x128xf32>
    %cst_71 = arith.constant 5.000000e-01 : f32
    %196 = vector.broadcast %cst_71 : f32 to vector<2x128xf32>
    %197 = arith.addf %195, %196 : vector<2x128xf32>
    %198 = vector.extract_strided_slice %187 {offsets = [0, 256], sizes = [2, 128], strides = [1, 1]} : vector<2x512xf32> to vector<2x128xf32>
    %cst_72 = arith.constant 5.000000e-01 : f32
    %199 = vector.broadcast %cst_72 : f32 to vector<2x128xf32>
    %200 = arith.mulf %199, %198 : vector<2x128xf32>
    %cst_73 = arith.constant 5.000000e-01 : f32
    %201 = vector.broadcast %cst_73 : f32 to vector<2x128xf32>
    %202 = arith.addf %200, %201 : vector<2x128xf32>
    %203 = vector.extract_strided_slice %187 {offsets = [0, 384], sizes = [2, 128], strides = [1, 1]} : vector<2x512xf32> to vector<2x128xf32>
    %204 = arith.mulf %197, %150 : vector<2x128xf32>
    %205 = arith.mulf %192, %203 : vector<2x128xf32>
    %206 = arith.addf %204, %205 : vector<2x128xf32>
    %207 = math.tanh %206 : vector<2x128xf32>
    %208 = arith.mulf %202, %207 : vector<2x128xf32>
    %209 = arith.truncf %208 : vector<2x128xf32> to vector<2x128xbf16>
    %cst_74 = arith.constant dense<0.000000e+00> : vector<2x512xf32>
    %210 = tpu.matmul %209, %4, %cst_74 {dimension_numbers = #tpu.dot_dimension_numbers<[1], [0], [0], [1], [0, 0, 1, 1], [], []>} : vector<2x128xbf16>, vector<128x512xbf16>, vector<2x512xf32> -> vector<2x512xf32>
    %211 = arith.addf %210, %13 : vector<2x512xf32>
    %212 = arith.addf %211, %185 : vector<2x512xf32>
    %213 = math.tanh %212 : vector<2x512xf32>
    %214 = vector.extract_strided_slice %213 {offsets = [0, 0], sizes = [2, 128], strides = [1, 1]} : vector<2x512xf32> to vector<2x128xf32>
    %cst_75 = arith.constant 5.000000e-01 : f32
    %215 = vector.broadcast %cst_75 : f32 to vector<2x128xf32>
    %216 = arith.mulf %215, %214 : vector<2x128xf32>
    %cst_76 = arith.constant 5.000000e-01 : f32
    %217 = vector.broadcast %cst_76 : f32 to vector<2x128xf32>
    %218 = arith.addf %216, %217 : vector<2x128xf32>
    %219 = vector.extract_strided_slice %213 {offsets = [0, 128], sizes = [2, 128], strides = [1, 1]} : vector<2x512xf32> to vector<2x128xf32>
    %cst_77 = arith.constant 5.000000e-01 : f32
    %220 = vector.broadcast %cst_77 : f32 to vector<2x128xf32>
    %221 = arith.mulf %220, %219 : vector<2x128xf32>
    %cst_78 = arith.constant 5.000000e-01 : f32
    %222 = vector.broadcast %cst_78 : f32 to vector<2x128xf32>
    %223 = arith.addf %221, %222 : vector<2x128xf32>
    %224 = vector.extract_strided_slice %213 {offsets = [0, 256], sizes = [2, 128], strides = [1, 1]} : vector<2x512xf32> to vector<2x128xf32>
    %cst_79 = arith.constant 5.000000e-01 : f32
    %225 = vector.broadcast %cst_79 : f32 to vector<2x128xf32>
    %226 = arith.mulf %225, %224 : vector<2x128xf32>
    %cst_80 = arith.constant 5.000000e-01 : f32
    %227 = vector.broadcast %cst_80 : f32 to vector<2x128xf32>
    %228 = arith.addf %226, %227 : vector<2x128xf32>
    %229 = vector.extract_strided_slice %213 {offsets = [0, 384], sizes = [2, 128], strides = [1, 1]} : vector<2x512xf32> to vector<2x128xf32>
    %230 = arith.mulf %223, %176 : vector<2x128xf32>
    %231 = arith.mulf %218, %229 : vector<2x128xf32>
    %232 = arith.addf %230, %231 : vector<2x128xf32>
    %233 = math.tanh %232 : vector<2x128xf32>
    %234 = arith.mulf %228, %233 : vector<2x128xf32>
    %235 = arith.index_cast %c3_i32 : i32 to index
    %c0_81 = arith.constant 0 : index
    %c0_82 = arith.constant 0 : index
    %236 = vector.load %arg8[%235, %c0_81, %c0_82] : memref<8x2x128xf32, #tpu.memory_space<vmem>>, vector<1x2x128xf32>
    %237 = vector.shape_cast %236 : vector<1x2x128xf32> to vector<2x128xf32>
    %238 = vector.shape_cast %234 : vector<2x128xf32> to vector<1x2x128xf32>
    tpu.vector_store %arg8[%235, %c0_81, %c0_82], %238 {strides = array<i32>} : memref<8x2x128xf32, #tpu.memory_space<vmem>>, vector<1x2x128xf32>,
    %239 = arith.truncf %234 : vector<2x128xf32> to vector<2x128xbf16>
    %c4_i32 = arith.constant 4 : i32
    %cst_83 = arith.constant dense<0.000000e+00> : vector<2x512xf32>
    %240 = tpu.matmul %209, %3, %cst_83 {dimension_numbers = #tpu.dot_dimension_numbers<[1], [0], [0], [1], [0, 0, 1, 1], [], []>} : vector<2x128xbf16>, vector<128x512xbf16>, vector<2x512xf32> -> vector<2x512xf32>
    %cst_84 = arith.constant dense<0.000000e+00> : vector<2x512xf32>
    %241 = tpu.matmul %239, %5, %cst_84 {dimension_numbers = #tpu.dot_dimension_numbers<[1], [0], [0], [1], [0, 0, 1, 1], [], []>} : vector<2x128xbf16>, vector<128x512xbf16>, vector<2x512xf32> -> vector<2x512xf32>
    %242 = arith.addf %10, %240 : vector<2x512xf32>
    %243 = math.tanh %242 : vector<2x512xf32>
    %244 = vector.extract_strided_slice %243 {offsets = [0, 0], sizes = [2, 128], strides = [1, 1]} : vector<2x512xf32> to vector<2x128xf32>
    %cst_85 = arith.constant 5.000000e-01 : f32
    %245 = vector.broadcast %cst_85 : f32 to vector<2x128xf32>
    %246 = arith.mulf %245, %244 : vector<2x128xf32>
    %cst_86 = arith.constant 5.000000e-01 : f32
    %247 = vector.broadcast %cst_86 : f32 to vector<2x128xf32>
    %248 = arith.addf %246, %247 : vector<2x128xf32>
    %249 = vector.extract_strided_slice %243 {offsets = [0, 128], sizes = [2, 128], strides = [1, 1]} : vector<2x512xf32> to vector<2x128xf32>
    %cst_87 = arith.constant 5.000000e-01 : f32
    %250 = vector.broadcast %cst_87 : f32 to vector<2x128xf32>
    %251 = arith.mulf %250, %249 : vector<2x128xf32>
    %cst_88 = arith.constant 5.000000e-01 : f32
    %252 = vector.broadcast %cst_88 : f32 to vector<2x128xf32>
    %253 = arith.addf %251, %252 : vector<2x128xf32>
    %254 = vector.extract_strided_slice %243 {offsets = [0, 256], sizes = [2, 128], strides = [1, 1]} : vector<2x512xf32> to vector<2x128xf32>
    %cst_89 = arith.constant 5.000000e-01 : f32
    %255 = vector.broadcast %cst_89 : f32 to vector<2x128xf32>
    %256 = arith.mulf %255, %254 : vector<2x128xf32>
    %cst_90 = arith.constant 5.000000e-01 : f32
    %257 = vector.broadcast %cst_90 : f32 to vector<2x128xf32>
    %258 = arith.addf %256, %257 : vector<2x128xf32>
    %259 = vector.extract_strided_slice %243 {offsets = [0, 384], sizes = [2, 128], strides = [1, 1]} : vector<2x512xf32> to vector<2x128xf32>
    %260 = arith.mulf %253, %206 : vector<2x128xf32>
    %261 = arith.mulf %248, %259 : vector<2x128xf32>
    %262 = arith.addf %260, %261 : vector<2x128xf32>
    %263 = math.tanh %262 : vector<2x128xf32>
    %264 = arith.mulf %258, %263 : vector<2x128xf32>
    %265 = arith.truncf %264 : vector<2x128xf32> to vector<2x128xbf16>
    %cst_91 = arith.constant dense<0.000000e+00> : vector<2x512xf32>
    %266 = tpu.matmul %265, %4, %cst_91 {dimension_numbers = #tpu.dot_dimension_numbers<[1], [0], [0], [1], [0, 0, 1, 1], [], []>} : vector<2x128xbf16>, vector<128x512xbf16>, vector<2x512xf32> -> vector<2x512xf32>
    %267 = arith.addf %266, %13 : vector<2x512xf32>
    %268 = arith.addf %267, %241 : vector<2x512xf32>
    %269 = math.tanh %268 : vector<2x512xf32>
    %270 = vector.extract_strided_slice %269 {offsets = [0, 0], sizes = [2, 128], strides = [1, 1]} : vector<2x512xf32> to vector<2x128xf32>
    %cst_92 = arith.constant 5.000000e-01 : f32
    %271 = vector.broadcast %cst_92 : f32 to vector<2x128xf32>
    %272 = arith.mulf %271, %270 : vector<2x128xf32>
    %cst_93 = arith.constant 5.000000e-01 : f32
    %273 = vector.broadcast %cst_93 : f32 to vector<2x128xf32>
    %274 = arith.addf %272, %273 : vector<2x128xf32>
    %275 = vector.extract_strided_slice %269 {offsets = [0, 128], sizes = [2, 128], strides = [1, 1]} : vector<2x512xf32> to vector<2x128xf32>
    %cst_94 = arith.constant 5.000000e-01 : f32
    %276 = vector.broadcast %cst_94 : f32 to vector<2x128xf32>
    %277 = arith.mulf %276, %275 : vector<2x128xf32>
    %cst_95 = arith.constant 5.000000e-01 : f32
    %278 = vector.broadcast %cst_95 : f32 to vector<2x128xf32>
    %279 = arith.addf %277, %278 : vector<2x128xf32>
    %280 = vector.extract_strided_slice %269 {offsets = [0, 256], sizes = [2, 128], strides = [1, 1]} : vector<2x512xf32> to vector<2x128xf32>
    %cst_96 = arith.constant 5.000000e-01 : f32
    %281 = vector.broadcast %cst_96 : f32 to vector<2x128xf32>
    %282 = arith.mulf %281, %280 : vector<2x128xf32>
    %cst_97 = arith.constant 5.000000e-01 : f32
    %283 = vector.broadcast %cst_97 : f32 to vector<2x128xf32>
    %284 = arith.addf %282, %283 : vector<2x128xf32>
    %285 = vector.extract_strided_slice %269 {offsets = [0, 384], sizes = [2, 128], strides = [1, 1]} : vector<2x512xf32> to vector<2x128xf32>
    %286 = arith.mulf %279, %232 : vector<2x128xf32>
    %287 = arith.mulf %274, %285 : vector<2x128xf32>
    %288 = arith.addf %286, %287 : vector<2x128xf32>
    %289 = math.tanh %288 : vector<2x128xf32>
    %290 = arith.mulf %284, %289 : vector<2x128xf32>
    %291 = arith.index_cast %c4_i32 : i32 to index
    %c0_98 = arith.constant 0 : index
    %c0_99 = arith.constant 0 : index
    %292 = vector.load %arg8[%291, %c0_98, %c0_99] : memref<8x2x128xf32, #tpu.memory_space<vmem>>, vector<1x2x128xf32>
    %293 = vector.shape_cast %292 : vector<1x2x128xf32> to vector<2x128xf32>
    %294 = vector.shape_cast %290 : vector<2x128xf32> to vector<1x2x128xf32>
    tpu.vector_store %arg8[%291, %c0_98, %c0_99], %294 {strides = array<i32>} : memref<8x2x128xf32, #tpu.memory_space<vmem>>, vector<1x2x128xf32>,
    %295 = arith.truncf %290 : vector<2x128xf32> to vector<2x128xbf16>
    %c5_i32 = arith.constant 5 : i32
    %cst_100 = arith.constant dense<0.000000e+00> : vector<2x512xf32>
    %296 = tpu.matmul %265, %3, %cst_100 {dimension_numbers = #tpu.dot_dimension_numbers<[1], [0], [0], [1], [0, 0, 1, 1], [], []>} : vector<2x128xbf16>, vector<128x512xbf16>, vector<2x512xf32> -> vector<2x512xf32>
    %cst_101 = arith.constant dense<0.000000e+00> : vector<2x512xf32>
    %297 = tpu.matmul %295, %5, %cst_101 {dimension_numbers = #tpu.dot_dimension_numbers<[1], [0], [0], [1], [0, 0, 1, 1], [], []>} : vector<2x128xbf16>, vector<128x512xbf16>, vector<2x512xf32> -> vector<2x512xf32>
    %298 = arith.addf %10, %296 : vector<2x512xf32>
    %299 = math.tanh %298 : vector<2x512xf32>
    %300 = vector.extract_strided_slice %299 {offsets = [0, 0], sizes = [2, 128], strides = [1, 1]} : vector<2x512xf32> to vector<2x128xf32>
    %cst_102 = arith.constant 5.000000e-01 : f32
    %301 = vector.broadcast %cst_102 : f32 to vector<2x128xf32>
    %302 = arith.mulf %301, %300 : vector<2x128xf32>
    %cst_103 = arith.constant 5.000000e-01 : f32
    %303 = vector.broadcast %cst_103 : f32 to vector<2x128xf32>
    %304 = arith.addf %302, %303 : vector<2x128xf32>
    %305 = vector.extract_strided_slice %299 {offsets = [0, 128], sizes = [2, 128], strides = [1, 1]} : vector<2x512xf32> to vector<2x128xf32>
    %cst_104 = arith.constant 5.000000e-01 : f32
    %306 = vector.broadcast %cst_104 : f32 to vector<2x128xf32>
    %307 = arith.mulf %306, %305 : vector<2x128xf32>
    %cst_105 = arith.constant 5.000000e-01 : f32
    %308 = vector.broadcast %cst_105 : f32 to vector<2x128xf32>
    %309 = arith.addf %307, %308 : vector<2x128xf32>
    %310 = vector.extract_strided_slice %299 {offsets = [0, 256], sizes = [2, 128], strides = [1, 1]} : vector<2x512xf32> to vector<2x128xf32>
    %cst_106 = arith.constant 5.000000e-01 : f32
    %311 = vector.broadcast %cst_106 : f32 to vector<2x128xf32>
    %312 = arith.mulf %311, %310 : vector<2x128xf32>
    %cst_107 = arith.constant 5.000000e-01 : f32
    %313 = vector.broadcast %cst_107 : f32 to vector<2x128xf32>
    %314 = arith.addf %312, %313 : vector<2x128xf32>
    %315 = vector.extract_strided_slice %299 {offsets = [0, 384], sizes = [2, 128], strides = [1, 1]} : vector<2x512xf32> to vector<2x128xf32>
    %316 = arith.mulf %309, %262 : vector<2x128xf32>
    %317 = arith.mulf %304, %315 : vector<2x128xf32>
    %318 = arith.addf %316, %317 : vector<2x128xf32>
    %319 = math.tanh %318 : vector<2x128xf32>
    %320 = arith.mulf %314, %319 : vector<2x128xf32>
    %321 = arith.truncf %320 : vector<2x128xf32> to vector<2x128xbf16>
    %cst_108 = arith.constant dense<0.000000e+00> : vector<2x512xf32>
    %322 = tpu.matmul %321, %4, %cst_108 {dimension_numbers = #tpu.dot_dimension_numbers<[1], [0], [0], [1], [0, 0, 1, 1], [], []>} : vector<2x128xbf16>, vector<128x512xbf16>, vector<2x512xf32> -> vector<2x512xf32>
    %323 = arith.addf %322, %13 : vector<2x512xf32>
    %324 = arith.addf %323, %297 : vector<2x512xf32>
    %325 = math.tanh %324 : vector<2x512xf32>
    %326 = vector.extract_strided_slice %325 {offsets = [0, 0], sizes = [2, 128], strides = [1, 1]} : vector<2x512xf32> to vector<2x128xf32>
    %cst_109 = arith.constant 5.000000e-01 : f32
    %327 = vector.broadcast %cst_109 : f32 to vector<2x128xf32>
    %328 = arith.mulf %327, %326 : vector<2x128xf32>
    %cst_110 = arith.constant 5.000000e-01 : f32
    %329 = vector.broadcast %cst_110 : f32 to vector<2x128xf32>
    %330 = arith.addf %328, %329 : vector<2x128xf32>
    %331 = vector.extract_strided_slice %325 {offsets = [0, 128], sizes = [2, 128], strides = [1, 1]} : vector<2x512xf32> to vector<2x128xf32>
    %cst_111 = arith.constant 5.000000e-01 : f32
    %332 = vector.broadcast %cst_111 : f32 to vector<2x128xf32>
    %333 = arith.mulf %332, %331 : vector<2x128xf32>
    %cst_112 = arith.constant 5.000000e-01 : f32
    %334 = vector.broadcast %cst_112 : f32 to vector<2x128xf32>
    %335 = arith.addf %333, %334 : vector<2x128xf32>
    %336 = vector.extract_strided_slice %325 {offsets = [0, 256], sizes = [2, 128], strides = [1, 1]} : vector<2x512xf32> to vector<2x128xf32>
    %cst_113 = arith.constant 5.000000e-01 : f32
    %337 = vector.broadcast %cst_113 : f32 to vector<2x128xf32>
    %338 = arith.mulf %337, %336 : vector<2x128xf32>
    %cst_114 = arith.constant 5.000000e-01 : f32
    %339 = vector.broadcast %cst_114 : f32 to vector<2x128xf32>
    %340 = arith.addf %338, %339 : vector<2x128xf32>
    %341 = vector.extract_strided_slice %325 {offsets = [0, 384], sizes = [2, 128], strides = [1, 1]} : vector<2x512xf32> to vector<2x128xf32>
    %342 = arith.mulf %335, %288 : vector<2x128xf32>
    %343 = arith.mulf %330, %341 : vector<2x128xf32>
    %344 = arith.addf %342, %343 : vector<2x128xf32>
    %345 = math.tanh %344 : vector<2x128xf32>
    %346 = arith.mulf %340, %345 : vector<2x128xf32>
    %347 = arith.index_cast %c5_i32 : i32 to index
    %c0_115 = arith.constant 0 : index
    %c0_116 = arith.constant 0 : index
    %348 = vector.load %arg8[%347, %c0_115, %c0_116] : memref<8x2x128xf32, #tpu.memory_space<vmem>>, vector<1x2x128xf32>
    %349 = vector.shape_cast %348 : vector<1x2x128xf32> to vector<2x128xf32>
    %350 = vector.shape_cast %346 : vector<2x128xf32> to vector<1x2x128xf32>
    tpu.vector_store %arg8[%347, %c0_115, %c0_116], %350 {strides = array<i32>} : memref<8x2x128xf32, #tpu.memory_space<vmem>>, vector<1x2x128xf32>,
    %351 = arith.truncf %346 : vector<2x128xf32> to vector<2x128xbf16>
    %c6_i32 = arith.constant 6 : i32
    %cst_117 = arith.constant dense<0.000000e+00> : vector<2x512xf32>
    %352 = tpu.matmul %321, %3, %cst_117 {dimension_numbers = #tpu.dot_dimension_numbers<[1], [0], [0], [1], [0, 0, 1, 1], [], []>} : vector<2x128xbf16>, vector<128x512xbf16>, vector<2x512xf32> -> vector<2x512xf32>
    %cst_118 = arith.constant dense<0.000000e+00> : vector<2x512xf32>
    %353 = tpu.matmul %351, %5, %cst_118 {dimension_numbers = #tpu.dot_dimension_numbers<[1], [0], [0], [1], [0, 0, 1, 1], [], []>} : vector<2x128xbf16>, vector<128x512xbf16>, vector<2x512xf32> -> vector<2x512xf32>
    %354 = arith.addf %10, %352 : vector<2x512xf32>
    %355 = math.tanh %354 : vector<2x512xf32>
    %356 = vector.extract_strided_slice %355 {offsets = [0, 0], sizes = [2, 128], strides = [1, 1]} : vector<2x512xf32> to vector<2x128xf32>
    %cst_119 = arith.constant 5.000000e-01 : f32
    %357 = vector.broadcast %cst_119 : f32 to vector<2x128xf32>
    %358 = arith.mulf %357, %356 : vector<2x128xf32>
    %cst_120 = arith.constant 5.000000e-01 : f32
    %359 = vector.broadcast %cst_120 : f32 to vector<2x128xf32>
    %360 = arith.addf %358, %359 : vector<2x128xf32>
    %361 = vector.extract_strided_slice %355 {offsets = [0, 128], sizes = [2, 128], strides = [1, 1]} : vector<2x512xf32> to vector<2x128xf32>
    %cst_121 = arith.constant 5.000000e-01 : f32
    %362 = vector.broadcast %cst_121 : f32 to vector<2x128xf32>
    %363 = arith.mulf %362, %361 : vector<2x128xf32>
    %cst_122 = arith.constant 5.000000e-01 : f32
    %364 = vector.broadcast %cst_122 : f32 to vector<2x128xf32>
    %365 = arith.addf %363, %364 : vector<2x128xf32>
    %366 = vector.extract_strided_slice %355 {offsets = [0, 256], sizes = [2, 128], strides = [1, 1]} : vector<2x512xf32> to vector<2x128xf32>
    %cst_123 = arith.constant 5.000000e-01 : f32
    %367 = vector.broadcast %cst_123 : f32 to vector<2x128xf32>
    %368 = arith.mulf %367, %366 : vector<2x128xf32>
    %cst_124 = arith.constant 5.000000e-01 : f32
    %369 = vector.broadcast %cst_124 : f32 to vector<2x128xf32>
    %370 = arith.addf %368, %369 : vector<2x128xf32>
    %371 = vector.extract_strided_slice %355 {offsets = [0, 384], sizes = [2, 128], strides = [1, 1]} : vector<2x512xf32> to vector<2x128xf32>
    %372 = arith.mulf %365, %318 : vector<2x128xf32>
    %373 = arith.mulf %360, %371 : vector<2x128xf32>
    %374 = arith.addf %372, %373 : vector<2x128xf32>
    %375 = math.tanh %374 : vector<2x128xf32>
    %376 = arith.mulf %370, %375 : vector<2x128xf32>
    %377 = arith.truncf %376 : vector<2x128xf32> to vector<2x128xbf16>
    %cst_125 = arith.constant dense<0.000000e+00> : vector<2x512xf32>
    %378 = tpu.matmul %377, %4, %cst_125 {dimension_numbers = #tpu.dot_dimension_numbers<[1], [0], [0], [1], [0, 0, 1, 1], [], []>} : vector<2x128xbf16>, vector<128x512xbf16>, vector<2x512xf32> -> vector<2x512xf32>
    %379 = arith.addf %378, %13 : vector<2x512xf32>
    %380 = arith.addf %379, %353 : vector<2x512xf32>
    %381 = math.tanh %380 : vector<2x512xf32>
    %382 = vector.extract_strided_slice %381 {offsets = [0, 0], sizes = [2, 128], strides = [1, 1]} : vector<2x512xf32> to vector<2x128xf32>
    %cst_126 = arith.constant 5.000000e-01 : f32
    %383 = vector.broadcast %cst_126 : f32 to vector<2x128xf32>
    %384 = arith.mulf %383, %382 : vector<2x128xf32>
    %cst_127 = arith.constant 5.000000e-01 : f32
    %385 = vector.broadcast %cst_127 : f32 to vector<2x128xf32>
    %386 = arith.addf %384, %385 : vector<2x128xf32>
    %387 = vector.extract_strided_slice %381 {offsets = [0, 128], sizes = [2, 128], strides = [1, 1]} : vector<2x512xf32> to vector<2x128xf32>
    %cst_128 = arith.constant 5.000000e-01 : f32
    %388 = vector.broadcast %cst_128 : f32 to vector<2x128xf32>
    %389 = arith.mulf %388, %387 : vector<2x128xf32>
    %cst_129 = arith.constant 5.000000e-01 : f32
    %390 = vector.broadcast %cst_129 : f32 to vector<2x128xf32>
    %391 = arith.addf %389, %390 : vector<2x128xf32>
    %392 = vector.extract_strided_slice %381 {offsets = [0, 256], sizes = [2, 128], strides = [1, 1]} : vector<2x512xf32> to vector<2x128xf32>
    %cst_130 = arith.constant 5.000000e-01 : f32
    %393 = vector.broadcast %cst_130 : f32 to vector<2x128xf32>
    %394 = arith.mulf %393, %392 : vector<2x128xf32>
    %cst_131 = arith.constant 5.000000e-01 : f32
    %395 = vector.broadcast %cst_131 : f32 to vector<2x128xf32>
    %396 = arith.addf %394, %395 : vector<2x128xf32>
    %397 = vector.extract_strided_slice %381 {offsets = [0, 384], sizes = [2, 128], strides = [1, 1]} : vector<2x512xf32> to vector<2x128xf32>
    %398 = arith.mulf %391, %344 : vector<2x128xf32>
    %399 = arith.mulf %386, %397 : vector<2x128xf32>
    %400 = arith.addf %398, %399 : vector<2x128xf32>
    %401 = math.tanh %400 : vector<2x128xf32>
    %402 = arith.mulf %396, %401 : vector<2x128xf32>
    %403 = arith.index_cast %c6_i32 : i32 to index
    %c0_132 = arith.constant 0 : index
    %c0_133 = arith.constant 0 : index
    %404 = vector.load %arg8[%403, %c0_132, %c0_133] : memref<8x2x128xf32, #tpu.memory_space<vmem>>, vector<1x2x128xf32>
    %405 = vector.shape_cast %404 : vector<1x2x128xf32> to vector<2x128xf32>
    %406 = vector.shape_cast %402 : vector<2x128xf32> to vector<1x2x128xf32>
    tpu.vector_store %arg8[%403, %c0_132, %c0_133], %406 {strides = array<i32>} : memref<8x2x128xf32, #tpu.memory_space<vmem>>, vector<1x2x128xf32>,
    %407 = arith.truncf %402 : vector<2x128xf32> to vector<2x128xbf16>
    %c7_i32 = arith.constant 7 : i32
    %cst_134 = arith.constant dense<0.000000e+00> : vector<2x512xf32>
    %408 = tpu.matmul %377, %3, %cst_134 {dimension_numbers = #tpu.dot_dimension_numbers<[1], [0], [0], [1], [0, 0, 1, 1], [], []>} : vector<2x128xbf16>, vector<128x512xbf16>, vector<2x512xf32> -> vector<2x512xf32>
    %cst_135 = arith.constant dense<0.000000e+00> : vector<2x512xf32>
    %409 = tpu.matmul %407, %5, %cst_135 {dimension_numbers = #tpu.dot_dimension_numbers<[1], [0], [0], [1], [0, 0, 1, 1], [], []>} : vector<2x128xbf16>, vector<128x512xbf16>, vector<2x512xf32> -> vector<2x512xf32>
    %410 = arith.addf %10, %408 : vector<2x512xf32>
    %411 = math.tanh %410 : vector<2x512xf32>
    %412 = vector.extract_strided_slice %411 {offsets = [0, 0], sizes = [2, 128], strides = [1, 1]} : vector<2x512xf32> to vector<2x128xf32>
    %cst_136 = arith.constant 5.000000e-01 : f32
    %413 = vector.broadcast %cst_136 : f32 to vector<2x128xf32>
    %414 = arith.mulf %413, %412 : vector<2x128xf32>
    %cst_137 = arith.constant 5.000000e-01 : f32
    %415 = vector.broadcast %cst_137 : f32 to vector<2x128xf32>
    %416 = arith.addf %414, %415 : vector<2x128xf32>
    %417 = vector.extract_strided_slice %411 {offsets = [0, 128], sizes = [2, 128], strides = [1, 1]} : vector<2x512xf32> to vector<2x128xf32>
    %cst_138 = arith.constant 5.000000e-01 : f32
    %418 = vector.broadcast %cst_138 : f32 to vector<2x128xf32>
    %419 = arith.mulf %418, %417 : vector<2x128xf32>
    %cst_139 = arith.constant 5.000000e-01 : f32
    %420 = vector.broadcast %cst_139 : f32 to vector<2x128xf32>
    %421 = arith.addf %419, %420 : vector<2x128xf32>
    %422 = vector.extract_strided_slice %411 {offsets = [0, 256], sizes = [2, 128], strides = [1, 1]} : vector<2x512xf32> to vector<2x128xf32>
    %cst_140 = arith.constant 5.000000e-01 : f32
    %423 = vector.broadcast %cst_140 : f32 to vector<2x128xf32>
    %424 = arith.mulf %423, %422 : vector<2x128xf32>
    %cst_141 = arith.constant 5.000000e-01 : f32
    %425 = vector.broadcast %cst_141 : f32 to vector<2x128xf32>
    %426 = arith.addf %424, %425 : vector<2x128xf32>
    %427 = vector.extract_strided_slice %411 {offsets = [0, 384], sizes = [2, 128], strides = [1, 1]} : vector<2x512xf32> to vector<2x128xf32>
    %428 = arith.mulf %421, %374 : vector<2x128xf32>
    %429 = arith.mulf %416, %427 : vector<2x128xf32>
    %430 = arith.addf %428, %429 : vector<2x128xf32>
    %431 = math.tanh %430 : vector<2x128xf32>
    %432 = arith.mulf %426, %431 : vector<2x128xf32>
    %433 = arith.truncf %432 : vector<2x128xf32> to vector<2x128xbf16>
    %cst_142 = arith.constant dense<0.000000e+00> : vector<2x512xf32>
    %434 = tpu.matmul %433, %4, %cst_142 {dimension_numbers = #tpu.dot_dimension_numbers<[1], [0], [0], [1], [0, 0, 1, 1], [], []>} : vector<2x128xbf16>, vector<128x512xbf16>, vector<2x512xf32> -> vector<2x512xf32>
    %435 = arith.addf %434, %13 : vector<2x512xf32>
    %436 = arith.addf %435, %409 : vector<2x512xf32>
    %437 = math.tanh %436 : vector<2x512xf32>
    %438 = vector.extract_strided_slice %437 {offsets = [0, 0], sizes = [2, 128], strides = [1, 1]} : vector<2x512xf32> to vector<2x128xf32>
    %cst_143 = arith.constant 5.000000e-01 : f32
    %439 = vector.broadcast %cst_143 : f32 to vector<2x128xf32>
    %440 = arith.mulf %439, %438 : vector<2x128xf32>
    %cst_144 = arith.constant 5.000000e-01 : f32
    %441 = vector.broadcast %cst_144 : f32 to vector<2x128xf32>
    %442 = arith.addf %440, %441 : vector<2x128xf32>
    %443 = vector.extract_strided_slice %437 {offsets = [0, 128], sizes = [2, 128], strides = [1, 1]} : vector<2x512xf32> to vector<2x128xf32>
    %cst_145 = arith.constant 5.000000e-01 : f32
    %444 = vector.broadcast %cst_145 : f32 to vector<2x128xf32>
    %445 = arith.mulf %444, %443 : vector<2x128xf32>
    %cst_146 = arith.constant 5.000000e-01 : f32
    %446 = vector.broadcast %cst_146 : f32 to vector<2x128xf32>
    %447 = arith.addf %445, %446 : vector<2x128xf32>
    %448 = vector.extract_strided_slice %437 {offsets = [0, 256], sizes = [2, 128], strides = [1, 1]} : vector<2x512xf32> to vector<2x128xf32>
    %cst_147 = arith.constant 5.000000e-01 : f32
    %449 = vector.broadcast %cst_147 : f32 to vector<2x128xf32>
    %450 = arith.mulf %449, %448 : vector<2x128xf32>
    %cst_148 = arith.constant 5.000000e-01 : f32
    %451 = vector.broadcast %cst_148 : f32 to vector<2x128xf32>
    %452 = arith.addf %450, %451 : vector<2x128xf32>
    %453 = vector.extract_strided_slice %437 {offsets = [0, 384], sizes = [2, 128], strides = [1, 1]} : vector<2x512xf32> to vector<2x128xf32>
    %454 = arith.mulf %447, %400 : vector<2x128xf32>
    %455 = arith.mulf %442, %453 : vector<2x128xf32>
    %456 = arith.addf %454, %455 : vector<2x128xf32>
    %457 = math.tanh %456 : vector<2x128xf32>
    %458 = arith.mulf %452, %457 : vector<2x128xf32>
    %459 = arith.index_cast %c7_i32 : i32 to index
    %c0_149 = arith.constant 0 : index
    %c0_150 = arith.constant 0 : index
    %460 = vector.load %arg8[%459, %c0_149, %c0_150] : memref<8x2x128xf32, #tpu.memory_space<vmem>>, vector<1x2x128xf32>
    %461 = vector.shape_cast %460 : vector<1x2x128xf32> to vector<2x128xf32>
    %462 = vector.shape_cast %458 : vector<2x128xf32> to vector<1x2x128xf32>
    tpu.vector_store %arg8[%459, %c0_149, %c0_150], %462 {strides = array<i32>} : memref<8x2x128xf32, #tpu.memory_space<vmem>>, vector<1x2x128xf32>,
    %463 = arith.truncf %458 : vector<2x128xf32> to vector<2x128xbf16>
    %c8_i32 = arith.constant 8 : i32
    %c0_151 = arith.constant 0 : index
    %c0_152 = arith.constant 0 : index
    %c0_153 = arith.constant 0 : index
    %464 = vector.load %arg8[%c0_151, %c0_152, %c0_153] : memref<8x2x128xf32, #tpu.memory_space<vmem>>, vector<8x2x128xf32>
    %465 = vector.extract_strided_slice %464 {offsets = [0, 0, 0], sizes = [8, 1, 128], strides = [1, 1, 1]} : vector<8x2x128xf32> to vector<8x1x128xf32>
    %466 = vector.shape_cast %465 : vector<8x1x128xf32> to vector<8x128xf32>
    %467 = tpu.transpose %466, [1, 0] : vector<8x128xf32> -> vector<128x8xf32>
    %c0_154 = arith.constant 0 : index
    %c0_155 = arith.constant 0 : index
    %c0_156 = arith.constant 0 : index
    %c0_157 = arith.constant 0 : index
    %468 = vector.load %arg7[%c0_154, %c0_155, %c0_156, %c0_157] : memref<2x1x128x8xf32, #tpu.memory_space<vmem>>, vector<1x1x128x8xf32>
    %469 = vector.shape_cast %468 : vector<1x1x128x8xf32> to vector<128x8xf32>
    %470 = vector.shape_cast %467 : vector<128x8xf32> to vector<1x1x128x8xf32>
    tpu.vector_store %arg7[%c0_154, %c0_155, %c0_156, %c0_157], %470 {strides = array<i32>} : memref<2x1x128x8xf32, #tpu.memory_space<vmem>>, vector<1x1x128x8xf32>,
    %471 = vector.extract_strided_slice %464 {offsets = [0, 1, 0], sizes = [8, 1, 128], strides = [1, 1, 1]} : vector<8x2x128xf32> to vector<8x1x128xf32>
    %472 = vector.shape_cast %471 : vector<8x1x128xf32> to vector<8x128xf32>
    %473 = tpu.transpose %472, [1, 0] : vector<8x128xf32> -> vector<128x8xf32>
    %c1 = arith.constant 1 : index
    %c0_158 = arith.constant 0 : index
    %c0_159 = arith.constant 0 : index
    %c0_160 = arith.constant 0 : index
    %474 = vector.load %arg7[%c1, %c0_158, %c0_159, %c0_160] : memref<2x1x128x8xf32, #tpu.memory_space<vmem>>, vector<1x1x128x8xf32>
    %475 = vector.shape_cast %474 : vector<1x1x128x8xf32> to vector<128x8xf32>
    %476 = vector.shape_cast %473 : vector<128x8xf32> to vector<1x1x128x8xf32>
    tpu.vector_store %arg7[%c1, %c0_158, %c0_159, %c0_160], %476 {strides = array<i32>} : memref<2x1x128x8xf32, #tpu.memory_space<vmem>>, vector<1x1x128x8xf32>,
    return
  }
}

</mosaic_0001>

<bundles_post_ra>
// kernel: rae_dec_forward.1
= control target key start
LH: loop header
LB: loop body
LE: loop exit
PB: predicated region body
PF: predicated region fallthrough
CT: control target
= control target key end

     0   :  { %12 = vsyncpa [#allocation4], 0  ;;  %s6032_s0 = inlined_call_operand.hbm [shape: f32[2,32], index: 0, kind: input, shape index: {}]   ;;  %s6033_s1 = inlined_call_operand.hbm [shape: bf16[32,512], index: 1, kind: input, shape index: {}]   ;;  %s6034_s2 = inlined_call_operand.hbm [shape: bf16[128,512], index: 2, kind: input, shape index: {}]   ;;  %s6035_s3 = inlined_call_operand.hbm [shape: f32[1,512], index: 3, kind: input, shape index: {}]   ;;  %s6036_s4 = inlined_call_operand.hbm [shape: bf16[128,512], index: 4, kind: input, shape index: {}]   ;;  %s6037_s5 = inlined_call_operand.hbm [shape: bf16[128,512], index: 5, kind: input, shape index: {}]   ;;  %s6038_s6 = inlined_call_operand.vmem [shape: f32[1,512], index: 6, kind: input, shape index: {}]   ;;  %s6039_s7 = inlined_call_operand.vmem [shape: f32[2,1,128,8], index: 7, kind: output, shape index: {}]  }
   0x1   :  { %13 = vsyncpa [#allocation6], 0 }
   0x2   :  { %14 = vsyncpa [#allocation9], 0 }
   0x3   :  { %15 = vsyncpa [#allocation12], 0  ;;  %s4198_s24 = smov [#allocation5]   ;;  %s4058_s28 = scalar_lea.hbm %s6033_s1, 1024 }
   0x4   :  { %s31_s25 = sshll.u32 %s4198_s24, 4  ;;  %p4059_p0 = scmp.ne.s32.totalorder %s6033_s1, %s4058_s28  ;;  %s32_s25 = int_to_ptr.vmem [resolvable:$true] %s31_s25 }
   0x5   :  { %p4062_p1 = scmp.lt.u32.totalorder %s4058_s28, %s6033_s1 }
   0x7   :  { %p4064_p2 = pnand %p4062_p1, %p4059_p0 }
   0x9   :  { %4067 = shalt.err (!%p4064_p2)
}
   0xa   :  { %s4068_s10 = scalar_lea.vmem %s32_s25, 1024  ;;  %p4073_p4 = scmp.lt.s32.totalorder %s32_s25, %s32_s25 }
   0xb   :  { %p4069_p3 = scmp.ne.s32.totalorder %s32_s25, %s4068_s10  ;;  %p4074_p5 = scmp.lt.s32.totalorder %s4068_s10, %s4068_s10 }
   0xd   :  { %p4075_p6 = por %p4074_p5, %p4073_p4 }
   0xf   :  { %p4076_p7 = pnand %p4075_p6, %p4069_p3 }
  0x11   :  { %4079 = shalt.err (!%p4076_p7)
}
  0x12   :  { %s4199_s11 = smov 256   ;;  %s4200_s12 = smov 16  }
  0x13   :  { %37 = dma.hbm_to_vmem [thread:$0]  %s6033_s1, 1024, %s32_s25, [#allocation6], %s4199_s11, %s4199_s11, %s4200_s12  }
  0x14   :  { %s4201_s15 = smov [#allocation8]   ;;  %s4202_s17 = smov [#allocation3]  }
  0x15   :  { %s56_s16 = sshll.u32 %s4201_s15, 4  ;;  %s22_s18 = sshll.u32 %s4202_s17, 4  ;;  %s57_s16 = int_to_ptr.vmem [resolvable:$true] %s56_s16  ;;  %s23_s18 = int_to_ptr.vmem [resolvable:$true] %s22_s18 }
  0x16   :  { %s4080_s21 = scalar_lea.hbm %s6035_s3, 64 }
  0x17   :  { %p4081_p8 = scmp.ne.s32.totalorder %s6035_s3, %s4080_s21  ;;  %p4084_p9 = scmp.lt.u32.totalorder %s4080_s21, %s6035_s3 }
  0x19   :  { %p4086_p10 = pnand %p4084_p9, %p4081_p8 }
  0x1b   :  { %4089 = shalt.err (!%p4086_p10)
}
  0x1c   :  { %s4090_s1 = scalar_lea.vmem %s57_s16, 64  ;;  %p4095_p12 = scmp.lt.s32.totalorder %s57_s16, %s57_s16 }
  0x1d   :  { %p4091_p11 = scmp.ne.s32.totalorder %s57_s16, %s4090_s1  ;;  %p4096_p13 = scmp.lt.s32.totalorder %s4090_s1, %s4090_s1 }
  0x1f   :  { %p4097_p0 = por %p4096_p13, %p4095_p12 }
  0x21   :  { %p4098_p1 = pnand %p4097_p0, %p4091_p11 }
  0x23   :  { %4101 = shalt.err (!%p4098_p1)
}
  0x24   :  { %59 = dma.hbm_to_vmem [thread:$0]  %s6035_s3, 64, %s57_s16, [#allocation9]  }
  0x25   :  { %s4102_s30 = scalar_lea.hbm %s6032_s0, 32 }
  0x26   :  { %p4103_p2 = scmp.ne.s32.totalorder %s6032_s0, %s4102_s30  ;;  %p4106_p3 = scmp.lt.u32.totalorder %s4102_s30, %s6032_s0 }
  0x28   :  { %p4108_p4 = pnand %p4106_p3, %p4103_p2 }
  0x2a   :  { %4111 = shalt.err (!%p4108_p4)
}
  0x2b   :  { %s4112_s14 = scalar_lea.vmem %s23_s18, 32  ;;  %p4117_p6 = scmp.lt.s32.totalorder %s23_s18, %s23_s18 }
  0x2c   :  { %p4113_p5 = scmp.ne.s32.totalorder %s23_s18, %s4112_s14  ;;  %p4118_p7 = scmp.lt.s32.totalorder %s4112_s14, %s4112_s14 }
  0x2e   :  { %p4119_p8 = por %p4118_p7, %p4117_p6 }
  0x30   :  { %p4120_p9 = pnand %p4119_p8, %p4113_p5 }
  0x32   :  { %4123 = shalt.err (!%p4120_p9)
}
  0x33   :  { %25 = dma.hbm_to_vmem [thread:$0]  %s6032_s0, 32, %s23_s18, [#allocation4]  }
  0x34   :  { %s4203_s16 = smov [#allocation7]   ;;  %s4204_s19 = smov [#allocation10]  }
  0x35   :  { %s43_s17 = sshll.u32 %s4203_s16, 4  ;;  %s65_s20 = sshll.u32 %s4204_s19, 4  ;;  %s44_s17 = int_to_ptr.vmem [resolvable:$true] %s43_s17  ;;  %s66_s20 = int_to_ptr.vmem [resolvable:$true] %s65_s20 }
  0x36   :  { %s4124_s23 = scalar_lea.hbm %s6034_s2, 4096 }
  0x37   :  { %p4125_p10 = scmp.ne.s32.totalorder %s6034_s2, %s4124_s23  ;;  %p4128_p11 = scmp.lt.u32.totalorder %s4124_s23, %s6034_s2 }
  0x39   :  { %p4130_p12 = pnand %p4128_p11, %p4125_p10 }
  0x3b   :  { %4133 = shalt.err (!%p4130_p12)
}
  0x3c   :  { %s4134_s0 = scalar_lea.vmem %s44_s17, 4096  ;;  %p4139_p0 = scmp.lt.s32.totalorder %s44_s17, %s44_s17 }
  0x3d   :  { %p4135_p13 = scmp.ne.s32.totalorder %s44_s17, %s4134_s0  ;;  %p4140_p1 = scmp.lt.s32.totalorder %s4134_s0, %s4134_s0 }
  0x3f   :  { %p4141_p2 = por %p4140_p1, %p4139_p0 }
  0x41   :  { %p4142_p3 = pnand %p4141_p2, %p4135_p13 }
  0x43   :  { %4145 = shalt.err (!%p4142_p3)
}
  0x44   :  { %49 = dma.hbm_to_vmem [thread:$0]  %s6034_s2, 4096, %s44_s17, [#allocation6], %s4199_s11, %s4199_s11, %s4200_s12  }
  0x45   :  { %s4146_s30 = scalar_lea.hbm %s6036_s4, 4096 }
  0x46   :  { %p4147_p4 = scmp.ne.s32.totalorder %s6036_s4, %s4146_s30  ;;  %p4150_p5 = scmp.lt.u32.totalorder %s4146_s30, %s6036_s4 }
  0x48   :  { %p4152_p6 = pnand %p4150_p5, %p4147_p4 }
  0x4a   :  { %4155 = shalt.err (!%p4152_p6)
}
  0x4b   :  { %s4156_s14 = scalar_lea.vmem %s66_s20, 4096  ;;  %p4161_p8 = scmp.lt.s32.totalorder %s66_s20, %s66_s20 }
  0x4c   :  { %p4157_p7 = scmp.ne.s32.totalorder %s66_s20, %s4156_s14  ;;  %p4162_p9 = scmp.lt.s32.totalorder %s4156_s14, %s4156_s14 }
  0x4e   :  { %p4163_p10 = por %p4162_p9, %p4161_p8 }
  0x50   :  { %p4164_p11 = pnand %p4163_p10, %p4157_p7 }
  0x52   :  { %4167 = shalt.err (!%p4164_p11)
}
  0x53   :  { %71 = dma.hbm_to_vmem [thread:$0]  %s6036_s4, 4096, %s66_s20, [#allocation9], %s4199_s11, %s4199_s11, %s4200_s12  }
  0x54   :  { %s4205_s15 = smov [#allocation11]   ;;  %s4168_s21 = scalar_lea.hbm %s6037_s5, 4096 }
  0x55   :  { %s77_s16 = sshll.u32 %s4205_s15, 4  ;;  %p4169_p12 = scmp.ne.s32.totalorder %s6037_s5, %s4168_s21  ;;  %s78_s16 = int_to_ptr.vmem [resolvable:$true] %s77_s16 }
  0x56   :  { %p4172_p13 = scmp.lt.u32.totalorder %s4168_s21, %s6037_s5 }
  0x58   :  { %p4174_p0 = pnand %p4172_p13, %p4169_p12 }
  0x5a   :  { %4177 = shalt.err (!%p4174_p0)
}
  0x5b   :  { %s4178_s1 = scalar_lea.vmem %s78_s16, 4096  ;;  %p4183_p2 = scmp.lt.s32.totalorder %s78_s16, %s78_s16 }
  0x5c   :  { %p4179_p1 = scmp.ne.s32.totalorder %s78_s16, %s4178_s1  ;;  %p4184_p3 = scmp.lt.s32.totalorder %s4178_s1, %s4178_s1 }
  0x5e   :  { %p4185_p4 = por %p4184_p3, %p4183_p2 }
  0x60   :  { %p4186_p5 = pnand %p4185_p4, %p4179_p1 }
  0x62   :  { %4189 = shalt.err (!%p4186_p5)
}
  0x63   :  { %83 = dma.hbm_to_vmem [thread:$0]  %s6037_s5, 4096, %s78_s16, [#allocation12], %s4199_s11, %s4199_s11, %s4200_s12  }
  0x64   :  { %4190 = dma.done.wait [#allocation4], 32  }
  0x65   :  { %4191 = vsyncadd [#allocation4], 4294967264 }
  0x66   :  { %4192 = dma.done.wait [#allocation6], 5120  }
  0x67   :  { %4193 = vsyncadd [#allocation6], 4294962176 }
  0x68   :  { %4194 = dma.done.wait [#allocation9], 4160  }
  0x69   :  { %4195 = vsyncadd [#allocation9], 4294963136 }
  0x6a   :  { %4196 = dma.done.wait [#allocation12], 4096  }
  0x6b   :  { %4197 = vsyncadd [#allocation12], 4294963200  ;;  %v6040_v0 = vmov 0   ;;  %v3550_v1 = vld [vmem:[#allocation5 + $0x4] ss:$16 sps:$4 sm:$0xff]   ;;  %vm273_vm0 = vcmask 261120  }
  0x6c   :  { %309 = vmatprep.mubr.bf16.mxu0 %v6040_v0  ;;  %350 = vmatprep.mubr.bf16.mxu1 %v6040_v0  ;;  %v3552_v2 = vld [vmem:[#allocation5 + $0xc] ss:$16 sps:$4 sm:$0xff]   ;;  %v3554_v3 = vld [vmem:[#allocation5] ss:$16 sps:$4 sm:$0xff]   ;;  %v3555_v4 = vld [vmem:[#allocation5 + $0x8] ss:$16 sps:$4 sm:$0xff]  }
  0x6d   :  { %277 = vmatprep.subr.bf16.mxu0 %v3550_v1  ;;  %318 = vmatprep.subr.bf16.mxu1 %v3552_v2  ;;  %v3556_v5 = vld [vmem:[#allocation5 + $0x24] ss:$16 sps:$4 sm:$0xff]   ;;  %v3558_v6 = vld [vmem:[#allocation5 + $0x2c] ss:$16 sps:$4 sm:$0xff]   ;;  %v3560_v7 = vld [vmem:[#allocation5 + $0x20] ss:$16 sps:$4 sm:$0xff]  }
  0x6e   :  { %278 = vmatpush1.bf16.msra.mxu0 %v3554_v3  ;;  %319 = vmatpush1.bf16.msra.mxu1 %v3555_v4  ;;  %v3561_v8 = vld [vmem:[#allocation5 + $0x28] ss:$16 sps:$4 sm:$0xff]   ;;  %v105_v9 = vld [vmem:[#allocation3] sm:$0x3]  ;;  %v4333_v10 = vld [vmem:[#allocation7 + $0x4] ss:$16 sps:$4 sm:$0xff]  }
  0x6f   :  { %279 = vmatprep.subr.bf16.mxu0 %v3556_v5  ;;  %320 = vmatprep.subr.bf16.mxu1 %v3558_v6  ;;  %v106_v11 = vpack.c.bf16 %v105_v9, %v105_v9  ;;  %v4335_v12 = vld [vmem:[#allocation7 + $0xc] ss:$16 sps:$4 sm:$0xff]   ;;  %v4337_v13 = vld [vmem:[#allocation7] ss:$16 sps:$4 sm:$0xff]   ;;  %v4339_v14 = vld [vmem:[#allocation7 + $0x8] ss:$16 sps:$4 sm:$0xff]  }
  0x70   :  { %v4343_v15 = vld [vmem:[#allocation7 + $0x24] ss:$16 sps:$4 sm:$0xff]   ;;  %v4345_v16 = vld [vmem:[#allocation7 + $0x2c] ss:$16 sps:$4 sm:$0xff]   ;;  %v4347_v17 = vld [vmem:[#allocation7 + $0x20] ss:$16 sps:$4 sm:$0xff]  }
  0x71   :  { %v4351_v18 = vld [vmem:[#allocation7 + $0x28] ss:$16 sps:$4 sm:$0xff]   ;;  %v4355_v19 = vld [vmem:[#allocation7 + $0x44] ss:$16 sps:$4 sm:$0xff]   ;;  %v4357_v20 = vld [vmem:[#allocation7 + $0x4c] ss:$16 sps:$4 sm:$0xff]  }
  0x72   :  { %280 = vmatpush1.bf16.msra.mxu0 %v3560_v7  ;;  %321 = vmatpush1.bf16.msra.mxu1 %v3561_v8  ;;  %v4361_v21 = vld [vmem:[#allocation7 + $0x40] ss:$16 sps:$4 sm:$0xff]   ;;  %v4363_v22 = vld [vmem:[#allocation7 + $0x48] ss:$16 sps:$4 sm:$0xff]   ;;  %v4367_v23 = vld [vmem:[#allocation7 + $0x64] ss:$16 sps:$4 sm:$0xff]  }
  0x73   :  { %541 = vmatprep.subr.bf16.mxu0 %v4333_v10  ;;  %582 = vmatprep.subr.bf16.mxu1 %v4335_v12  ;;  %v4371_v24 = vld [vmem:[#allocation7 + $0x6c] ss:$16 sps:$4 sm:$0xff]   ;;  %v4373_v25 = vld [vmem:[#allocation7 + $0x60] ss:$16 sps:$4 sm:$0xff]   ;;  %v4377_v26 = vld [vmem:[#allocation7 + $0x68] ss:$16 sps:$4 sm:$0xff]  }
  0x74   :  { %v4381_v27 = vld [vmem:[#allocation7 + $0x84] ss:$16 sps:$4 sm:$0xff]   ;;  %v4383_v28 = vld [vmem:[#allocation7 + $0x8c] ss:$16 sps:$4 sm:$0xff]   ;;  %v4385_v29 = vld [vmem:[#allocation7 + $0x80] ss:$16 sps:$4 sm:$0xff]  }
  0x75   :  { %3330 = vmatmul.mubr.msk.bf16.vlgmr.msra.gmra.mrb[0].mxu0 %vm273_vm0, %v106_v11  ;;  %3331 = vmatmul.mubr.msk.bf16.vlgmr.msra.gmra.mrb[0].mxu1 %vm273_vm0, %v106_v11  ;;  %v4387_v30 = vld [vmem:[#allocation7 + $0x88] ss:$16 sps:$4 sm:$0xff]   ;;  %v4391_v31 = vld [vmem:[#allocation7 + $0xa4] ss:$16 sps:$4 sm:$0xff]   ;;  %v4395_v32 = vld [vmem:[#allocation7 + $0xac] ss:$16 sps:$4 sm:$0xff]  }
  0x76   :  { %542 = vmatpush1.bf16.msra.mxu0 %v4337_v13  ;;  %583 = vmatpush1.bf16.msra.mxu1 %v4339_v14  ;;  %v4397_v33 = vld [vmem:[#allocation7 + $0xa0] ss:$16 sps:$4 sm:$0xff]   ;;  %v4399_v34 = vld [vmem:[#allocation7 + $0xa8] ss:$16 sps:$4 sm:$0xff]   ;;  %v4401_v35 = vld [vmem:[#allocation7 + $0xc4] ss:$16 sps:$4 sm:$0xff]  }
  0x77   :  { %543 = vmatprep.subr.bf16.mxu0 %v4343_v15  ;;  %584 = vmatprep.subr.bf16.mxu1 %v4345_v16  ;;  %v4403_v36 = vld [vmem:[#allocation7 + $0xcc] ss:$16 sps:$4 sm:$0xff]   ;;  %v4409_v37 = vld [vmem:[#allocation7 + $0xc0] ss:$16 sps:$4 sm:$0xff]   ;;  %v4411_v38 = vld [vmem:[#allocation7 + $0xc8] ss:$16 sps:$4 sm:$0xff]  }
  0x78   :  { %573 = vmatprep.mubr.bf16.mxu0 %v6040_v0  ;;  %614 = vmatprep.mubr.bf16.mxu1 %v6040_v0  ;;  %v4413_v39 = vld [vmem:[#allocation7 + $0xe4] ss:$16 sps:$4 sm:$0xff]   ;;  %v4415_v40 = vld [vmem:[#allocation7 + $0xec] ss:$16 sps:$4 sm:$0xff]   ;;  %v4421_v41 = vld [vmem:[#allocation7 + $0xe0] ss:$16 sps:$4 sm:$0xff]  }
  0x79   :  { %v4423_v42 = vld [vmem:[#allocation7 + $0xe8] ss:$16 sps:$4 sm:$0xff]   ;;  %v4437_v44 = vld [vmem:[#allocation11 + $0xc] ss:$16 sps:$4 sm:$0xff]   ;;  %v4439_v45 = vld [vmem:[#allocation11] ss:$16 sps:$4 sm:$0xff]  }
  0x7a   :  { %544 = vmatpush1.bf16.msra.mxu0 %v4347_v17  ;;  %585 = vmatpush1.bf16.msra.mxu1 %v4351_v18  ;;  %v4435_v43 = vld [vmem:[#allocation11 + $0x4] ss:$16 sps:$4 sm:$0xff]   ;;  %v4441_v46 = vld [vmem:[#allocation11 + $0x8] ss:$16 sps:$4 sm:$0xff]   ;;  %v4445_v48 = vld [vmem:[#allocation11 + $0x2c] ss:$16 sps:$4 sm:$0xff]  }
  0x7b   :  { %545 = vmatprep.subr.bf16.mxu0 %v4355_v19  ;;  %586 = vmatprep.subr.bf16.mxu1 %v4357_v20  ;;  %v4443_v47 = vld [vmem:[#allocation11 + $0x24] ss:$16 sps:$4 sm:$0xff]   ;;  %v4451_v49 = vld [vmem:[#allocation11 + $0x20] ss:$16 sps:$4 sm:$0xff]   ;;  %v4453_v50 = vld [vmem:[#allocation11 + $0x28] ss:$16 sps:$4 sm:$0xff]  }
  0x7c   :  { %v4457_v51 = vld [vmem:[#allocation11 + $0x44] ss:$16 sps:$4 sm:$0xff]   ;;  %v4459_v52 = vld [vmem:[#allocation11 + $0x4c] ss:$16 sps:$4 sm:$0xff]   ;;  %v4463_v53 = vld [vmem:[#allocation11 + $0x40] ss:$16 sps:$4 sm:$0xff]  }
  0x7d   :  { %v4465_v54 = vld [vmem:[#allocation11 + $0x48] ss:$16 sps:$4 sm:$0xff]   ;;  %v4469_v55 = vld [vmem:[#allocation11 + $0x64] ss:$16 sps:$4 sm:$0xff]   ;;  %v4471_v56 = vld [vmem:[#allocation11 + $0x6c] ss:$16 sps:$4 sm:$0xff]  }
  0x7e   :  { %546 = vmatpush1.bf16.msra.mxu0 %v4361_v21  ;;  %587 = vmatpush1.bf16.msra.mxu1 %v4363_v22  ;;  %6331 = vst [vmem:[#allocation17_spill] sm:$0xff] %v4465_v54  ;;  %6332 = vst [vmem:[#allocation18_spill] sm:$0xff] %v4469_v55  ;;  %v4475_v57 = vld [vmem:[#allocation11 + $0x60] ss:$16 sps:$4 sm:$0xff]   ;;  %v4477_v58 = vld [vmem:[#allocation11 + $0x68] ss:$16 sps:$4 sm:$0xff]  }
  0x7f   :  { %547 = vmatprep.subr.bf16.mxu0 %v4367_v23  ;;  %588 = vmatprep.subr.bf16.mxu1 %v4371_v24  ;;  %6333 = vst [vmem:[#allocation19_spill] sm:$0xff] %v4471_v56  ;;  %6334 = vst [vmem:[#allocation20_spill] sm:$0xff] %v4475_v57  ;;  %v4481_v59 = vld [vmem:[#allocation11 + $0x84] ss:$16 sps:$4 sm:$0xff]   ;;  %v4483_v60 = vld [vmem:[#allocation11 + $0x8c] ss:$16 sps:$4 sm:$0xff]  }
  0x80   :  { %6335 = vst [vmem:[#allocation21_spill] sm:$0xff] %v4477_v58  ;;  %6336 = vst [vmem:[#allocation22_spill] sm:$0xff] %v4481_v59  ;;  %v4487_v61 = vld [vmem:[#allocation11 + $0x80] ss:$16 sps:$4 sm:$0xff]   ;;  %v4489_v62 = vld [vmem:[#allocation11 + $0x88] ss:$16 sps:$4 sm:$0xff]  }
  0x81   :  { %6337 = vst [vmem:[#allocation23_spill] sm:$0xff] %v4483_v60  ;;  %6338 = vst [vmem:[#allocation24_spill] sm:$0xff] %v4487_v61  ;;  %v4493_v63 = vld [vmem:[#allocation11 + $0xa4] ss:$16 sps:$4 sm:$0xff]   ;;  %v4495_v1 = vld [vmem:[#allocation11 + $0xac] ss:$16 sps:$4 sm:$0xff]  }
  0x82   :  { %548 = vmatpush1.bf16.msra.mxu0 %v4373_v25  ;;  %589 = vmatpush1.bf16.msra.mxu1 %v4377_v26  ;;  %6339 = vst [vmem:[#allocation25_spill] sm:$0xff] %v4489_v62  ;;  %6340 = vst [vmem:[#allocation26_spill] sm:$0xff] %v4493_v63  ;;  %v4499_v2 = vld [vmem:[#allocation11 + $0xa0] ss:$16 sps:$4 sm:$0xff]   ;;  %v4501_v3 = vld [vmem:[#allocation11 + $0xa8] ss:$16 sps:$4 sm:$0xff]  }
  0x83   :  { %549 = vmatprep.subr.bf16.mxu0 %v4381_v27  ;;  %590 = vmatprep.subr.bf16.mxu1 %v4383_v28  ;;  %6341 = vst [vmem:[#allocation27_spill] sm:$0xff] %v4495_v1  ;;  %6342 = vst [vmem:[#allocation28_spill] sm:$0xff] %v4499_v2  ;;  %v4505_v4 = vld [vmem:[#allocation11 + $0xc4] ss:$16 sps:$4 sm:$0xff]   ;;  %v4507_v5 = vld [vmem:[#allocation11 + $0xcc] ss:$16 sps:$4 sm:$0xff]  }
  0x84   :  { %6343 = vst [vmem:[#allocation29_spill] sm:$0xff] %v4501_v3  ;;  %6344 = vst [vmem:[#allocation30_spill] sm:$0xff] %v4505_v4  ;;  %v4511_v6 = vld [vmem:[#allocation11 + $0xc0] ss:$16 sps:$4 sm:$0xff]   ;;  %v4513_v7 = vld [vmem:[#allocation11 + $0xc8] ss:$16 sps:$4 sm:$0xff]  }
  0x85   :  { %6345 = vst [vmem:[#allocation31_spill] sm:$0xff] %v4507_v5  ;;  %6346 = vst [vmem:[#allocation32_spill] sm:$0xff] %v4511_v6  ;;  %v4519_v8 = vld [vmem:[#allocation11 + $0xe4] ss:$16 sps:$4 sm:$0xff]   ;;  %v4521_v9 = vld [vmem:[#allocation11 + $0xec] ss:$16 sps:$4 sm:$0xff]  }
  0x86   :  { %550 = vmatpush1.bf16.msra.mxu0 %v4385_v29  ;;  %591 = vmatpush1.bf16.msra.mxu1 %v4387_v30  ;;  %6347 = vst [vmem:[#allocation33_spill] sm:$0xff] %v4513_v7  ;;  %6348 = vst [vmem:[#allocation34_spill] sm:$0xff] %v4519_v8  ;;  %v4523_v11 = vld [vmem:[#allocation11 + $0xe0] ss:$16 sps:$4 sm:$0xff]   ;;  %vm3183_vm1 = vcmask 1042434   ;;  %vm3180_vm2 = vcmask 1041409  }
  0x87   :  { %551 = vmatprep.subr.bf16.mxu0 %v4391_v31  ;;  %592 = vmatprep.subr.bf16.mxu1 %v4395_v32  ;;  %6349 = vst [vmem:[#allocation35_spill] sm:$0xff] %v4521_v9  ;;  %6350 = vst [vmem:[#allocation36_spill] sm:$0xff] %v4523_v11  ;;  %vm3186_vm3 = vcmask 1043459   ;;  %vm3189_vm4 = vcmask 1044484   ;;  %vm3192_vm5 = vcmask 1045509   ;;  %vm3195_vm6 = vcmask 1046534  }
  0x88   :  { %vm3198_vm7 = vcmask 1047559   ;;  %vm3233_vm8 = vcmask 64512  }
  0x8a   :  { %552 = vmatpush1.bf16.msra.mxu0 %v4397_v33  ;;  %593 = vmatpush1.bf16.msra.mxu1 %v4399_v34 }
  0x8b   :  { %553 = vmatprep.subr.bf16.mxu0 %v4401_v35  ;;  %594 = vmatprep.subr.bf16.mxu1 %v4403_v36 }
  0x8e   :  { %554 = vmatpush1.bf16.msra.mxu0 %v4409_v37  ;;  %595 = vmatpush1.bf16.msra.mxu1 %v4411_v38 }
  0x8f   :  { %555 = vmatprep.subr.bf16.mxu0 %v4413_v39  ;;  %596 = vmatprep.subr.bf16.mxu1 %v4415_v40 }
  0x92   :  { %556 = vmatpush1.bf16.msra.mxu0 %v4421_v41  ;;  %597 = vmatpush1.bf16.msra.mxu1 %v4423_v42 }
  0x93   :  { %783 = vmatprep.subr.bf16.mxu0 %v4435_v43  ;;  %824 = vmatprep.subr.bf16.mxu1 %v4437_v44 }
  0x95   :  { %574 = vmatmul.mubr.bf16.vlgmr.msra.gmra.mrb[4].mxu0 %v6040_v0  ;;  %615 = vmatmul.mubr.bf16.vlgmr.msra.gmra.mrb[4].mxu1 %v6040_v0 }
  0x96   :  { %815 = vmatprep.mubr.bf16.mxu0 %v6040_v0  ;;  %856 = vmatprep.mubr.bf16.mxu1 %v6040_v0  ;;  %v4525_v0 = vld [vmem:[#allocation11 + $0xe8] ss:$16 sps:$4 sm:$0xff]  }
  0x97   :  { %784 = vmatpush1.bf16.msra.mxu0 %v4439_v45  ;;  %825 = vmatpush1.bf16.msra.mxu1 %v4441_v46  ;;  %6351 = vst [vmem:[#allocation37_spill] sm:$0xff] %v4525_v0 }
  0x98   :  { %785 = vmatprep.subr.bf16.mxu0 %v4443_v47  ;;  %826 = vmatprep.subr.bf16.mxu1 %v4445_v48 }
  0x9b   :  { %786 = vmatpush1.bf16.msra.mxu0 %v4451_v49  ;;  %827 = vmatpush1.bf16.msra.mxu1 %v4453_v50 }
  0x9c   :  { %787 = vmatprep.subr.bf16.mxu0 %v4457_v51  ;;  %828 = vmatprep.subr.bf16.mxu1 %v4459_v52 }
  0x9f   :  { %788 = vmatpush1.bf16.msra.mxu0 %v4463_v53  ;;  %829 = vmatpush1.bf16.msra.mxu1 %v4465_v54 }
  0xa0   :  { %789 = vmatprep.subr.bf16.mxu0 %v4469_v55  ;;  %830 = vmatprep.subr.bf16.mxu1 %v4471_v56 }
  0xa3   :  { %790 = vmatpush1.bf16.msra.mxu0 %v4475_v57  ;;  %831 = vmatpush1.bf16.msra.mxu1 %v4477_v58 }
  0xa4   :  { %791 = vmatprep.subr.bf16.mxu0 %v4481_v59  ;;  %832 = vmatprep.subr.bf16.mxu1 %v4483_v60 }
  0xa7   :  { %792 = vmatpush1.bf16.msra.mxu0 %v4487_v61  ;;  %833 = vmatpush1.bf16.msra.mxu1 %v4489_v62  ;;  %v213_v61 = vlaneseq }
  0xa8   :  { %793 = vmatprep.subr.bf16.mxu0 %v4493_v63  ;;  %834 = vmatprep.subr.bf16.mxu1 %v4495_v1 }
  0xab   :  { %794 = vmatpush1.bf16.msra.mxu0 %v4499_v2  ;;  %835 = vmatpush1.bf16.msra.mxu1 %v4501_v3  ;;  %v6356_v3 = vmov 0   ;;  %v4593_v2 = vld [vmem:[#allocation10 + $0xa4] ss:$16 sps:$4 sm:$0xff]  }
  0xac   :  { %795 = vmatprep.subr.bf16.mxu0 %v4505_v4  ;;  %836 = vmatprep.subr.bf16.mxu1 %v4507_v5  ;;  %v4531_v5 = vld [vmem:[#allocation10 + $0x4] ss:$16 sps:$4 sm:$0xff]   ;;  %v4537_v4 = vld [vmem:[#allocation10 + $0x8] ss:$16 sps:$4 sm:$0xff]   ;;  %6373 = vst [vmem:[#allocation58_spill] sm:$0xff] %v4593_v2 }
  0xad   :  { %6352 = vst [vmem:[#allocation38_spill] sm:$0xff] %v4531_v5  ;;  %6355 = vst [vmem:[#allocation41_spill] sm:$0xff] %v4537_v4 }
  0xaf   :  { %796 = vmatpush1.bf16.msra.mxu0 %v4511_v6  ;;  %837 = vmatpush1.bf16.msra.mxu1 %v4513_v7  ;;  %v4533_v6 = vld [vmem:[#allocation10 + $0xc] ss:$16 sps:$4 sm:$0xff]   ;;  %v4535_v7 = vld [vmem:[#allocation10] ss:$16 sps:$4 sm:$0xff]  }
  0xb0   :  { %797 = vmatprep.subr.bf16.mxu0 %v4519_v8  ;;  %838 = vmatprep.subr.bf16.mxu1 %v4521_v9  ;;  %6353 = vst [vmem:[#allocation39_spill] sm:$0xff] %v4533_v6  ;;  %6354 = vst [vmem:[#allocation40_spill] sm:$0xff] %v4535_v7  ;;  %v4549_v9 = vld [vmem:[#allocation10 + $0x20] ss:$16 sps:$4 sm:$0xff]   ;;  %v4551_v8 = vld [vmem:[#allocation10 + $0x28] ss:$16 sps:$4 sm:$0xff]  }
  0xb1   :  { %6359 = vst [vmem:[#allocation44_spill] sm:$0xff] %v4549_v9  ;;  %6360 = vst [vmem:[#allocation45_spill] sm:$0xff] %v4551_v8 }
  0xb3   :  { %798 = vmatpush1.bf16.msra.mxu0 %v4523_v11  ;;  %839 = vmatpush1.bf16.msra.mxu1 %v4525_v0  ;;  %v4545_v0 = vld [vmem:[#allocation10 + $0x24] ss:$16 sps:$4 sm:$0xff]   ;;  %v4547_v11 = vld [vmem:[#allocation10 + $0x2c] ss:$16 sps:$4 sm:$0xff]  }
  0xb4   :  { %1045 = vmatprep.subr.bf16.mxu0 %v4531_v5  ;;  %1086 = vmatprep.subr.bf16.mxu1 %v4533_v6  ;;  %6357 = vst [vmem:[#allocation42_spill] sm:$0xff] %v4545_v0  ;;  %6358 = vst [vmem:[#allocation43_spill] sm:$0xff] %v4547_v11  ;;  %v4563_v6 = vld [vmem:[#allocation10 + $0x40] ss:$16 sps:$4 sm:$0xff]   ;;  %v4565_v5 = vld [vmem:[#allocation10 + $0x48] ss:$16 sps:$4 sm:$0xff]  }
  0xb5   :  { %6363 = vst [vmem:[#allocation48_spill] sm:$0xff] %v4563_v6  ;;  %6364 = vst [vmem:[#allocation49_spill] sm:$0xff] %v4565_v5 }
  0xb6   :  { %816 = vmatmul.mubr.bf16.vlgmr.msra.gmra.mrb[8].mxu0 %v6356_v3  ;;  %857 = vmatmul.mubr.bf16.vlgmr.msra.gmra.mrb[8].mxu1 %v6356_v3 }
  0xb7   :  { %1046 = vmatpush1.bf16.msra.mxu0 %v4535_v7  ;;  %1087 = vmatpush1.bf16.msra.mxu1 %v4537_v4  ;;  %v4559_v4 = vld [vmem:[#allocation10 + $0x44] ss:$16 sps:$4 sm:$0xff]   ;;  %v4561_v7 = vld [vmem:[#allocation10 + $0x4c] ss:$16 sps:$4 sm:$0xff]  }
  0xb8   :  { %1077 = vmatprep.mubr.bf16.mxu0 %v6356_v3  ;;  %1118 = vmatprep.mubr.bf16.mxu1 %v6356_v3  ;;  %6361 = vst [vmem:[#allocation46_spill] sm:$0xff] %v4559_v4  ;;  %6362 = vst [vmem:[#allocation47_spill] sm:$0xff] %v4561_v7 }
  0xb9   :  { %1047 = vmatprep.subr.bf16.mxu0 %v4545_v0  ;;  %1088 = vmatprep.subr.bf16.mxu1 %v4547_v11  ;;  %v4571_v11 = vld [vmem:[#allocation10 + $0x64] ss:$16 sps:$4 sm:$0xff]   ;;  %v4577_v0 = vld [vmem:[#allocation10 + $0x68] ss:$16 sps:$4 sm:$0xff]  }
  0xba   :  { %6365 = vst [vmem:[#allocation50_spill] sm:$0xff] %v4571_v11  ;;  %6368 = vst [vmem:[#allocation53_spill] sm:$0xff] %v4577_v0 }
  0xbb   :  { %1048 = vmatpush1.bf16.msra.mxu0 %v4549_v9  ;;  %1089 = vmatpush1.bf16.msra.mxu1 %v4551_v8  ;;  %v4573_v9 = vld [vmem:[#allocation10 + $0x6c] ss:$16 sps:$4 sm:$0xff]   ;;  %v4575_v8 = vld [vmem:[#allocation10 + $0x60] ss:$16 sps:$4 sm:$0xff]  }
  0xbc   :  { %1049 = vmatprep.subr.bf16.mxu0 %v4559_v4  ;;  %1090 = vmatprep.subr.bf16.mxu1 %v4561_v7  ;;  %6366 = vst [vmem:[#allocation51_spill] sm:$0xff] %v4573_v9  ;;  %6367 = vst [vmem:[#allocation52_spill] sm:$0xff] %v4575_v8  ;;  %v4583_v7 = vld [vmem:[#allocation10 + $0x84] ss:$16 sps:$4 sm:$0xff]   ;;  %v4589_v4 = vld [vmem:[#allocation10 + $0x88] ss:$16 sps:$4 sm:$0xff]  }
  0xbd   :  { %6369 = vst [vmem:[#allocation54_spill] sm:$0xff] %v4583_v7  ;;  %6372 = vst [vmem:[#allocation57_spill] sm:$0xff] %v4589_v4 }
  0xbf   :  { %1050 = vmatpush1.bf16.msra.mxu0 %v4563_v6  ;;  %1091 = vmatpush1.bf16.msra.mxu1 %v4565_v5  ;;  %v4585_v6 = vld [vmem:[#allocation10 + $0x8c] ss:$16 sps:$4 sm:$0xff]   ;;  %v4587_v5 = vld [vmem:[#allocation10 + $0x80] ss:$16 sps:$4 sm:$0xff]  }
  0xc0   :  { %1051 = vmatprep.subr.bf16.mxu0 %v4571_v11  ;;  %1092 = vmatprep.subr.bf16.mxu1 %v4573_v9  ;;  %6370 = vst [vmem:[#allocation55_spill] sm:$0xff] %v4585_v6  ;;  %6371 = vst [vmem:[#allocation56_spill] sm:$0xff] %v4587_v5  ;;  %v4595_v11 = vld [vmem:[#allocation10 + $0xac] ss:$16 sps:$4 sm:$0xff]   ;;  %v4605_v9 = vld [vmem:[#allocation10 + $0xc4] ss:$16 sps:$4 sm:$0xff]  }
  0xc1   :  { %6374 = vst [vmem:[#allocation59_spill] sm:$0xff] %v4595_v11  ;;  %6377 = vst [vmem:[#allocation62_spill] sm:$0xff] %v4605_v9 }
  0xc3   :  { %1052 = vmatpush1.bf16.msra.mxu0 %v4575_v8  ;;  %1093 = vmatpush1.bf16.msra.mxu1 %v4577_v0  ;;  %v4599_v0 = vld [vmem:[#allocation10 + $0xa0] ss:$16 sps:$4 sm:$0xff]   ;;  %v4601_v8 = vld [vmem:[#allocation10 + $0xa8] ss:$16 sps:$4 sm:$0xff]  }
  0xc4   :  { %1053 = vmatprep.subr.bf16.mxu0 %v4583_v7  ;;  %1094 = vmatprep.subr.bf16.mxu1 %v4585_v6  ;;  %6375 = vst [vmem:[#allocation60_spill] sm:$0xff] %v4599_v0  ;;  %6376 = vst [vmem:[#allocation61_spill] sm:$0xff] %v4601_v8  ;;  %v4607_v7 = vld [vmem:[#allocation10 + $0xcc] ss:$16 sps:$4 sm:$0xff]   ;;  %v4611_v6 = vld [vmem:[#allocation10 + $0xc0] ss:$16 sps:$4 sm:$0xff]  }
  0xc5   :  { %6378 = vst [vmem:[#allocation63_spill] sm:$0xff] %v4607_v7  ;;  %6379 = vst [vmem:[#allocation64_spill] sm:$0xff] %v4611_v6 }
  0xc7   :  { %1054 = vmatpush1.bf16.msra.mxu0 %v4587_v5  ;;  %1095 = vmatpush1.bf16.msra.mxu1 %v4589_v4  ;;  %v4613_v5 = vld [vmem:[#allocation10 + $0xc8] ss:$16 sps:$4 sm:$0xff]   ;;  %v4617_v4 = vld [vmem:[#allocation10 + $0xe4] ss:$16 sps:$4 sm:$0xff]  }
  0xc8   :  { %1055 = vmatprep.subr.bf16.mxu0 %v4593_v2  ;;  %1096 = vmatprep.subr.bf16.mxu1 %v4595_v11  ;;  %6380 = vst [vmem:[#allocation65_spill] sm:$0xff] %v4613_v5  ;;  %6381 = vst [vmem:[#allocation66_spill] sm:$0xff] %v4617_v4  ;;  %v4619_v2 = vld [vmem:[#allocation10 + $0xec] ss:$16 sps:$4 sm:$0xff]   ;;  %v4623_v11 = vld [vmem:[#allocation10 + $0xe0] ss:$16 sps:$4 sm:$0xff]  }
  0xc9   :  { %6382 = vst [vmem:[#allocation67_spill] sm:$0xff] %v4619_v2  ;;  %6383 = vst [vmem:[#allocation68_spill] sm:$0xff] %v4623_v11 }
  0xcb   :  { %1056 = vmatpush1.bf16.msra.mxu0 %v4599_v0  ;;  %1097 = vmatpush1.bf16.msra.mxu1 %v4601_v8  ;;  %v4625_v0 = vld [vmem:[#allocation10 + $0xe8] ss:$16 sps:$4 sm:$0xff]  }
  0xcc   :  { %1057 = vmatprep.subr.bf16.mxu0 %v4605_v9  ;;  %1098 = vmatprep.subr.bf16.mxu1 %v4607_v7  ;;  %6384 = vst [vmem:[#allocation69_spill] sm:$0xff] %v4625_v0 }
  0xcf   :  { %1058 = vmatpush1.bf16.msra.mxu0 %v4611_v6  ;;  %1099 = vmatpush1.bf16.msra.mxu1 %v4613_v5 }
  0xd0   :  { %1059 = vmatprep.subr.bf16.mxu0 %v4617_v4  ;;  %1100 = vmatprep.subr.bf16.mxu1 %v4619_v2  ;;  %v4633_v4 = vshrl.u32 %v213_v61, 7 }
  0xd2   :  { %v6144_v2 = vsub.s32 0, %v4633_v4 }
  0xd3   :  { %1060 = vmatpush1.bf16.msra.mxu0 %v4623_v11  ;;  %1101 = vmatpush1.bf16.msra.mxu1 %v4625_v0  ;;  %v211_v11 = vld [vmem:[#allocation8] sm:$0xf]  ;;  %v6147_v0 = vsub.s32 1, %v4633_v4 }
  0xd4   :  { %1148 = vmatprep.subr.bf16.mxu0 %v4333_v10  ;;  %1189 = vmatprep.subr.bf16.mxu1 %v4335_v12  ;;  %v6150_v10 = vsub.s32 3, %v4633_v4  ;;  %v216_v12 = vrot.slane %v211_v11, %v6144_v2  ;;  %v6153_v2 = vsub.s32 2, %v4633_v4 }
  0xd5   :  { %v220_v60 = vrot.slane %v211_v11, %v6147_v0 }
 0x148   :  { %v311_v7 = vpop.f32.mrb[0].mxu0  ;;  %v352_v6 = vpop.f32.mrb[0].mxu1 }
 0x149   :  { %v313_v9 = vpop.f32.mrb[1].mxu0  ;;  %v354_v5 = vpop.f32.mrb[1].mxu1 }
 0x14a   :  { %v315_v8 = vpop.f32.mrb[2].mxu0  ;;  %v356_v1 = vpop.f32.mrb[2].mxu1  ;;  %v4646_v61 = vadd.f32 %v313_v9, %v220_v60 }
 0x14b   :  { %v316_v63 = vpop.f32.mrb[3].mxu0  ;;  %v357_v62 = vpop.f32.mrb[3].mxu1 }
 0x14c   :  { %v228_v63 = vrot.slane %v211_v11, %v6150_v10  ;;  %v4644_v62 = vadd.f32 %v311_v7, %v216_v12 }
 0x14e   :  { %6385 = vst [vmem:[#allocation70_spill] sm:$0xff] %v4644_v62  ;;  %v4648_v59 = vadd.f32 %v354_v5, %v228_v63  ;;  %v224_v5 = vrot.slane %v211_v11, %v6153_v2 }
 0x150   :  { %v4656_v9 = vadd.f32 %v352_v6, %v224_v5 }
 0x152   :  { %6386 = vst [vmem:[#allocation71_spill] sm:$0xff] %v4656_v9 }
 0x168   :  { %v575_v1 = vpop.f32.mrb[4].mxu0  ;;  %v616_v8 = vpop.f32.mrb[4].mxu1 }
 0x169   :  { %v865_v58 = vadd.f32 %v575_v1, %v4644_v62  ;;  %v577_v57 = vpop.f32.mrb[5].mxu0  ;;  %v618_v56 = vpop.f32.mrb[5].mxu1  ;;  %v867_v63 = vadd.f32 %v616_v8, %v4656_v9 }
 0x16a   :  { %v866_v55 = vadd.f32 %v577_v57, %v4646_v61  ;;  %v579_v0 = vpop.f32.mrb[6].mxu0  ;;  %v620_v54 = vpop.f32.mrb[6].mxu1  ;;  %v868_v7 = vadd.f32 %v618_v56, %v4648_v59 }
 0x16b   :  { %3706 = vtanh.f32 %v865_v58  ;;  %v580_v12 = vpop.f32.mrb[7].mxu0  ;;  %v621_v60 = vpop.f32.mrb[7].mxu1 }
 0x16c   :  { %3708 = vtanh.f32 %v866_v55 }
 0x16d   :  { %3710 = vtanh.f32 %v868_v7 }
 0x16e   :  { %3712 = vtanh.f32 %v867_v63  ;;  %v6400_v63 = vld [vmem:[#allocation30_spill] sm:$0xff] }
 0x175   :  { %v3707_v1 = vpop.eup %3706 }
 0x176   :  { %v873_v10 = vmul.f32 0.5, %v3707_v1  ;;  %v3709_v62 = vpop.eup %3708  ;;  %v6401_v1 = vld [vmem:[#allocation31_spill] sm:$0xff] }
 0x177   :  { %v875_v0 = vmul.f32 0.5, %v3709_v62  ;;  %v3711_v54 = vpop.eup %3710  ;;  %v6399_v62 = vld [vmem:[#allocation29_spill] sm:$0xff] }
 0x178   :  { %v874_v57 = vadd.f32 0.5, %v873_v10  ;;  %v3713_v55 = vpop.eup %3712  ;;  %v6398_v10 = vld [vmem:[#allocation28_spill] sm:$0xff] }
 0x179   :  { %v876_v58 = vadd.f32 0.5, %v875_v0  ;;  %v877_v11 = vmul.f32 0.5, %v3713_v55  ;;  %v6403_v0 = vld [vmem:[#allocation33_spill] sm:$0xff]  ;;  %v6408_v55 = vld [vmem:[#allocation38_spill] sm:$0xff] }
 0x17a   :  { %v880_v56 = vmul.f32 %v3711_v54, %v874_v57  ;;  %v6402_v57 = vld [vmem:[#allocation32_spill] sm:$0xff]  ;;  %v6404_v54 = vld [vmem:[#allocation34_spill] sm:$0xff] }
 0x17b   :  { %v879_v12 = vmul.f32 0.0, %v876_v58  ;;  %v878_v6 = vadd.f32 0.5, %v877_v11  ;;  %v6405_v58 = vld [vmem:[#allocation35_spill] sm:$0xff] }
 0x17c   :  { %v6409_v11 = vld [vmem:[#allocation39_spill] sm:$0xff] }
 0x17d   :  { %v4659_v60 = vadd.f32 %v880_v56, %v879_v12  ;;  %v6406_v56 = vld [vmem:[#allocation36_spill] sm:$0xff]  ;;  %v6407_v12 = vld [vmem:[#allocation37_spill] sm:$0xff] }
 0x17f   :  { %3714 = vtanh.f32 %v4659_v60 }
 0x189   :  { %v3715_v7 = vpop.eup %3714 }
 0x18a   :  { %v883_v5 = vmul.f32 %v3715_v7, %v878_v6  ;;  %v359_v6 = vld [vmem:[%s6038_s6] sm:$0xf]  ;;  %v6410_v7 = vsub.s32 0, %v4633_v4 }
 0x18c   :  { %v884_v8 = vpack.c.bf16 %v883_v5, %v883_v5  ;;  %v4735_v5 = vrot.slane %v359_v6, %v6410_v7 }
 0x18e   :  { %1078 = vmatmul.mubr.bf16.vlgmr.msra.gmra.mrb[8].mxu0 %v884_v8  ;;  %1119 = vmatmul.mubr.bf16.vlgmr.msra.gmra.mrb[8].mxu1 %v884_v8 }
 0x18f   :  { %1149 = vmatpush1.bf16.msra.mxu0 %v4337_v13  ;;  %1190 = vmatpush1.bf16.msra.mxu1 %v4339_v14  ;;  %v6387_v13 = vld [vmem:[#allocation17_spill] sm:$0xff]  ;;  %v6388_v14 = vld [vmem:[#allocation18_spill] sm:$0xff] }
 0x190   :  { %1150 = vmatprep.subr.bf16.mxu0 %v4343_v15  ;;  %1191 = vmatprep.subr.bf16.mxu1 %v4345_v16  ;;  %v6389_v15 = vld [vmem:[#allocation19_spill] sm:$0xff]  ;;  %v6390_v16 = vld [vmem:[#allocation20_spill] sm:$0xff]  ;;  %6411 = vst [vmem:[#allocation17_spill] sm:$0xff] %v4735_v5 }
 0x191   :  { %1180 = vmatprep.mubr.bf16.mxu0 %v6356_v3  ;;  %1221 = vmatprep.mubr.bf16.mxu1 %v6356_v3 }
 0x193   :  { %1151 = vmatpush1.bf16.msra.mxu0 %v4347_v17  ;;  %1192 = vmatpush1.bf16.msra.mxu1 %v4351_v18  ;;  %v6391_v17 = vld [vmem:[#allocation21_spill] sm:$0xff]  ;;  %v6392_v18 = vld [vmem:[#allocation22_spill] sm:$0xff] }
 0x194   :  { %1152 = vmatprep.subr.bf16.mxu0 %v4355_v19  ;;  %1193 = vmatprep.subr.bf16.mxu1 %v4357_v20  ;;  %v6393_v19 = vld [vmem:[#allocation23_spill] sm:$0xff]  ;;  %v6394_v20 = vld [vmem:[#allocation24_spill] sm:$0xff] }
 0x197   :  { %1153 = vmatpush1.bf16.msra.mxu0 %v4361_v21  ;;  %1194 = vmatpush1.bf16.msra.mxu1 %v4363_v22  ;;  %v6395_v21 = vld [vmem:[#allocation25_spill] sm:$0xff]  ;;  %v6396_v22 = vld [vmem:[#allocation26_spill] sm:$0xff] }
 0x198   :  { %1154 = vmatprep.subr.bf16.mxu0 %v4367_v23  ;;  %1195 = vmatprep.subr.bf16.mxu1 %v4371_v24  ;;  %v6397_v23 = vld [vmem:[#allocation27_spill] sm:$0xff] }
 0x19b   :  { %1155 = vmatpush1.bf16.msra.mxu0 %v4373_v25  ;;  %1196 = vmatpush1.bf16.msra.mxu1 %v4377_v26 }
 0x19c   :  { %1156 = vmatprep.subr.bf16.mxu0 %v4381_v27  ;;  %1197 = vmatprep.subr.bf16.mxu1 %v4383_v28 }
 0x19f   :  { %1157 = vmatpush1.bf16.msra.mxu0 %v4385_v29  ;;  %1198 = vmatpush1.bf16.msra.mxu1 %v4387_v30 }
 0x1a0   :  { %1158 = vmatprep.subr.bf16.mxu0 %v4391_v31  ;;  %1199 = vmatprep.subr.bf16.mxu1 %v4395_v32 }
 0x1a3   :  { %1159 = vmatpush1.bf16.msra.mxu0 %v4397_v33  ;;  %1200 = vmatpush1.bf16.msra.mxu1 %v4399_v34 }
 0x1a4   :  { %1160 = vmatprep.subr.bf16.mxu0 %v4401_v35  ;;  %1201 = vmatprep.subr.bf16.mxu1 %v4403_v36 }
 0x1a7   :  { %1161 = vmatpush1.bf16.msra.mxu0 %v4409_v37  ;;  %1202 = vmatpush1.bf16.msra.mxu1 %v4411_v38 }
 0x1a8   :  { %1162 = vmatprep.subr.bf16.mxu0 %v4413_v39  ;;  %1203 = vmatprep.subr.bf16.mxu1 %v4415_v40 }
 0x1ab   :  { %1163 = vmatpush1.bf16.msra.mxu0 %v4421_v41  ;;  %1204 = vmatpush1.bf16.msra.mxu1 %v4423_v42 }
 0x1ac   :  { %1230 = vmatprep.subr.bf16.mxu0 %v4435_v43  ;;  %1271 = vmatprep.subr.bf16.mxu1 %v4437_v44 }
 0x1ae   :  { %1181 = vmatmul.mubr.bf16.vlgmr.msra.gmra.mrb[12].mxu0 %v884_v8  ;;  %1222 = vmatmul.mubr.bf16.vlgmr.msra.gmra.mrb[12].mxu1 %v884_v8  ;;  %v6412_v8 = vsub.s32 1, %v4633_v4 }
 0x1af   :  { %1231 = vmatpush1.bf16.msra.mxu0 %v4439_v45  ;;  %1272 = vmatpush1.bf16.msra.mxu1 %v4441_v46 }
 0x1b0   :  { %1232 = vmatprep.subr.bf16.mxu0 %v4443_v47  ;;  %1273 = vmatprep.subr.bf16.mxu1 %v4445_v48  ;;  %v4739_v2 = vrot.slane %v359_v6, %v6412_v8 }
 0x1b1   :  { %1262 = vmatprep.mubr.bf16.mxu0 %v6356_v3  ;;  %1303 = vmatprep.mubr.bf16.mxu1 %v6356_v3 }
 0x1b3   :  { %1233 = vmatpush1.bf16.msra.mxu0 %v4451_v49  ;;  %1274 = vmatpush1.bf16.msra.mxu1 %v4453_v50 }
 0x1b4   :  { %1234 = vmatprep.subr.bf16.mxu0 %v4457_v51  ;;  %1275 = vmatprep.subr.bf16.mxu1 %v4459_v52 }
 0x1b7   :  { %1235 = vmatpush1.bf16.msra.mxu0 %v4463_v53  ;;  %1276 = vmatpush1.bf16.msra.mxu1 %v6387_v13 }
 0x1b8   :  { %1236 = vmatprep.subr.bf16.mxu0 %v6388_v14  ;;  %1277 = vmatprep.subr.bf16.mxu1 %v6389_v15 }
 0x1bb   :  { %1237 = vmatpush1.bf16.msra.mxu0 %v6390_v16  ;;  %1278 = vmatpush1.bf16.msra.mxu1 %v6391_v17 }
 0x1bc   :  { %1238 = vmatprep.subr.bf16.mxu0 %v6392_v18  ;;  %1279 = vmatprep.subr.bf16.mxu1 %v6393_v19 }
 0x1bf   :  { %1239 = vmatpush1.bf16.msra.mxu0 %v6394_v20  ;;  %1280 = vmatpush1.bf16.msra.mxu1 %v6395_v21 }
 0x1c0   :  { %1240 = vmatprep.subr.bf16.mxu0 %v6396_v22  ;;  %1281 = vmatprep.subr.bf16.mxu1 %v6397_v23 }
 0x1c3   :  { %1241 = vmatpush1.bf16.msra.mxu0 %v6398_v10  ;;  %1282 = vmatpush1.bf16.msra.mxu1 %v6399_v62 }
 0x1c4   :  { %1242 = vmatprep.subr.bf16.mxu0 %v6400_v63  ;;  %1283 = vmatprep.subr.bf16.mxu1 %v6401_v1 }
 0x1c7   :  { %1243 = vmatpush1.bf16.msra.mxu0 %v6402_v57  ;;  %1284 = vmatpush1.bf16.msra.mxu1 %v6403_v0 }
 0x1c8   :  { %1244 = vmatprep.subr.bf16.mxu0 %v6404_v54  ;;  %1285 = vmatprep.subr.bf16.mxu1 %v6405_v58 }
 0x1cb   :  { %1245 = vmatpush1.bf16.msra.mxu0 %v6406_v56  ;;  %1286 = vmatpush1.bf16.msra.mxu1 %v6407_v12  ;;  %v6413_v56 = vsub.s32 3, %v4633_v4 }
 0x1cc   :  { %1332 = vmatprep.subr.bf16.mxu0 %v6408_v55  ;;  %1373 = vmatprep.subr.bf16.mxu1 %v6409_v11 }
 0x1cd   :  { %v4743_v58 = vrot.slane %v359_v6, %v6413_v56  ;;  %v6414_v56 = vsub.s32 2, %v4633_v4 }
 0x1cf   :  { %v4750_v10 = vrot.slane %v359_v6, %v6414_v56 }
 0x1d1   :  { %6415 = vst [vmem:[#allocation18_spill] sm:$0xff] %v4750_v10 }
 0x261   :  { %v1079_v12 = vpop.f32.mrb[8].mxu0  ;;  %v1120_v55 = vpop.f32.mrb[8].mxu1 }
 0x262   :  { %v1080_v11 = vadd.f32 %v1079_v12, %v4735_v5  ;;  %v1081_v54 = vpop.f32.mrb[9].mxu0  ;;  %v1122_v0 = vpop.f32.mrb[9].mxu1  ;;  %v1121_v23 = vadd.f32 %v1120_v55, %v4750_v10  ;;  %v6416_v55 = vld [vmem:[#allocation70_spill] sm:$0xff] }
 0x263   :  { %v1082_v57 = vadd.f32 %v1081_v54, %v4739_v2  ;;  %v1083_v1 = vpop.f32.mrb[10].mxu0  ;;  %v1124_v63 = vpop.f32.mrb[10].mxu1  ;;  %v1123_v7 = vadd.f32 %v1122_v0, %v4743_v58 }
 0x264   :  { %3716 = vtanh.f32 %v1080_v11  ;;  %v1084_v62 = vpop.f32.mrb[11].mxu0  ;;  %v1125_v8 = vpop.f32.mrb[11].mxu1 }
 0x265   :  { %3718 = vtanh.f32 %v1082_v57 }
 0x266   :  { %3720 = vtanh.f32 %v1123_v7 }
 0x267   :  { %3722 = vtanh.f32 %v1121_v23 }
 0x26e   :  { %v3717_v12 = vpop.eup %3716 }
 0x26f   :  { %v1135_v5 = vmul.f32 0.5, %v3717_v12  ;;  %v3719_v22 = vpop.eup %3718 }
 0x270   :  { %v1137_v1 = vmul.f32 0.5, %v3719_v22  ;;  %v3721_v63 = vpop.eup %3720 }
 0x271   :  { %v1136_v21 = vadd.f32 0.5, %v1135_v5  ;;  %v3723_v57 = vpop.eup %3722 }
 0x272   :  { %v1138_v54 = vadd.f32 0.5, %v1137_v1  ;;  %v1139_v4 = vmul.f32 0.5, %v3723_v57  ;;  %v6417_v57 = vld [vmem:[#allocation40_spill] sm:$0xff] }
 0x273   :  { %v1142_v11 = vmul.f32 %v3721_v63, %v1136_v21 }
 0x274   :  { %v1141_v0 = vmul.f32 0.0, %v1138_v54  ;;  %v1140_v8 = vadd.f32 0.5, %v1139_v4  ;;  %v6418_v4 = vld [vmem:[#allocation41_spill] sm:$0xff] }
 0x276   :  { %v4753_v62 = vadd.f32 %v1142_v11, %v1141_v0 }
 0x278   :  { %3724 = vtanh.f32 %v4753_v62 }
 0x281   :  { %v1182_v6 = vpop.f32.mrb[12].mxu0  ;;  %v1223_v7 = vpop.f32.mrb[12].mxu1 }
 0x282   :  { %v1312_v56 = vadd.f32 %v1182_v6, %v6416_v55  ;;  %v1184_v12 = vpop.f32.mrb[13].mxu0  ;;  %v1225_v10 = vpop.f32.mrb[13].mxu1  ;;  %v6419_v6 = vld [vmem:[#allocation42_spill] sm:$0xff] }
 0x283   :  { %v3725_v5 = vpop.eup %3724  ;;  %v1313_v22 = vadd.f32 %v1184_v12, %v4646_v61  ;;  %v1186_v23 = vpop.f32.mrb[14].mxu0  ;;  %v1315_v21 = vadd.f32 %v1225_v10, %v4648_v59  ;;  %v6420_v12 = vld [vmem:[#allocation43_spill] sm:$0xff]  ;;  %v1314_v10 = vadd.f32 %v1223_v7, %v4656_v9  ;;  %v6427_v7 = vld [vmem:[#allocation50_spill] sm:$0xff] }
 0x284   :  { %v1227_v1 = vpop.f32.mrb[14].mxu1  ;;  %3726 = vtanh.f32 %v1312_v56  ;;  %v1187_v63 = vpop.f32.mrb[15].mxu0  ;;  %v1145_v11 = vmul.f32 %v3725_v5, %v1140_v8  ;;  %v6421_v8 = vld [vmem:[#allocation44_spill] sm:$0xff]  ;;  %v6422_v56 = vld [vmem:[#allocation45_spill] sm:$0xff]  ;;  %v6424_v23 = vld [vmem:[#allocation47_spill] sm:$0xff] }
 0x285   :  { %v1228_v54 = vpop.f32.mrb[15].mxu1  ;;  %3728 = vtanh.f32 %v1313_v22  ;;  %v6423_v22 = vld [vmem:[#allocation46_spill] sm:$0xff] }
 0x286   :  { %1146 = vst [vmem:[#allocation2] sm:$0x3] %v1145_v11  ;;  %v1147_v0 = vpack.c.bf16 %v1145_v11, %v1145_v11  ;;  %3730 = vtanh.f32 %v1315_v21  ;;  %v6425_v11 = vld [vmem:[#allocation48_spill] sm:$0xff] }
 0x287   :  { %3732 = vtanh.f32 %v1314_v10  ;;  %v6432_v10 = vld [vmem:[#allocation55_spill] sm:$0xff] }
 0x288   :  { %1263 = vmatmul.mubr.bf16.vlgmr.msra.gmra.mrb[16].mxu0 %v1147_v0  ;;  %1304 = vmatmul.mubr.bf16.vlgmr.msra.gmra.mrb[16].mxu1 %v1147_v0  ;;  %v6426_v0 = vld [vmem:[#allocation49_spill] sm:$0xff] }
 0x289   :  { %1333 = vmatpush1.bf16.msra.mxu0 %v6417_v57  ;;  %1374 = vmatpush1.bf16.msra.mxu1 %v6418_v4 }
 0x28a   :  { %1334 = vmatprep.subr.bf16.mxu0 %v6419_v6  ;;  %1375 = vmatprep.subr.bf16.mxu1 %v6420_v12  ;;  %v6429_v6 = vld [vmem:[#allocation52_spill] sm:$0xff] }
 0x28b   :  { %1364 = vmatprep.mubr.bf16.mxu0 %v6356_v3  ;;  %1405 = vmatprep.mubr.bf16.mxu1 %v6356_v3 }
 0x28d   :  { %1335 = vmatpush1.bf16.msra.mxu0 %v6421_v8  ;;  %1376 = vmatpush1.bf16.msra.mxu1 %v6422_v56  ;;  %v6428_v8 = vld [vmem:[#allocation51_spill] sm:$0xff] }
 0x28e   :  { %v3727_v5 = vpop.eup %3726  ;;  %1336 = vmatprep.subr.bf16.mxu0 %v6423_v22  ;;  %1377 = vmatprep.subr.bf16.mxu1 %v6424_v23 }
 0x28f   :  { %v1320_v1 = vmul.f32 0.5, %v3727_v5  ;;  %v3729_v21 = vpop.eup %3728  ;;  %v6430_v5 = vld [vmem:[#allocation53_spill] sm:$0xff] }
 0x290   :  { %v1322_v54 = vmul.f32 0.5, %v3729_v21  ;;  %v3731_v12 = vpop.eup %3730 }
 0x291   :  { %v1321_v63 = vadd.f32 0.5, %v1320_v1  ;;  %1337 = vmatpush1.bf16.msra.mxu0 %v6425_v11  ;;  %1378 = vmatpush1.bf16.msra.mxu1 %v6426_v0  ;;  %v6431_v1 = vld [vmem:[#allocation54_spill] sm:$0xff]  ;;  %v6434_v0 = vld [vmem:[#allocation56_spill] sm:$0xff] }
 0x292   :  { %1338 = vmatprep.subr.bf16.mxu0 %v6427_v7  ;;  %1379 = vmatprep.subr.bf16.mxu1 %v6428_v8  ;;  %v1323_v56 = vadd.f32 0.5, %v1322_v54  ;;  %v6435_v7 = vld [vmem:[#allocation57_spill] sm:$0xff]  ;;  %v6436_v54 = vld [vmem:[#allocation58_spill] sm:$0xff] }
 0x293   :  { %v1327_v9 = vmul.f32 %v3731_v12, %v1321_v63  ;;  %v6437_v12 = vld [vmem:[#allocation59_spill] sm:$0xff]  ;;  %v6439_v63 = vld [vmem:[#allocation61_spill] sm:$0xff] }
 0x294   :  { %v1326_v22 = vmul.f32 %v1323_v56, %v4659_v60  ;;  %v3733_v60 = vpop.eup %3732  ;;  %v6438_v56 = vld [vmem:[#allocation60_spill] sm:$0xff] }
 0x295   :  { %1339 = vmatpush1.bf16.msra.mxu0 %v6429_v6  ;;  %1380 = vmatpush1.bf16.msra.mxu1 %v6430_v5  ;;  %v6440_v5 = vld [vmem:[#allocation62_spill] sm:$0xff] }
 0x296   :  { %1340 = vmatprep.subr.bf16.mxu0 %v6431_v1  ;;  %1381 = vmatprep.subr.bf16.mxu1 %v6432_v10  ;;  %v4779_v21 = vadd.f32 %v1327_v9, %v1326_v22  ;;  %v1324_v1 = vmul.f32 0.5, %v3733_v60  ;;  %v6441_v9 = vld [vmem:[#allocation63_spill] sm:$0xff]  ;;  %v6442_v22 = vld [vmem:[#allocation64_spill] sm:$0xff]  ;;  %v6443_v10 = vld [vmem:[#allocation65_spill] sm:$0xff] }
 0x298   :  { %6433 = vst [vmem:[#allocation19_spill] sm:$0xff] %v4779_v21  ;;  %3734 = vtanh.f32 %v4779_v21  ;;  %v6446_v21 = vld [vmem:[#allocation68_spill] sm:$0xff] }
 0x299   :  { %1341 = vmatpush1.bf16.msra.mxu0 %v6434_v0  ;;  %1382 = vmatpush1.bf16.msra.mxu1 %v6435_v7  ;;  %v1325_v0 = vadd.f32 0.5, %v1324_v1  ;;  %v6444_v7 = vld [vmem:[#allocation66_spill] sm:$0xff] }
 0x29a   :  { %1342 = vmatprep.subr.bf16.mxu0 %v6436_v54  ;;  %1383 = vmatprep.subr.bf16.mxu1 %v6437_v12  ;;  %v6445_v54 = vld [vmem:[#allocation67_spill] sm:$0xff]  ;;  %v4802_v1 = vld [vmem:[#allocation7] ss:$16 sps:$4 sm:$0xff]  }
 0x29b   :  { %6450 = vst [vmem:[#allocation22_spill] sm:$0xff] %v4802_v1 }
 0x29d   :  { %1343 = vmatpush1.bf16.msra.mxu0 %v6438_v56  ;;  %1384 = vmatpush1.bf16.msra.mxu1 %v6439_v63  ;;  %v6447_v56 = vld [vmem:[#allocation69_spill] sm:$0xff] }
 0x29e   :  { %1344 = vmatprep.subr.bf16.mxu0 %v6440_v5  ;;  %1385 = vmatprep.subr.bf16.mxu1 %v6441_v9  ;;  %v4796_v63 = vld [vmem:[#allocation7 + $0x4] ss:$16 sps:$4 sm:$0xff]   ;;  %v4799_v9 = vld [vmem:[#allocation7 + $0xc] ss:$16 sps:$4 sm:$0xff]  }
 0x29f   :  { %6448 = vst [vmem:[#allocation20_spill] sm:$0xff] %v4796_v63  ;;  %6449 = vst [vmem:[#allocation21_spill] sm:$0xff] %v4799_v9 }
 0x2a1   :  { %1345 = vmatpush1.bf16.msra.mxu0 %v6442_v22  ;;  %1386 = vmatpush1.bf16.msra.mxu1 %v6443_v10 }
 0x2a2   :  { %1346 = vmatprep.subr.bf16.mxu0 %v6444_v7  ;;  %1387 = vmatprep.subr.bf16.mxu1 %v6445_v54  ;;  %v3735_v12 = vpop.eup %3734 }
 0x2a3   :  { %v1330_v6 = vmul.f32 %v3735_v12, %v1325_v0  ;;  %v4805_v0 = vld [vmem:[#allocation7 + $0x8] ss:$16 sps:$4 sm:$0xff]   ;;  %v4808_v12 = vld [vmem:[#allocation7 + $0x24] ss:$16 sps:$4 sm:$0xff]  }
 0x2a4   :  { %6451 = vst [vmem:[#allocation23_spill] sm:$0xff] %v4805_v0  ;;  %6452 = vst [vmem:[#allocation24_spill] sm:$0xff] %v4808_v12 }
 0x2a5   :  { %1347 = vmatpush1.bf16.msra.mxu0 %v6446_v21  ;;  %1388 = vmatpush1.bf16.msra.mxu1 %v6447_v56  ;;  %v1331_v60 = vpack.c.bf16 %v1330_v6, %v1330_v6  ;;  %v4811_v6 = vld [vmem:[#allocation7 + $0x2c] ss:$16 sps:$4 sm:$0xff]  }
 0x2a6   :  { %1436 = vmatprep.subr.bf16.mxu0 %v4796_v63  ;;  %1477 = vmatprep.subr.bf16.mxu1 %v4799_v9  ;;  %6453 = vst [vmem:[#allocation70_spill] sm:$0xff] %v4811_v6  ;;  %v4816_v9 = vld [vmem:[#allocation7 + $0x20] ss:$16 sps:$4 sm:$0xff]   ;;  %v4831_v63 = vld [vmem:[#allocation7 + $0x48] ss:$16 sps:$4 sm:$0xff]  }
 0x2a7   :  { %6454 = vst [vmem:[#allocation40_spill] sm:$0xff] %v4816_v9 }
 0x2a8   :  { %1365 = vmatmul.mubr.bf16.vlgmr.msra.gmra.mrb[16].mxu0 %v1331_v60  ;;  %1406 = vmatmul.mubr.bf16.vlgmr.msra.gmra.mrb[16].mxu1 %v1331_v60 }
 0x2a9   :  { %1437 = vmatpush1.bf16.msra.mxu0 %v4802_v1  ;;  %1478 = vmatpush1.bf16.msra.mxu1 %v4805_v0  ;;  %v4819_v1 = vld [vmem:[#allocation7 + $0x28] ss:$16 sps:$4 sm:$0xff]   ;;  %v4822_v0 = vld [vmem:[#allocation7 + $0x44] ss:$16 sps:$4 sm:$0xff]  }
 0x2aa   :  { %1438 = vmatprep.subr.bf16.mxu0 %v4808_v12  ;;  %1479 = vmatprep.subr.bf16.mxu1 %v4811_v6  ;;  %v4825_v12 = vld [vmem:[#allocation7 + $0x4c] ss:$16 sps:$4 sm:$0xff]   ;;  %v4828_v6 = vld [vmem:[#allocation7 + $0x40] ss:$16 sps:$4 sm:$0xff]  }
 0x2ab   :  { %1468 = vmatprep.mubr.bf16.mxu0 %v6356_v3  ;;  %1509 = vmatprep.mubr.bf16.mxu1 %v6356_v3 }
 0x2ad   :  { %1439 = vmatpush1.bf16.msra.mxu0 %v4816_v9  ;;  %1480 = vmatpush1.bf16.msra.mxu1 %v4819_v1  ;;  %v4834_v9 = vld [vmem:[#allocation7 + $0x64] ss:$16 sps:$4 sm:$0xff]  }
 0x2ae   :  { %1440 = vmatprep.subr.bf16.mxu0 %v4822_v0  ;;  %1481 = vmatprep.subr.bf16.mxu1 %v4825_v12 }
 0x2b1   :  { %1441 = vmatpush1.bf16.msra.mxu0 %v4828_v6  ;;  %1482 = vmatpush1.bf16.msra.mxu1 %v4831_v63 }
 0x2b2   :  { %1442 = vmatprep.subr.bf16.mxu0 %v4834_v9  ;;  %1483 = vmatprep.subr.bf16.mxu1 %v4371_v24  ;;  %v6455_v24 = vld [vmem:[#allocation25_spill] sm:$0xff] }
 0x2b5   :  { %1443 = vmatpush1.bf16.msra.mxu0 %v4373_v25  ;;  %1484 = vmatpush1.bf16.msra.mxu1 %v4377_v26  ;;  %v6456_v25 = vld [vmem:[#allocation26_spill] sm:$0xff]  ;;  %v6457_v26 = vld [vmem:[#allocation27_spill] sm:$0xff] }
 0x2b6   :  { %1444 = vmatprep.subr.bf16.mxu0 %v4381_v27  ;;  %1485 = vmatprep.subr.bf16.mxu1 %v4383_v28  ;;  %v6458_v27 = vld [vmem:[#allocation28_spill] sm:$0xff]  ;;  %v6459_v28 = vld [vmem:[#allocation29_spill] sm:$0xff] }
 0x2b9   :  { %1445 = vmatpush1.bf16.msra.mxu0 %v4385_v29  ;;  %1486 = vmatpush1.bf16.msra.mxu1 %v4387_v30  ;;  %v6460_v29 = vld [vmem:[#allocation30_spill] sm:$0xff]  ;;  %v6461_v30 = vld [vmem:[#allocation31_spill] sm:$0xff] }
 0x2ba   :  { %1446 = vmatprep.subr.bf16.mxu0 %v4391_v31  ;;  %1487 = vmatprep.subr.bf16.mxu1 %v4395_v32  ;;  %v6462_v31 = vld [vmem:[#allocation32_spill] sm:$0xff]  ;;  %v6463_v32 = vld [vmem:[#allocation33_spill] sm:$0xff] }
 0x2bd   :  { %1447 = vmatpush1.bf16.msra.mxu0 %v4397_v33  ;;  %1488 = vmatpush1.bf16.msra.mxu1 %v4399_v34  ;;  %v6464_v33 = vld [vmem:[#allocation34_spill] sm:$0xff]  ;;  %v6465_v34 = vld [vmem:[#allocation35_spill] sm:$0xff] }
 0x2be   :  { %1448 = vmatprep.subr.bf16.mxu0 %v4401_v35  ;;  %1489 = vmatprep.subr.bf16.mxu1 %v4403_v36  ;;  %v6466_v35 = vld [vmem:[#allocation36_spill] sm:$0xff]  ;;  %v6467_v36 = vld [vmem:[#allocation37_spill] sm:$0xff] }
 0x2c1   :  { %1449 = vmatpush1.bf16.msra.mxu0 %v4409_v37  ;;  %1490 = vmatpush1.bf16.msra.mxu1 %v4411_v38  ;;  %v6468_v37 = vld [vmem:[#allocation38_spill] sm:$0xff]  ;;  %v6469_v38 = vld [vmem:[#allocation39_spill] sm:$0xff] }
 0x2c2   :  { %1450 = vmatprep.subr.bf16.mxu0 %v4413_v39  ;;  %1491 = vmatprep.subr.bf16.mxu1 %v4415_v40 }
 0x2c5   :  { %1451 = vmatpush1.bf16.msra.mxu0 %v4421_v41  ;;  %1492 = vmatpush1.bf16.msra.mxu1 %v4423_v42  ;;  %v6470_v41 = vld [vmem:[#allocation17_spill] sm:$0xff] }
 0x2c6   :  { %1518 = vmatprep.subr.bf16.mxu0 %v4435_v43  ;;  %1559 = vmatprep.subr.bf16.mxu1 %v4437_v44 }
 0x2c8   :  { %1469 = vmatmul.mubr.bf16.vlgmr.msra.gmra.mrb[20].mxu0 %v1331_v60  ;;  %1510 = vmatmul.mubr.bf16.vlgmr.msra.gmra.mrb[20].mxu1 %v1331_v60 }
 0x2c9   :  { %1519 = vmatpush1.bf16.msra.mxu0 %v4439_v45  ;;  %1560 = vmatpush1.bf16.msra.mxu1 %v4441_v46 }
 0x2ca   :  { %1520 = vmatprep.subr.bf16.mxu0 %v4443_v47  ;;  %1561 = vmatprep.subr.bf16.mxu1 %v4445_v48 }
 0x2cb   :  { %1550 = vmatprep.mubr.bf16.mxu0 %v6356_v3  ;;  %1591 = vmatprep.mubr.bf16.mxu1 %v6356_v3 }
 0x2cd   :  { %1521 = vmatpush1.bf16.msra.mxu0 %v4451_v49  ;;  %1562 = vmatpush1.bf16.msra.mxu1 %v4453_v50 }
 0x2ce   :  { %1522 = vmatprep.subr.bf16.mxu0 %v4457_v51  ;;  %1563 = vmatprep.subr.bf16.mxu1 %v4459_v52  ;;  %v6471_v51 = vld [vmem:[#allocation18_spill] sm:$0xff] }
 0x2d1   :  { %1523 = vmatpush1.bf16.msra.mxu0 %v4463_v53  ;;  %1564 = vmatpush1.bf16.msra.mxu1 %v6387_v13 }
 0x2d2   :  { %1524 = vmatprep.subr.bf16.mxu0 %v6388_v14  ;;  %1565 = vmatprep.subr.bf16.mxu1 %v6389_v15 }
 0x2d5   :  { %1525 = vmatpush1.bf16.msra.mxu0 %v6390_v16  ;;  %1566 = vmatpush1.bf16.msra.mxu1 %v6391_v17 }
 0x2d6   :  { %1526 = vmatprep.subr.bf16.mxu0 %v6392_v18  ;;  %1567 = vmatprep.subr.bf16.mxu1 %v6393_v19 }
 0x2d9   :  { %1527 = vmatpush1.bf16.msra.mxu0 %v6394_v20  ;;  %1568 = vmatpush1.bf16.msra.mxu1 %v6455_v24 }
 0x2da   :  { %1528 = vmatprep.subr.bf16.mxu0 %v6456_v25  ;;  %1569 = vmatprep.subr.bf16.mxu1 %v6457_v26 }
 0x2dd   :  { %1529 = vmatpush1.bf16.msra.mxu0 %v6458_v27  ;;  %1570 = vmatpush1.bf16.msra.mxu1 %v6459_v28 }
 0x2de   :  { %1530 = vmatprep.subr.bf16.mxu0 %v6460_v29  ;;  %1571 = vmatprep.subr.bf16.mxu1 %v6461_v30 }
 0x2e1   :  { %1531 = vmatpush1.bf16.msra.mxu0 %v6462_v31  ;;  %1572 = vmatpush1.bf16.msra.mxu1 %v6463_v32 }
 0x2e2   :  { %1532 = vmatprep.subr.bf16.mxu0 %v6464_v33  ;;  %1573 = vmatprep.subr.bf16.mxu1 %v6465_v34 }
 0x2e5   :  { %1533 = vmatpush1.bf16.msra.mxu0 %v6466_v35  ;;  %1574 = vmatpush1.bf16.msra.mxu1 %v6467_v36 }
 0x2e6   :  { %1620 = vmatprep.subr.bf16.mxu0 %v6468_v37  ;;  %1661 = vmatprep.subr.bf16.mxu1 %v6469_v38 }
 0x37b   :  { %v1366_v39 = vpop.f32.mrb[16].mxu0  ;;  %v1407_v40 = vpop.f32.mrb[16].mxu1 }
 0x37c   :  { %v1367_v42 = vadd.f32 %v1366_v39, %v6470_v41  ;;  %v1368_v43 = vpop.f32.mrb[17].mxu0  ;;  %v1409_v44 = vpop.f32.mrb[17].mxu1  ;;  %v1408_v52 = vadd.f32 %v1407_v40, %v6471_v51  ;;  %v6472_v40 = vld [vmem:[#allocation42_spill] sm:$0xff] }
 0x37d   :  { %v1369_v45 = vadd.f32 %v1368_v43, %v4739_v2  ;;  %v1370_v46 = vpop.f32.mrb[18].mxu0  ;;  %v1411_v47 = vpop.f32.mrb[18].mxu1  ;;  %v1410_v48 = vadd.f32 %v1409_v44, %v4743_v58  ;;  %v6474_v43 = vld [vmem:[#allocation71_spill] sm:$0xff] }
 0x37e   :  { %3736 = vtanh.f32 %v1367_v42  ;;  %v1371_v49 = vpop.f32.mrb[19].mxu0  ;;  %v1412_v50 = vpop.f32.mrb[19].mxu1  ;;  %v6473_v42 = vld [vmem:[#allocation43_spill] sm:$0xff]  ;;  %v6476_v46 = vld [vmem:[#allocation45_spill] sm:$0xff] }
 0x37f   :  { %3738 = vtanh.f32 %v1369_v45  ;;  %v6475_v45 = vld [vmem:[#allocation44_spill] sm:$0xff] }
 0x380   :  { %3740 = vtanh.f32 %v1410_v48  ;;  %v6477_v48 = vld [vmem:[#allocation46_spill] sm:$0xff] }
 0x381   :  { %3742 = vtanh.f32 %v1408_v52  ;;  %v6478_v52 = vld [vmem:[#allocation49_spill] sm:$0xff] }
 0x388   :  { %v3737_v53 = vpop.eup %3736 }
 0x389   :  { %v1422_v13 = vmul.f32 0.5, %v3737_v53  ;;  %v3739_v14 = vpop.eup %3738 }
 0x38a   :  { %v1424_v16 = vmul.f32 0.5, %v3739_v14  ;;  %v3741_v17 = vpop.eup %3740 }
 0x38b   :  { %v1423_v15 = vadd.f32 0.5, %v1422_v13  ;;  %v3743_v24 = vpop.eup %3742  ;;  %v6479_v13 = vld [vmem:[#allocation50_spill] sm:$0xff] }
 0x38c   :  { %v1425_v18 = vadd.f32 0.5, %v1424_v16  ;;  %v1426_v25 = vmul.f32 0.5, %v3743_v24  ;;  %v6480_v16 = vld [vmem:[#allocation19_spill] sm:$0xff]  ;;  %v6485_v24 = vld [vmem:[#allocation56_spill] sm:$0xff] }
 0x38d   :  { %v1429_v19 = vmul.f32 %v3741_v17, %v1423_v15 }
 0x38e   :  { %v1428_v20 = vmul.f32 %v1425_v18, %v4753_v62  ;;  %v1427_v28 = vadd.f32 0.5, %v1426_v25  ;;  %v6481_v18 = vld [vmem:[#allocation52_spill] sm:$0xff]  ;;  %v6486_v25 = vld [vmem:[#allocation57_spill] sm:$0xff] }
 0x390   :  { %v4897_v60 = vadd.f32 %v1429_v19, %v1428_v20  ;;  %v6483_v19 = vld [vmem:[#allocation54_spill] sm:$0xff]  ;;  %v6484_v20 = vld [vmem:[#allocation55_spill] sm:$0xff] }
 0x392   :  { %3744 = vtanh.f32 %v4897_v60 }
 0x39b   :  { %v1470_v26 = vpop.f32.mrb[20].mxu0  ;;  %v1511_v27 = vpop.f32.mrb[20].mxu1 }
 0x39c   :  { %v1600_v29 = vadd.f32 %v1470_v26, %v6416_v55  ;;  %v1472_v30 = vpop.f32.mrb[21].mxu0  ;;  %v1513_v31 = vpop.f32.mrb[21].mxu1  ;;  %v1602_v44 = vadd.f32 %v1511_v27, %v6474_v43  ;;  %v6488_v26 = vld [vmem:[#allocation59_spill] sm:$0xff] }
 0x39d   :  { %v3745_v32 = vpop.eup %3744  ;;  %v1601_v33 = vadd.f32 %v1472_v30, %v4646_v61  ;;  %v1474_v34 = vpop.f32.mrb[22].mxu0  ;;  %v1603_v62 = vadd.f32 %v1513_v31, %v4648_v59  ;;  %v6491_v31 = vld [vmem:[#allocation63_spill] sm:$0xff] }
 0x39e   :  { %v1515_v35 = vpop.f32.mrb[22].mxu1  ;;  %3746 = vtanh.f32 %v1600_v29  ;;  %v1475_v36 = vpop.f32.mrb[23].mxu0  ;;  %v1432_v38 = vmul.f32 %v3745_v32, %v1427_v28  ;;  %v6489_v28 = vld [vmem:[#allocation60_spill] sm:$0xff]  ;;  %v6490_v29 = vld [vmem:[#allocation61_spill] sm:$0xff] }
 0x39f   :  { %v1516_v37 = vpop.f32.mrb[23].mxu1  ;;  %3748 = vtanh.f32 %v1601_v33  ;;  %v6492_v35 = vld [vmem:[#allocation20_spill] sm:$0xff] }
 0x3a0   :  { %1434 = vst [vmem:[#allocation2 + $0x2] sm:$0x3] %v1432_v38  ;;  %v1435_v39 = vpack.c.bf16 %v1432_v38, %v1432_v38  ;;  %3750 = vtanh.f32 %v1603_v62  ;;  %v4958_v36 = vld [vmem:[#allocation7 + $0x60] ss:$16 sps:$4 sm:$0xff]   ;;  %v4961_v37 = vld [vmem:[#allocation7 + $0x68] ss:$16 sps:$4 sm:$0xff]  }
 0x3a1   :  { %3752 = vtanh.f32 %v1602_v44  ;;  %v4964_v38 = vld [vmem:[#allocation7 + $0x84] ss:$16 sps:$4 sm:$0xff]  }
 0x3a2   :  { %1551 = vmatmul.mubr.bf16.vlgmr.msra.gmra.mrb[24].mxu0 %v1435_v39  ;;  %1592 = vmatmul.mubr.bf16.vlgmr.msra.gmra.mrb[24].mxu1 %v1435_v39  ;;  %v4967_v39 = vld [vmem:[#allocation7 + $0x8c] ss:$16 sps:$4 sm:$0xff]   ;;  %v4976_v44 = vld [vmem:[#allocation7 + $0xa4] ss:$16 sps:$4 sm:$0xff]  }
 0x3a3   :  { %1621 = vmatpush1.bf16.msra.mxu0 %v6417_v57  ;;  %1662 = vmatpush1.bf16.msra.mxu1 %v6418_v4 }
 0x3a4   :  { %1622 = vmatprep.subr.bf16.mxu0 %v6472_v40  ;;  %1663 = vmatprep.subr.bf16.mxu1 %v6473_v42  ;;  %v4970_v40 = vld [vmem:[#allocation7 + $0x80] ss:$16 sps:$4 sm:$0xff]   ;;  %v4973_v42 = vld [vmem:[#allocation7 + $0x88] ss:$16 sps:$4 sm:$0xff]  }
 0x3a5   :  { %1652 = vmatprep.mubr.bf16.mxu0 %v6356_v3  ;;  %1693 = vmatprep.mubr.bf16.mxu1 %v6356_v3 }
 0x3a7   :  { %1623 = vmatpush1.bf16.msra.mxu0 %v6475_v45  ;;  %1664 = vmatpush1.bf16.msra.mxu1 %v6476_v46  ;;  %v4979_v45 = vld [vmem:[#allocation7 + $0xac] ss:$16 sps:$4 sm:$0xff]   ;;  %v4982_v46 = vld [vmem:[#allocation7 + $0xa0] ss:$16 sps:$4 sm:$0xff]  }
 0x3a8   :  { %v3747_v47 = vpop.eup %3746  ;;  %1624 = vmatprep.subr.bf16.mxu0 %v6477_v48  ;;  %1665 = vmatprep.subr.bf16.mxu1 %v6424_v23  ;;  %v6482_v23 = vld [vmem:[#allocation53_spill] sm:$0xff] }
 0x3a9   :  { %v1608_v57 = vmul.f32 0.5, %v3747_v47  ;;  %v3749_v4 = vpop.eup %3748  ;;  %v4985_v47 = vld [vmem:[#allocation7 + $0xa8] ss:$16 sps:$4 sm:$0xff]   ;;  %v4988_v48 = vld [vmem:[#allocation7 + $0xc4] ss:$16 sps:$4 sm:$0xff]  }
 0x3aa   :  { %v1610_v50 = vmul.f32 0.5, %v3749_v4  ;;  %v3751_v53 = vpop.eup %3750  ;;  %v4994_v4 = vld [vmem:[#allocation7 + $0xc0] ss:$16 sps:$4 sm:$0xff]  }
 0x3ab   :  { %v1609_v49 = vadd.f32 0.5, %v1608_v57  ;;  %1625 = vmatpush1.bf16.msra.mxu0 %v6425_v11  ;;  %1666 = vmatpush1.bf16.msra.mxu1 %v6478_v52  ;;  %v3753_v27 = vpop.eup %3752  ;;  %v4991_v57 = vld [vmem:[#allocation7 + $0xcc] ss:$16 sps:$4 sm:$0xff]  }
 0x3ac   :  { %1626 = vmatprep.subr.bf16.mxu0 %v6479_v13  ;;  %1667 = vmatprep.subr.bf16.mxu1 %v6428_v8  ;;  %v1611_v14 = vadd.f32 0.5, %v1610_v50  ;;  %v6487_v8 = vld [vmem:[#allocation58_spill] sm:$0xff]  ;;  %v1612_v30 = vmul.f32 0.5, %v3753_v27  ;;  %v5000_v50 = vld [vmem:[#allocation7 + $0xe4] ss:$16 sps:$4 sm:$0xff]  }
 0x3ad   :  { %v1615_v15 = vmul.f32 %v3751_v53, %v1609_v49  ;;  %v4997_v49 = vld [vmem:[#allocation7 + $0xc8] ss:$16 sps:$4 sm:$0xff]   ;;  %v5003_v52 = vld [vmem:[#allocation7 + $0xec] ss:$16 sps:$4 sm:$0xff]   ;;  %v5006_v53 = vld [vmem:[#allocation7 + $0xe0] ss:$16 sps:$4 sm:$0xff]  }
 0x3ae   :  { %v1614_v17 = vmul.f32 %v1611_v14, %v6480_v16  ;;  %v1613_v32 = vadd.f32 0.5, %v1612_v30  ;;  %v5009_v13 = vld [vmem:[#allocation7 + $0xe8] ss:$16 sps:$4 sm:$0xff]   ;;  %v5018_v16 = vld [vmem:[#allocation11] ss:$16 sps:$4 sm:$0xff]  }
 0x3af   :  { %1627 = vmatpush1.bf16.msra.mxu0 %v6481_v18  ;;  %1668 = vmatpush1.bf16.msra.mxu1 %v6482_v23  ;;  %v5012_v14 = vld [vmem:[#allocation11 + $0x4] ss:$16 sps:$4 sm:$0xff]   ;;  %v5027_v23 = vld [vmem:[#allocation11 + $0x2c] ss:$16 sps:$4 sm:$0xff]   ;;  %v5059_v30 = vld [vmem:[#allocation11 + $0x68] ss:$16 sps:$4 sm:$0xff]  }
 0x3b0   :  { %1628 = vmatprep.subr.bf16.mxu0 %v6483_v19  ;;  %1669 = vmatprep.subr.bf16.mxu1 %v6484_v20  ;;  %v4923_v11 = vadd.f32 %v1615_v15, %v1614_v17  ;;  %v5015_v15 = vld [vmem:[#allocation11 + $0xc] ss:$16 sps:$4 sm:$0xff]   ;;  %v5021_v17 = vld [vmem:[#allocation11 + $0x8] ss:$16 sps:$4 sm:$0xff]   ;;  %v5024_v18 = vld [vmem:[#allocation11 + $0x24] ss:$16 sps:$4 sm:$0xff]  }
 0x3b1   :  { %6499 = vst [vmem:[#allocation41_spill] sm:$0xff] %v5024_v18  ;;  %6500 = vst [vmem:[#allocation47_spill] sm:$0xff] %v5027_v23  ;;  %v5032_v19 = vld [vmem:[#allocation11 + $0x20] ss:$16 sps:$4 sm:$0xff]   ;;  %v5035_v20 = vld [vmem:[#allocation11 + $0x28] ss:$16 sps:$4 sm:$0xff]  }
 0x3b2   :  { %3754 = vtanh.f32 %v4923_v11  ;;  %6501 = vst [vmem:[#allocation48_spill] sm:$0xff] %v5032_v19  ;;  %6502 = vst [vmem:[#allocation51_spill] sm:$0xff] %v5035_v20  ;;  %v5050_v27 = vld [vmem:[#allocation11 + $0x64] ss:$16 sps:$4 sm:$0xff]  }
 0x3b3   :  { %1629 = vmatpush1.bf16.msra.mxu0 %v6485_v24  ;;  %1670 = vmatpush1.bf16.msra.mxu1 %v6486_v25  ;;  %v5038_v24 = vld [vmem:[#allocation11 + $0x44] ss:$16 sps:$4 sm:$0xff]   ;;  %v5041_v25 = vld [vmem:[#allocation11 + $0x4c] ss:$16 sps:$4 sm:$0xff]   ;;  %6507 = vst [vmem:[#allocation67_spill] sm:$0xff] %v5050_v27  ;;  %6510 = vst [vmem:[#allocation25_spill] sm:$0xff] %v5059_v30 }
 0x3b4   :  { %1630 = vmatprep.subr.bf16.mxu0 %v6487_v8  ;;  %1671 = vmatprep.subr.bf16.mxu1 %v6488_v26  ;;  %6503 = vst [vmem:[#allocation62_spill] sm:$0xff] %v5038_v24  ;;  %6504 = vst [vmem:[#allocation64_spill] sm:$0xff] %v5041_v25  ;;  %v5044_v8 = vld [vmem:[#allocation11 + $0x40] ss:$16 sps:$4 sm:$0xff]   ;;  %v5047_v26 = vld [vmem:[#allocation11 + $0x48] ss:$16 sps:$4 sm:$0xff]  }
 0x3b5   :  { %6505 = vst [vmem:[#allocation65_spill] sm:$0xff] %v5044_v8  ;;  %6506 = vst [vmem:[#allocation66_spill] sm:$0xff] %v5047_v26 }
 0x3b7   :  { %1631 = vmatpush1.bf16.msra.mxu0 %v6489_v28  ;;  %1672 = vmatpush1.bf16.msra.mxu1 %v6490_v29  ;;  %v5053_v28 = vld [vmem:[#allocation11 + $0x6c] ss:$16 sps:$4 sm:$0xff]   ;;  %v5056_v29 = vld [vmem:[#allocation11 + $0x60] ss:$16 sps:$4 sm:$0xff]  }
 0x3b8   :  { %1632 = vmatprep.subr.bf16.mxu0 %v6440_v5  ;;  %1673 = vmatprep.subr.bf16.mxu1 %v6491_v31  ;;  %v6493_v5 = vld [vmem:[#allocation21_spill] sm:$0xff]  ;;  %6508 = vst [vmem:[#allocation68_spill] sm:$0xff] %v5053_v28  ;;  %6509 = vst [vmem:[#allocation69_spill] sm:$0xff] %v5056_v29 }
 0x3b9   :  { %v5062_v31 = vld [vmem:[#allocation11 + $0x84] ss:$16 sps:$4 sm:$0xff]  }
 0x3ba   :  { %6511 = vst [vmem:[#allocation26_spill] sm:$0xff] %v5062_v31 }
 0x3bb   :  { %1633 = vmatpush1.bf16.msra.mxu0 %v6442_v22  ;;  %1674 = vmatpush1.bf16.msra.mxu1 %v6443_v10  ;;  %v6494_v22 = vld [vmem:[#allocation22_spill] sm:$0xff]  ;;  %v6495_v10 = vld [vmem:[#allocation23_spill] sm:$0xff] }
 0x3bc   :  { %1634 = vmatprep.subr.bf16.mxu0 %v6444_v7  ;;  %1675 = vmatprep.subr.bf16.mxu1 %v6445_v54  ;;  %v3755_v33 = vpop.eup %3754  ;;  %v6496_v7 = vld [vmem:[#allocation24_spill] sm:$0xff]  ;;  %v6497_v54 = vld [vmem:[#allocation70_spill] sm:$0xff] }
 0x3bd   :  { %v1618_v34 = vmul.f32 %v3755_v33, %v1613_v32  ;;  %v5065_v32 = vld [vmem:[#allocation11 + $0x8c] ss:$16 sps:$4 sm:$0xff]   ;;  %v5068_v33 = vld [vmem:[#allocation11 + $0x80] ss:$16 sps:$4 sm:$0xff]  }
 0x3be   :  { %6512 = vst [vmem:[#allocation27_spill] sm:$0xff] %v5065_v32  ;;  %6513 = vst [vmem:[#allocation28_spill] sm:$0xff] %v5068_v33 }
 0x3bf   :  { %1635 = vmatpush1.bf16.msra.mxu0 %v6446_v21  ;;  %1676 = vmatpush1.bf16.msra.mxu1 %v6447_v56  ;;  %v1619_v62 = vpack.c.bf16 %v1618_v34, %v1618_v34  ;;  %v6498_v21 = vld [vmem:[#allocation40_spill] sm:$0xff] }
 0x3c0   :  { %1724 = vmatprep.subr.bf16.mxu0 %v6492_v35  ;;  %1765 = vmatprep.subr.bf16.mxu1 %v6493_v5  ;;  %v4955_v56 = vld [vmem:[#allocation7 + $0x6c] ss:$16 sps:$4 sm:$0xff]  }
 0x3c1   :  { %v5071_v34 = vld [vmem:[#allocation11 + $0x88] ss:$16 sps:$4 sm:$0xff]  }
 0x3c2   :  { %1653 = vmatmul.mubr.bf16.vlgmr.msra.gmra.mrb[24].mxu0 %v1619_v62  ;;  %1694 = vmatmul.mubr.bf16.vlgmr.msra.gmra.mrb[24].mxu1 %v1619_v62  ;;  %6514 = vst [vmem:[#allocation29_spill] sm:$0xff] %v5071_v34 }
 0x3c3   :  { %1725 = vmatpush1.bf16.msra.mxu0 %v6494_v22  ;;  %1766 = vmatpush1.bf16.msra.mxu1 %v6495_v10 }
 0x3c4   :  { %1726 = vmatprep.subr.bf16.mxu0 %v6496_v7  ;;  %1767 = vmatprep.subr.bf16.mxu1 %v6497_v54 }
 0x3c5   :  { %1756 = vmatprep.mubr.bf16.mxu0 %v6356_v3  ;;  %1797 = vmatprep.mubr.bf16.mxu1 %v6356_v3 }
 0x3c7   :  { %1727 = vmatpush1.bf16.msra.mxu0 %v6498_v21  ;;  %1768 = vmatpush1.bf16.msra.mxu1 %v4819_v1 }
 0x3c8   :  { %1728 = vmatprep.subr.bf16.mxu0 %v4822_v0  ;;  %1769 = vmatprep.subr.bf16.mxu1 %v4825_v12 }
 0x3cb   :  { %1729 = vmatpush1.bf16.msra.mxu0 %v4828_v6  ;;  %1770 = vmatpush1.bf16.msra.mxu1 %v4831_v63 }
 0x3cc   :  { %1730 = vmatprep.subr.bf16.mxu0 %v4834_v9  ;;  %1771 = vmatprep.subr.bf16.mxu1 %v4955_v56 }
 0x3cf   :  { %1731 = vmatpush1.bf16.msra.mxu0 %v4958_v36  ;;  %1772 = vmatpush1.bf16.msra.mxu1 %v4961_v37 }
 0x3d0   :  { %1732 = vmatprep.subr.bf16.mxu0 %v4964_v38  ;;  %1773 = vmatprep.subr.bf16.mxu1 %v4967_v39 }
 0x3d3   :  { %1733 = vmatpush1.bf16.msra.mxu0 %v4970_v40  ;;  %1774 = vmatpush1.bf16.msra.mxu1 %v4973_v42 }
 0x3d4   :  { %1734 = vmatprep.subr.bf16.mxu0 %v4976_v44  ;;  %1775 = vmatprep.subr.bf16.mxu1 %v4979_v45 }
 0x3d7   :  { %1735 = vmatpush1.bf16.msra.mxu0 %v4982_v46  ;;  %1776 = vmatpush1.bf16.msra.mxu1 %v4985_v47 }
 0x3d8   :  { %1736 = vmatprep.subr.bf16.mxu0 %v4988_v48  ;;  %1777 = vmatprep.subr.bf16.mxu1 %v4991_v57 }
 0x3db   :  { %1737 = vmatpush1.bf16.msra.mxu0 %v4994_v4  ;;  %1778 = vmatpush1.bf16.msra.mxu1 %v4997_v49 }
 0x3dc   :  { %1738 = vmatprep.subr.bf16.mxu0 %v5000_v50  ;;  %1779 = vmatprep.subr.bf16.mxu1 %v5003_v52 }
 0x3df   :  { %1739 = vmatpush1.bf16.msra.mxu0 %v5006_v53  ;;  %1780 = vmatpush1.bf16.msra.mxu1 %v5009_v13 }
 0x3e0   :  { %1806 = vmatprep.subr.bf16.mxu0 %v5012_v14  ;;  %1847 = vmatprep.subr.bf16.mxu1 %v5015_v15 }
 0x3e2   :  { %1757 = vmatmul.mubr.bf16.vlgmr.msra.gmra.mrb[28].mxu0 %v1619_v62  ;;  %1798 = vmatmul.mubr.bf16.vlgmr.msra.gmra.mrb[28].mxu1 %v1619_v62  ;;  %v5074_v62 = vld [vmem:[#allocation11 + $0xa4] ss:$16 sps:$4 sm:$0xff]  }
 0x3e3   :  { %1807 = vmatpush1.bf16.msra.mxu0 %v5018_v16  ;;  %1848 = vmatpush1.bf16.msra.mxu1 %v5021_v17  ;;  %6515 = vst [vmem:[#allocation30_spill] sm:$0xff] %v5074_v62 }
 0x3e4   :  { %1808 = vmatprep.subr.bf16.mxu0 %v5024_v18  ;;  %1849 = vmatprep.subr.bf16.mxu1 %v5027_v23 }
 0x3e5   :  { %1838 = vmatprep.mubr.bf16.mxu0 %v6356_v3  ;;  %1879 = vmatprep.mubr.bf16.mxu1 %v6356_v3 }
 0x3e7   :  { %1809 = vmatpush1.bf16.msra.mxu0 %v5032_v19  ;;  %1850 = vmatpush1.bf16.msra.mxu1 %v5035_v20 }
 0x3e8   :  { %1810 = vmatprep.subr.bf16.mxu0 %v5038_v24  ;;  %1851 = vmatprep.subr.bf16.mxu1 %v5041_v25 }
 0x3eb   :  { %1811 = vmatpush1.bf16.msra.mxu0 %v5044_v8  ;;  %1852 = vmatpush1.bf16.msra.mxu1 %v5047_v26 }
 0x3ec   :  { %1812 = vmatprep.subr.bf16.mxu0 %v5050_v27  ;;  %1853 = vmatprep.subr.bf16.mxu1 %v5053_v28 }
 0x3ef   :  { %1813 = vmatpush1.bf16.msra.mxu0 %v5056_v29  ;;  %1854 = vmatpush1.bf16.msra.mxu1 %v5059_v30  ;;  %v5077_v30 = vld [vmem:[#allocation11 + $0xac] ss:$16 sps:$4 sm:$0xff]  }
 0x3f0   :  { %1814 = vmatprep.subr.bf16.mxu0 %v5062_v31  ;;  %1855 = vmatprep.subr.bf16.mxu1 %v5065_v32  ;;  %6516 = vst [vmem:[#allocation31_spill] sm:$0xff] %v5077_v30  ;;  %v5080_v31 = vld [vmem:[#allocation11 + $0xa0] ss:$16 sps:$4 sm:$0xff]   ;;  %v5083_v32 = vld [vmem:[#allocation11 + $0xa8] ss:$16 sps:$4 sm:$0xff]  }
 0x3f1   :  { %6517 = vst [vmem:[#allocation32_spill] sm:$0xff] %v5080_v31  ;;  %6518 = vst [vmem:[#allocation33_spill] sm:$0xff] %v5083_v32 }
 0x3f3   :  { %1815 = vmatpush1.bf16.msra.mxu0 %v5068_v33  ;;  %1856 = vmatpush1.bf16.msra.mxu1 %v5071_v34  ;;  %v5086_v33 = vld [vmem:[#allocation11 + $0xc4] ss:$16 sps:$4 sm:$0xff]   ;;  %v5089_v34 = vld [vmem:[#allocation11 + $0xcc] ss:$16 sps:$4 sm:$0xff]  }
 0x3f4   :  { %1816 = vmatprep.subr.bf16.mxu0 %v5074_v62  ;;  %1857 = vmatprep.subr.bf16.mxu1 %v5077_v30  ;;  %6519 = vst [vmem:[#allocation34_spill] sm:$0xff] %v5086_v33  ;;  %6520 = vst [vmem:[#allocation35_spill] sm:$0xff] %v5089_v34  ;;  %v5092_v62 = vld [vmem:[#allocation11 + $0xc0] ss:$16 sps:$4 sm:$0xff]   ;;  %v5095_v30 = vld [vmem:[#allocation11 + $0xc8] ss:$16 sps:$4 sm:$0xff]  }
 0x3f5   :  { %6521 = vst [vmem:[#allocation36_spill] sm:$0xff] %v5092_v62  ;;  %6522 = vst [vmem:[#allocation37_spill] sm:$0xff] %v5095_v30 }
 0x3f7   :  { %1817 = vmatpush1.bf16.msra.mxu0 %v5080_v31  ;;  %1858 = vmatpush1.bf16.msra.mxu1 %v5083_v32  ;;  %v5098_v31 = vld [vmem:[#allocation11 + $0xe4] ss:$16 sps:$4 sm:$0xff]   ;;  %v5101_v32 = vld [vmem:[#allocation11 + $0xec] ss:$16 sps:$4 sm:$0xff]  }
 0x3f8   :  { %1818 = vmatprep.subr.bf16.mxu0 %v5086_v33  ;;  %1859 = vmatprep.subr.bf16.mxu1 %v5089_v34  ;;  %6523 = vst [vmem:[#allocation38_spill] sm:$0xff] %v5098_v31  ;;  %6524 = vst [vmem:[#allocation39_spill] sm:$0xff] %v5101_v32  ;;  %v5104_v33 = vld [vmem:[#allocation11 + $0xe0] ss:$16 sps:$4 sm:$0xff]   ;;  %v5107_v34 = vld [vmem:[#allocation11 + $0xe8] ss:$16 sps:$4 sm:$0xff]  }
 0x3f9   :  { %6525 = vst [vmem:[#allocation18_spill] sm:$0xff] %v5104_v33  ;;  %6526 = vst [vmem:[#allocation42_spill] sm:$0xff] %v5107_v34 }
 0x3fb   :  { %1819 = vmatpush1.bf16.msra.mxu0 %v5092_v62  ;;  %1860 = vmatpush1.bf16.msra.mxu1 %v5095_v30  ;;  %v5110_v62 = vld [vmem:[#allocation10 + $0x4] ss:$16 sps:$4 sm:$0xff]   ;;  %v5113_v30 = vld [vmem:[#allocation10 + $0xc] ss:$16 sps:$4 sm:$0xff]  }
 0x3fc   :  { %1820 = vmatprep.subr.bf16.mxu0 %v5098_v31  ;;  %1861 = vmatprep.subr.bf16.mxu1 %v5101_v32  ;;  %6527 = vst [vmem:[#allocation43_spill] sm:$0xff] %v5110_v62  ;;  %6528 = vst [vmem:[#allocation71_spill] sm:$0xff] %v5113_v30 }
 0x3ff   :  { %1821 = vmatpush1.bf16.msra.mxu0 %v5104_v33  ;;  %1862 = vmatpush1.bf16.msra.mxu1 %v5107_v34 }
 0x400   :  { %1908 = vmatprep.subr.bf16.mxu0 %v5110_v62  ;;  %1949 = vmatprep.subr.bf16.mxu1 %v5113_v30 }
 0x495   :  { %v1654_v31 = vpop.f32.mrb[24].mxu0  ;;  %v1695_v29 = vpop.f32.mrb[24].mxu1 }
 0x496   :  { %v1655_v32 = vadd.f32 %v1654_v31, %v6470_v41  ;;  %v1656_v28 = vpop.f32.mrb[25].mxu0  ;;  %v1697_v27 = vpop.f32.mrb[25].mxu1  ;;  %v1696_v62 = vadd.f32 %v1695_v29, %v6471_v51 }
 0x497   :  { %v1657_v33 = vadd.f32 %v1656_v28, %v4739_v2  ;;  %v1658_v26 = vpop.f32.mrb[26].mxu0  ;;  %v1699_v8 = vpop.f32.mrb[26].mxu1  ;;  %v1698_v34 = vadd.f32 %v1697_v27, %v4743_v58 }
 0x498   :  { %3756 = vtanh.f32 %v1655_v32  ;;  %v1659_v25 = vpop.f32.mrb[27].mxu0  ;;  %v1700_v24 = vpop.f32.mrb[27].mxu1 }
 0x499   :  { %3758 = vtanh.f32 %v1657_v33 }
 0x49a   :  { %3760 = vtanh.f32 %v1698_v34 }
 0x49b   :  { %3762 = vtanh.f32 %v1696_v62 }
 0x4a2   :  { %v3757_v30 = vpop.eup %3756 }
 0x4a3   :  { %v1710_v20 = vmul.f32 0.5, %v3757_v30  ;;  %v3759_v19 = vpop.eup %3758 }
 0x4a4   :  { %v1712_v31 = vmul.f32 0.5, %v3759_v19  ;;  %v3761_v41 = vpop.eup %3760 }
 0x4a5   :  { %v1711_v23 = vadd.f32 0.5, %v1710_v20  ;;  %v3763_v24 = vpop.eup %3762 }
 0x4a6   :  { %v1713_v18 = vadd.f32 0.5, %v1712_v31  ;;  %v1714_v25 = vmul.f32 0.5, %v3763_v24  ;;  %v5130_v24 = vld [vmem:[#allocation10 + $0x8] ss:$16 sps:$4 sm:$0xff]  }
 0x4a7   :  { %v1717_v28 = vmul.f32 %v3761_v41, %v1711_v23 }
 0x4a8   :  { %v1716_v8 = vmul.f32 %v1713_v18, %v4897_v60  ;;  %v1715_v29 = vadd.f32 0.5, %v1714_v25  ;;  %v5133_v25 = vld [vmem:[#allocation10 + $0x24] ss:$16 sps:$4 sm:$0xff]  }
 0x4aa   :  { %v5121_v26 = vadd.f32 %v1717_v28, %v1716_v8  ;;  %v5127_v8 = vld [vmem:[#allocation10] ss:$16 sps:$4 sm:$0xff]  }
 0x4ac   :  { %3764 = vtanh.f32 %v5121_v26 }
 0x4b5   :  { %v1758_v27 = vpop.f32.mrb[28].mxu0  ;;  %v1799_v32 = vpop.f32.mrb[28].mxu1 }
 0x4b6   :  { %v1888_v30 = vadd.f32 %v1758_v27, %v6416_v55  ;;  %v1760_v33 = vpop.f32.mrb[29].mxu0  ;;  %v1801_v20 = vpop.f32.mrb[29].mxu1  ;;  %v5136_v27 = vld [vmem:[#allocation10 + $0x2c] ss:$16 sps:$4 sm:$0xff]  }
 0x4b7   :  { %v3765_v34 = vpop.eup %3764  ;;  %v1889_v19 = vadd.f32 %v1760_v33, %v4646_v61  ;;  %v1762_v62 = vpop.f32.mrb[30].mxu0  ;;  %v1891_v60 = vadd.f32 %v1801_v20, %v4648_v59  ;;  %v5145_v33 = vld [vmem:[#allocation10 + $0x28] ss:$16 sps:$4 sm:$0xff]  }
 0x4b8   :  { %v1803_v41 = vpop.f32.mrb[30].mxu1  ;;  %3766 = vtanh.f32 %v1888_v30  ;;  %v1763_v18 = vpop.f32.mrb[31].mxu0  ;;  %v1720_v31 = vmul.f32 %v3765_v34, %v1715_v29  ;;  %v1890_v29 = vadd.f32 %v1799_v32, %v6474_v43  ;;  %v5142_v30 = vld [vmem:[#allocation10 + $0x20] ss:$16 sps:$4 sm:$0xff]   ;;  %v5148_v34 = vld [vmem:[#allocation10 + $0x44] ss:$16 sps:$4 sm:$0xff]  }
 0x4b9   :  { %v1804_v23 = vpop.f32.mrb[31].mxu1  ;;  %3768 = vtanh.f32 %v1889_v19  ;;  %6529 = vst [vmem:[#allocation44_spill] sm:$0xff] %v5148_v34  ;;  %v5151_v19 = vld [vmem:[#allocation10 + $0x4c] ss:$16 sps:$4 sm:$0xff]   ;;  %v5154_v18 = vld [vmem:[#allocation10 + $0x40] ss:$16 sps:$4 sm:$0xff]  }
 0x4ba   :  { %1722 = vst [vmem:[#allocation2 + $0x4] sm:$0x3] %v1720_v31  ;;  %v1723_v28 = vpack.c.bf16 %v1720_v31, %v1720_v31  ;;  %3770 = vtanh.f32 %v1891_v60  ;;  %6530 = vst [vmem:[#allocation45_spill] sm:$0xff] %v5154_v18  ;;  %v5157_v23 = vld [vmem:[#allocation10 + $0x48] ss:$16 sps:$4 sm:$0xff]  }
 0x4bb   :  { %3772 = vtanh.f32 %v1890_v29  ;;  %6531 = vst [vmem:[#allocation46_spill] sm:$0xff] %v5157_v23 }
 0x4bc   :  { %1839 = vmatmul.mubr.bf16.vlgmr.msra.gmra.mrb[32].mxu0 %v1723_v28  ;;  %1880 = vmatmul.mubr.bf16.vlgmr.msra.gmra.mrb[32].mxu1 %v1723_v28  ;;  %v5160_v28 = vld [vmem:[#allocation10 + $0x64] ss:$16 sps:$4 sm:$0xff]  }
 0x4bd   :  { %1909 = vmatpush1.bf16.msra.mxu0 %v5127_v8  ;;  %1950 = vmatpush1.bf16.msra.mxu1 %v5130_v24  ;;  %6532 = vst [vmem:[#allocation49_spill] sm:$0xff] %v5160_v28 }
 0x4be   :  { %1910 = vmatprep.subr.bf16.mxu0 %v5133_v25  ;;  %1951 = vmatprep.subr.bf16.mxu1 %v5136_v27 }
 0x4bf   :  { %1940 = vmatprep.mubr.bf16.mxu0 %v6356_v3  ;;  %1981 = vmatprep.mubr.bf16.mxu1 %v6356_v3 }
 0x4c1   :  { %1911 = vmatpush1.bf16.msra.mxu0 %v5142_v30  ;;  %1952 = vmatpush1.bf16.msra.mxu1 %v5145_v33 }
 0x4c2   :  { %v3767_v20 = vpop.eup %3766  ;;  %1912 = vmatprep.subr.bf16.mxu0 %v5148_v34  ;;  %1953 = vmatprep.subr.bf16.mxu1 %v5151_v19  ;;  %v5163_v34 = vld [vmem:[#allocation10 + $0x6c] ss:$16 sps:$4 sm:$0xff]  }
 0x4c3   :  { %v1896_v62 = vmul.f32 0.5, %v3767_v20  ;;  %v3769_v41 = vpop.eup %3768 }
 0x4c4   :  { %v1898_v60 = vmul.f32 0.5, %v3769_v41  ;;  %v3771_v31 = vpop.eup %3770  ;;  %v5167_v41 = vld [vmem:[#allocation10 + $0x60] ss:$16 sps:$4 sm:$0xff]  }
 0x4c5   :  { %v1897_v32 = vadd.f32 0.5, %v1896_v62  ;;  %1913 = vmatpush1.bf16.msra.mxu0 %v5154_v18  ;;  %1954 = vmatpush1.bf16.msra.mxu1 %v5157_v23  ;;  %v5170_v18 = vld [vmem:[#allocation10 + $0x68] ss:$16 sps:$4 sm:$0xff]   ;;  %v5173_v23 = vld [vmem:[#allocation10 + $0x84] ss:$16 sps:$4 sm:$0xff]  }
 0x4c6   :  { %1914 = vmatprep.subr.bf16.mxu0 %v5160_v28  ;;  %1955 = vmatprep.subr.bf16.mxu1 %v5163_v34  ;;  %v1899_v20 = vadd.f32 0.5, %v1898_v60  ;;  %6533 = vst [vmem:[#allocation50_spill] sm:$0xff] %v5170_v18  ;;  %6534 = vst [vmem:[#allocation19_spill] sm:$0xff] %v5173_v23  ;;  %v5176_v28 = vld [vmem:[#allocation10 + $0x8c] ss:$16 sps:$4 sm:$0xff]  }
 0x4c7   :  { %v1903_v29 = vmul.f32 %v3771_v31, %v1897_v32  ;;  %6535 = vst [vmem:[#allocation52_spill] sm:$0xff] %v5176_v28  ;;  %v5185_v32 = vld [vmem:[#allocation10 + $0x88] ss:$16 sps:$4 sm:$0xff]   ;;  %v5188_v31 = vld [vmem:[#allocation10 + $0xa4] ss:$16 sps:$4 sm:$0xff]  }
 0x4c8   :  { %v1902_v62 = vmul.f32 %v1899_v20, %v4923_v11  ;;  %v5182_v11 = vld [vmem:[#allocation10 + $0x80] ss:$16 sps:$4 sm:$0xff]   ;;  %6537 = vst [vmem:[#allocation54_spill] sm:$0xff] %v5185_v32  ;;  %6538 = vst [vmem:[#allocation55_spill] sm:$0xff] %v5188_v31  ;;  %v5191_v20 = vld [vmem:[#allocation10 + $0xac] ss:$16 sps:$4 sm:$0xff]  }
 0x4c9   :  { %1915 = vmatpush1.bf16.msra.mxu0 %v5167_v41  ;;  %1956 = vmatpush1.bf16.msra.mxu1 %v5170_v18  ;;  %6536 = vst [vmem:[#allocation53_spill] sm:$0xff] %v5182_v11  ;;  %6539 = vst [vmem:[#allocation56_spill] sm:$0xff] %v5191_v20  ;;  %v5212_v18 = vld [vmem:[#allocation10 + $0xe4] ss:$16 sps:$4 sm:$0xff]  }
 0x4ca   :  { %1916 = vmatprep.subr.bf16.mxu0 %v5173_v23  ;;  %1957 = vmatprep.subr.bf16.mxu1 %v5176_v28  ;;  %v5179_v60 = vadd.f32 %v1903_v29, %v1902_v62  ;;  %v3773_v29 = vpop.eup %3772  ;;  %v5194_v62 = vld [vmem:[#allocation10 + $0xa0] ss:$16 sps:$4 sm:$0xff]   ;;  %v5197_v28 = vld [vmem:[#allocation10 + $0xa8] ss:$16 sps:$4 sm:$0xff]   ;;  %v5200_v23 = vld [vmem:[#allocation10 + $0xc4] ss:$16 sps:$4 sm:$0xff]  }
 0x4cb   :  { %6540 = vst [vmem:[#allocation57_spill] sm:$0xff] %v5194_v62  ;;  %6541 = vst [vmem:[#allocation58_spill] sm:$0xff] %v5197_v28 }
 0x4cc   :  { %3774 = vtanh.f32 %v5179_v60  ;;  %6542 = vst [vmem:[#allocation59_spill] sm:$0xff] %v5200_v23 }
 0x4cd   :  { %1917 = vmatpush1.bf16.msra.mxu0 %v5182_v11  ;;  %1958 = vmatpush1.bf16.msra.mxu1 %v5185_v32  ;;  %v1900_v11 = vmul.f32 0.5, %v3773_v29  ;;  %v5203_v32 = vld [vmem:[#allocation10 + $0xcc] ss:$16 sps:$4 sm:$0xff]  }
 0x4ce   :  { %1918 = vmatprep.subr.bf16.mxu0 %v5188_v31  ;;  %1959 = vmatprep.subr.bf16.mxu1 %v5191_v20  ;;  %6543 = vst [vmem:[#allocation60_spill] sm:$0xff] %v5203_v32  ;;  %v5206_v31 = vld [vmem:[#allocation10 + $0xc0] ss:$16 sps:$4 sm:$0xff]   ;;  %v5209_v20 = vld [vmem:[#allocation10 + $0xc8] ss:$16 sps:$4 sm:$0xff]  }
 0x4cf   :  { %6544 = vst [vmem:[#allocation61_spill] sm:$0xff] %v5206_v31  ;;  %6545 = vst [vmem:[#allocation63_spill] sm:$0xff] %v5209_v20  ;;  %v5215_v29 = vld [vmem:[#allocation10 + $0xec] ss:$16 sps:$4 sm:$0xff]  }
 0x4d1   :  { %1919 = vmatpush1.bf16.msra.mxu0 %v5194_v62  ;;  %1960 = vmatpush1.bf16.msra.mxu1 %v5197_v28  ;;  %v1901_v62 = vadd.f32 0.5, %v1900_v11  ;;  %v6561_v11 = vld [vmem:[#allocation29_spill] sm:$0xff] }
 0x4d2   :  { %1920 = vmatprep.subr.bf16.mxu0 %v5200_v23  ;;  %1961 = vmatprep.subr.bf16.mxu1 %v5203_v32  ;;  %v5218_v32 = vld [vmem:[#allocation10 + $0xe0] ss:$16 sps:$4 sm:$0xff]  }
 0x4d5   :  { %1921 = vmatpush1.bf16.msra.mxu0 %v5206_v31  ;;  %1962 = vmatpush1.bf16.msra.mxu1 %v5209_v20  ;;  %v5221_v31 = vld [vmem:[#allocation10 + $0xe8] ss:$16 sps:$4 sm:$0xff]  }
 0x4d6   :  { %1922 = vmatprep.subr.bf16.mxu0 %v5212_v18  ;;  %1963 = vmatprep.subr.bf16.mxu1 %v5215_v29  ;;  %v3775_v23 = vpop.eup %3774 }
 0x4d7   :  { %v1906_v28 = vmul.f32 %v3775_v23, %v1901_v62  ;;  %v6559_v23 = vld [vmem:[#allocation27_spill] sm:$0xff] }
 0x4d8   :  { %v6563_v62 = vld [vmem:[#allocation31_spill] sm:$0xff] }
 0x4d9   :  { %1923 = vmatpush1.bf16.msra.mxu0 %v5218_v32  ;;  %1964 = vmatpush1.bf16.msra.mxu1 %v5221_v31  ;;  %v1907_v20 = vpack.c.bf16 %v1906_v28, %v1906_v28  ;;  %v6560_v28 = vld [vmem:[#allocation28_spill] sm:$0xff] }
 0x4da   :  { %2012 = vmatprep.subr.bf16.mxu0 %v6492_v35  ;;  %2053 = vmatprep.subr.bf16.mxu1 %v6493_v5  ;;  %v6552_v35 = vld [vmem:[#allocation65_spill] sm:$0xff]  ;;  %v6553_v5 = vld [vmem:[#allocation66_spill] sm:$0xff] }
 0x4dc   :  { %1941 = vmatmul.mubr.bf16.vlgmr.msra.gmra.mrb[32].mxu0 %v1907_v20  ;;  %1982 = vmatmul.mubr.bf16.vlgmr.msra.gmra.mrb[32].mxu1 %v1907_v20 }
 0x4dd   :  { %2013 = vmatpush1.bf16.msra.mxu0 %v6494_v22  ;;  %2054 = vmatpush1.bf16.msra.mxu1 %v6495_v10  ;;  %v6554_v22 = vld [vmem:[#allocation67_spill] sm:$0xff]  ;;  %v6555_v10 = vld [vmem:[#allocation68_spill] sm:$0xff] }
 0x4de   :  { %2014 = vmatprep.subr.bf16.mxu0 %v6496_v7  ;;  %2055 = vmatprep.subr.bf16.mxu1 %v6497_v54  ;;  %v6556_v7 = vld [vmem:[#allocation69_spill] sm:$0xff] }
 0x4df   :  { %2044 = vmatprep.mubr.bf16.mxu0 %v6356_v3  ;;  %2085 = vmatprep.mubr.bf16.mxu1 %v6356_v3  ;;  %v6557_v54 = vld [vmem:[#allocation25_spill] sm:$0xff] }
 0x4e1   :  { %2015 = vmatpush1.bf16.msra.mxu0 %v6498_v21  ;;  %2056 = vmatpush1.bf16.msra.mxu1 %v4819_v1  ;;  %v6548_v1 = vld [vmem:[#allocation48_spill] sm:$0xff]  ;;  %v6558_v21 = vld [vmem:[#allocation26_spill] sm:$0xff] }
 0x4e2   :  { %2016 = vmatprep.subr.bf16.mxu0 %v4822_v0  ;;  %2057 = vmatprep.subr.bf16.mxu1 %v4825_v12  ;;  %v6549_v0 = vld [vmem:[#allocation51_spill] sm:$0xff]  ;;  %v6550_v12 = vld [vmem:[#allocation62_spill] sm:$0xff] }
 0x4e5   :  { %2017 = vmatpush1.bf16.msra.mxu0 %v4828_v6  ;;  %2058 = vmatpush1.bf16.msra.mxu1 %v4831_v63  ;;  %v6546_v63 = vld [vmem:[#allocation41_spill] sm:$0xff]  ;;  %v6551_v6 = vld [vmem:[#allocation64_spill] sm:$0xff] }
 0x4e6   :  { %2018 = vmatprep.subr.bf16.mxu0 %v4834_v9  ;;  %2059 = vmatprep.subr.bf16.mxu1 %v4955_v56  ;;  %v6547_v9 = vld [vmem:[#allocation47_spill] sm:$0xff] }
 0x4e9   :  { %2019 = vmatpush1.bf16.msra.mxu0 %v4958_v36  ;;  %2060 = vmatpush1.bf16.msra.mxu1 %v4961_v37 }
 0x4ea   :  { %2020 = vmatprep.subr.bf16.mxu0 %v4964_v38  ;;  %2061 = vmatprep.subr.bf16.mxu1 %v4967_v39 }
 0x4ed   :  { %2021 = vmatpush1.bf16.msra.mxu0 %v4970_v40  ;;  %2062 = vmatpush1.bf16.msra.mxu1 %v4973_v42 }
 0x4ee   :  { %2022 = vmatprep.subr.bf16.mxu0 %v4976_v44  ;;  %2063 = vmatprep.subr.bf16.mxu1 %v4979_v45 }
 0x4f1   :  { %2023 = vmatpush1.bf16.msra.mxu0 %v4982_v46  ;;  %2064 = vmatpush1.bf16.msra.mxu1 %v4985_v47 }
 0x4f2   :  { %2024 = vmatprep.subr.bf16.mxu0 %v4988_v48  ;;  %2065 = vmatprep.subr.bf16.mxu1 %v4991_v57 }
 0x4f5   :  { %2025 = vmatpush1.bf16.msra.mxu0 %v4994_v4  ;;  %2066 = vmatpush1.bf16.msra.mxu1 %v4997_v49 }
 0x4f6   :  { %2026 = vmatprep.subr.bf16.mxu0 %v5000_v50  ;;  %2067 = vmatprep.subr.bf16.mxu1 %v5003_v52 }
 0x4f9   :  { %2027 = vmatpush1.bf16.msra.mxu0 %v5006_v53  ;;  %2068 = vmatpush1.bf16.msra.mxu1 %v5009_v13 }
 0x4fa   :  { %2094 = vmatprep.subr.bf16.mxu0 %v5012_v14  ;;  %2135 = vmatprep.subr.bf16.mxu1 %v5015_v15 }
 0x4fc   :  { %2045 = vmatmul.mubr.bf16.vlgmr.msra.gmra.mrb[36].mxu0 %v1907_v20  ;;  %2086 = vmatmul.mubr.bf16.vlgmr.msra.gmra.mrb[36].mxu1 %v1907_v20  ;;  %v6562_v20 = vld [vmem:[#allocation30_spill] sm:$0xff] }
 0x4fd   :  { %2095 = vmatpush1.bf16.msra.mxu0 %v5018_v16  ;;  %2136 = vmatpush1.bf16.msra.mxu1 %v5021_v17 }
 0x4fe   :  { %2096 = vmatprep.subr.bf16.mxu0 %v6546_v63  ;;  %2137 = vmatprep.subr.bf16.mxu1 %v6547_v9 }
 0x4ff   :  { %2126 = vmatprep.mubr.bf16.mxu0 %v6356_v3  ;;  %2167 = vmatprep.mubr.bf16.mxu1 %v6356_v3 }
 0x501   :  { %2097 = vmatpush1.bf16.msra.mxu0 %v6548_v1  ;;  %2138 = vmatpush1.bf16.msra.mxu1 %v6549_v0 }
 0x502   :  { %2098 = vmatprep.subr.bf16.mxu0 %v6550_v12  ;;  %2139 = vmatprep.subr.bf16.mxu1 %v6551_v6 }
 0x505   :  { %2099 = vmatpush1.bf16.msra.mxu0 %v6552_v35  ;;  %2140 = vmatpush1.bf16.msra.mxu1 %v6553_v5  ;;  %v6564_v5 = vld [vmem:[#allocation32_spill] sm:$0xff]  ;;  %v6576_v35 = vld [vmem:[#allocation17_spill] sm:$0xff] }
 0x506   :  { %2100 = vmatprep.subr.bf16.mxu0 %v6554_v22  ;;  %2141 = vmatprep.subr.bf16.mxu1 %v6555_v10  ;;  %v6565_v22 = vld [vmem:[#allocation33_spill] sm:$0xff]  ;;  %v6566_v10 = vld [vmem:[#allocation34_spill] sm:$0xff] }
 0x509   :  { %2101 = vmatpush1.bf16.msra.mxu0 %v6556_v7  ;;  %2142 = vmatpush1.bf16.msra.mxu1 %v6557_v54  ;;  %v6567_v7 = vld [vmem:[#allocation35_spill] sm:$0xff]  ;;  %v6568_v54 = vld [vmem:[#allocation36_spill] sm:$0xff] }
 0x50a   :  { %2102 = vmatprep.subr.bf16.mxu0 %v6558_v21  ;;  %2143 = vmatprep.subr.bf16.mxu1 %v6559_v23  ;;  %v6569_v21 = vld [vmem:[#allocation37_spill] sm:$0xff]  ;;  %v6570_v23 = vld [vmem:[#allocation38_spill] sm:$0xff] }
 0x50d   :  { %2103 = vmatpush1.bf16.msra.mxu0 %v6560_v28  ;;  %2144 = vmatpush1.bf16.msra.mxu1 %v6561_v11  ;;  %v6571_v28 = vld [vmem:[#allocation39_spill] sm:$0xff]  ;;  %v6572_v11 = vld [vmem:[#allocation18_spill] sm:$0xff] }
 0x50e   :  { %2104 = vmatprep.subr.bf16.mxu0 %v6562_v20  ;;  %2145 = vmatprep.subr.bf16.mxu1 %v6563_v62  ;;  %v6573_v20 = vld [vmem:[#allocation42_spill] sm:$0xff]  ;;  %v6574_v62 = vld [vmem:[#allocation43_spill] sm:$0xff] }
 0x511   :  { %2105 = vmatpush1.bf16.msra.mxu0 %v6564_v5  ;;  %2146 = vmatpush1.bf16.msra.mxu1 %v6565_v22  ;;  %v6575_v5 = vld [vmem:[#allocation71_spill] sm:$0xff] }
 0x512   :  { %2106 = vmatprep.subr.bf16.mxu0 %v6566_v10  ;;  %2147 = vmatprep.subr.bf16.mxu1 %v6567_v7 }
 0x515   :  { %2107 = vmatpush1.bf16.msra.mxu0 %v6568_v54  ;;  %2148 = vmatpush1.bf16.msra.mxu1 %v6569_v21 }
 0x516   :  { %2108 = vmatprep.subr.bf16.mxu0 %v6570_v23  ;;  %2149 = vmatprep.subr.bf16.mxu1 %v6571_v28 }
 0x519   :  { %2109 = vmatpush1.bf16.msra.mxu0 %v6572_v11  ;;  %2150 = vmatpush1.bf16.msra.mxu1 %v6573_v20 }
 0x51a   :  { %2196 = vmatprep.subr.bf16.mxu0 %v6574_v62  ;;  %2237 = vmatprep.subr.bf16.mxu1 %v6575_v5 }
 0x5af   :  { %v1942_v22 = vpop.f32.mrb[32].mxu0  ;;  %v1983_v10 = vpop.f32.mrb[32].mxu1 }
 0x5b0   :  { %v1943_v7 = vadd.f32 %v1942_v22, %v6576_v35  ;;  %v1944_v6 = vpop.f32.mrb[33].mxu0  ;;  %v1985_v54 = vpop.f32.mrb[33].mxu1  ;;  %v1984_v62 = vadd.f32 %v1983_v10, %v6471_v51 }
 0x5b1   :  { %v1945_v21 = vadd.f32 %v1944_v6, %v4739_v2  ;;  %v1946_v12 = vpop.f32.mrb[34].mxu0  ;;  %v1987_v23 = vpop.f32.mrb[34].mxu1  ;;  %v1986_v28 = vadd.f32 %v1985_v54, %v4743_v58 }
 0x5b2   :  { %3776 = vtanh.f32 %v1943_v7  ;;  %v1947_v11 = vpop.f32.mrb[35].mxu0  ;;  %v1988_v0 = vpop.f32.mrb[35].mxu1 }
 0x5b3   :  { %3778 = vtanh.f32 %v1945_v21 }
 0x5b4   :  { %3780 = vtanh.f32 %v1986_v28 }
 0x5b5   :  { %3782 = vtanh.f32 %v1984_v62 }
 0x5bc   :  { %v3777_v5 = vpop.eup %3776 }
 0x5bd   :  { %v1998_v20 = vmul.f32 0.5, %v3777_v5  ;;  %v3779_v1 = vpop.eup %3778 }
 0x5be   :  { %v2000_v22 = vmul.f32 0.5, %v3779_v1  ;;  %v3781_v35 = vpop.eup %3780 }
 0x5bf   :  { %v1999_v9 = vadd.f32 0.5, %v1998_v20  ;;  %v3783_v0 = vpop.eup %3782 }
 0x5c0   :  { %v2001_v63 = vadd.f32 0.5, %v2000_v22  ;;  %v2002_v54 = vmul.f32 0.5, %v3783_v0 }
 0x5c1   :  { %v2005_v6 = vmul.f32 %v3781_v35, %v1999_v9 }
 0x5c2   :  { %v2004_v12 = vmul.f32 %v2001_v63, %v5121_v26  ;;  %v2003_v10 = vadd.f32 0.5, %v2002_v54  ;;  %v6577_v54 = vld [vmem:[#allocation44_spill] sm:$0xff] }
 0x5c4   :  { %v5299_v7 = vadd.f32 %v2005_v6, %v2004_v12 }
 0x5c6   :  { %3784 = vtanh.f32 %v5299_v7 }
 0x5cf   :  { %v2046_v21 = vpop.f32.mrb[36].mxu0  ;;  %v2087_v23 = vpop.f32.mrb[36].mxu1 }
 0x5d0   :  { %v2176_v5 = vadd.f32 %v2046_v21, %v6416_v55  ;;  %v2048_v28 = vpop.f32.mrb[37].mxu0  ;;  %v2089_v11 = vpop.f32.mrb[37].mxu1  ;;  %v2178_v12 = vadd.f32 %v2087_v23, %v6474_v43  ;;  %v6580_v23 = vld [vmem:[#allocation49_spill] sm:$0xff] }
 0x5d1   :  { %v3785_v20 = vpop.eup %3784  ;;  %v2177_v1 = vadd.f32 %v2048_v28, %v4646_v61  ;;  %v2050_v62 = vpop.f32.mrb[38].mxu0  ;;  %v2179_v26 = vadd.f32 %v2089_v11, %v4648_v59  ;;  %v6578_v11 = vld [vmem:[#allocation45_spill] sm:$0xff] }
 0x5d2   :  { %v2091_v9 = vpop.f32.mrb[38].mxu1  ;;  %3786 = vtanh.f32 %v2176_v5  ;;  %v2051_v63 = vpop.f32.mrb[39].mxu0  ;;  %v2008_v22 = vmul.f32 %v3785_v20, %v2003_v10  ;;  %v6579_v20 = vld [vmem:[#allocation46_spill] sm:$0xff] }
 0x5d3   :  { %v2092_v35 = vpop.f32.mrb[39].mxu1  ;;  %3788 = vtanh.f32 %v2177_v1  ;;  %v6581_v63 = vld [vmem:[#allocation50_spill] sm:$0xff] }
 0x5d4   :  { %2010 = vst [vmem:[#allocation2 + $0x6] sm:$0x3] %v2008_v22  ;;  %v2011_v6 = vpack.c.bf16 %v2008_v22, %v2008_v22  ;;  %3790 = vtanh.f32 %v2179_v26  ;;  %v6582_v35 = vld [vmem:[#allocation19_spill] sm:$0xff]  ;;  %v6583_v22 = vld [vmem:[#allocation52_spill] sm:$0xff] }
 0x5d5   :  { %3792 = vtanh.f32 %v2178_v12  ;;  %v6584_v12 = vld [vmem:[#allocation53_spill] sm:$0xff] }
 0x5d6   :  { %2127 = vmatmul.mubr.bf16.vlgmr.msra.gmra.mrb[40].mxu0 %v2011_v6  ;;  %2168 = vmatmul.mubr.bf16.vlgmr.msra.gmra.mrb[40].mxu1 %v2011_v6 }
 0x5d7   :  { %2197 = vmatpush1.bf16.msra.mxu0 %v5127_v8  ;;  %2238 = vmatpush1.bf16.msra.mxu1 %v5130_v24 }
 0x5d8   :  { %2198 = vmatprep.subr.bf16.mxu0 %v5133_v25  ;;  %2239 = vmatprep.subr.bf16.mxu1 %v5136_v27 }
 0x5d9   :  { %2228 = vmatprep.mubr.bf16.mxu0 %v6356_v3  ;;  %2269 = vmatprep.mubr.bf16.mxu1 %v6356_v3 }
 0x5db   :  { %2199 = vmatpush1.bf16.msra.mxu0 %v5142_v30  ;;  %2240 = vmatpush1.bf16.msra.mxu1 %v5145_v33 }
 0x5dc   :  { %v3787_v0 = vpop.eup %3786  ;;  %2200 = vmatprep.subr.bf16.mxu0 %v6577_v54  ;;  %2241 = vmatprep.subr.bf16.mxu1 %v5151_v19 }
 0x5dd   :  { %v2184_v21 = vmul.f32 0.5, %v3787_v0  ;;  %v3789_v10 = vpop.eup %3788  ;;  %v6585_v0 = vld [vmem:[#allocation54_spill] sm:$0xff] }
 0x5de   :  { %v2186_v28 = vmul.f32 0.5, %v3789_v10  ;;  %v3791_v1 = vpop.eup %3790  ;;  %v6587_v10 = vld [vmem:[#allocation56_spill] sm:$0xff] }
 0x5df   :  { %v2185_v5 = vadd.f32 0.5, %v2184_v21  ;;  %2201 = vmatpush1.bf16.msra.mxu0 %v6578_v11  ;;  %2242 = vmatpush1.bf16.msra.mxu1 %v6579_v20  ;;  %v6586_v21 = vld [vmem:[#allocation55_spill] sm:$0xff] }
 0x5e0   :  { %2202 = vmatprep.subr.bf16.mxu0 %v6580_v23  ;;  %2243 = vmatprep.subr.bf16.mxu1 %v5163_v34  ;;  %v2187_v62 = vadd.f32 0.5, %v2186_v28  ;;  %v6589_v28 = vld [vmem:[#allocation58_spill] sm:$0xff] }
 0x5e1   :  { %v2191_v9 = vmul.f32 %v3791_v1, %v2185_v5  ;;  %v6588_v5 = vld [vmem:[#allocation57_spill] sm:$0xff] }
 0x5e2   :  { %v2190_v26 = vmul.f32 %v2187_v62, %v5179_v60  ;;  %v3793_v60 = vpop.eup %3792  ;;  %v6590_v62 = vld [vmem:[#allocation59_spill] sm:$0xff] }
 0x5e3   :  { %2203 = vmatpush1.bf16.msra.mxu0 %v5167_v41  ;;  %2244 = vmatpush1.bf16.msra.mxu1 %v6581_v63  ;;  %v2188_v1 = vmul.f32 0.5, %v3793_v60  ;;  %v5342_v60 = vld [vmem:[#allocation7 + $0x4] ss:$16 sps:$4 sm:$0xff]  }
 0x5e4   :  { %2204 = vmatprep.subr.bf16.mxu0 %v6582_v35  ;;  %2245 = vmatprep.subr.bf16.mxu1 %v6583_v22  ;;  %v5325_v6 = vadd.f32 %v2191_v9, %v2190_v26  ;;  %v6591_v9 = vld [vmem:[#allocation60_spill] sm:$0xff]  ;;  %v6592_v26 = vld [vmem:[#allocation61_spill] sm:$0xff]  ;;  %v6593_v22 = vld [vmem:[#allocation63_spill] sm:$0xff]  ;;  %6594 = vst [vmem:[#allocation20_spill] sm:$0xff] %v5342_v60 }
 0x5e6   :  { %3794 = vtanh.f32 %v5325_v6 }
 0x5e7   :  { %2205 = vmatpush1.bf16.msra.mxu0 %v6584_v12  ;;  %2246 = vmatpush1.bf16.msra.mxu1 %v6585_v0  ;;  %v2189_v12 = vadd.f32 0.5, %v2188_v1  ;;  %v5348_v1 = vld [vmem:[#allocation7] ss:$16 sps:$4 sm:$0xff]  }
 0x5e8   :  { %2206 = vmatprep.subr.bf16.mxu0 %v6586_v21  ;;  %2247 = vmatprep.subr.bf16.mxu1 %v6587_v10  ;;  %6596 = vst [vmem:[#allocation22_spill] sm:$0xff] %v5348_v1 }
 0x5eb   :  { %2207 = vmatpush1.bf16.msra.mxu0 %v6588_v5  ;;  %2248 = vmatpush1.bf16.msra.mxu1 %v6589_v28 }
 0x5ec   :  { %2208 = vmatprep.subr.bf16.mxu0 %v6590_v62  ;;  %2249 = vmatprep.subr.bf16.mxu1 %v6591_v9  ;;  %v5345_v9 = vld [vmem:[#allocation7 + $0xc] ss:$16 sps:$4 sm:$0xff]  }
 0x5ed   :  { %6595 = vst [vmem:[#allocation21_spill] sm:$0xff] %v5345_v9 }
 0x5ef   :  { %2209 = vmatpush1.bf16.msra.mxu0 %v6592_v26  ;;  %2250 = vmatpush1.bf16.msra.mxu1 %v6593_v22 }
 0x5f0   :  { %2210 = vmatprep.subr.bf16.mxu0 %v5212_v18  ;;  %2251 = vmatprep.subr.bf16.mxu1 %v5215_v29  ;;  %v3795_v10 = vpop.eup %3794 }
 0x5f1   :  { %v2194_v21 = vmul.f32 %v3795_v10, %v2189_v12  ;;  %v5351_v12 = vld [vmem:[#allocation7 + $0x8] ss:$16 sps:$4 sm:$0xff]   ;;  %v5354_v10 = vld [vmem:[#allocation7 + $0x24] ss:$16 sps:$4 sm:$0xff]  }
 0x5f2   :  { %6597 = vst [vmem:[#allocation23_spill] sm:$0xff] %v5351_v12  ;;  %6598 = vst [vmem:[#allocation24_spill] sm:$0xff] %v5354_v10 }
 0x5f3   :  { %2211 = vmatpush1.bf16.msra.mxu0 %v5218_v32  ;;  %2252 = vmatpush1.bf16.msra.mxu1 %v5221_v31  ;;  %v2195_v22 = vpack.c.bf16 %v2194_v21, %v2194_v21  ;;  %v5362_v21 = vld [vmem:[#allocation7 + $0x20] ss:$16 sps:$4 sm:$0xff]  }
 0x5f4   :  { %2300 = vmatprep.subr.bf16.mxu0 %v5342_v60  ;;  %2341 = vmatprep.subr.bf16.mxu1 %v5345_v9  ;;  %v5357_v60 = vld [vmem:[#allocation7 + $0x2c] ss:$16 sps:$4 sm:$0xff]   ;;  %6600 = vst [vmem:[#allocation40_spill] sm:$0xff] %v5362_v21  ;;  %v5377_v9 = vld [vmem:[#allocation7 + $0x48] ss:$16 sps:$4 sm:$0xff]  }
 0x5f5   :  { %6599 = vst [vmem:[#allocation70_spill] sm:$0xff] %v5357_v60 }
 0x5f6   :  { %2229 = vmatmul.mubr.bf16.vlgmr.msra.gmra.mrb[40].mxu0 %v2195_v22  ;;  %2270 = vmatmul.mubr.bf16.vlgmr.msra.gmra.mrb[40].mxu1 %v2195_v22 }
 0x5f7   :  { %2301 = vmatpush1.bf16.msra.mxu0 %v5348_v1  ;;  %2342 = vmatpush1.bf16.msra.mxu1 %v5351_v12  ;;  %v5365_v1 = vld [vmem:[#allocation7 + $0x28] ss:$16 sps:$4 sm:$0xff]   ;;  %v5368_v12 = vld [vmem:[#allocation7 + $0x44] ss:$16 sps:$4 sm:$0xff]  }
 0x5f8   :  { %2302 = vmatprep.subr.bf16.mxu0 %v5354_v10  ;;  %2343 = vmatprep.subr.bf16.mxu1 %v5357_v60  ;;  %v5371_v10 = vld [vmem:[#allocation7 + $0x4c] ss:$16 sps:$4 sm:$0xff]   ;;  %v5374_v60 = vld [vmem:[#allocation7 + $0x40] ss:$16 sps:$4 sm:$0xff]  }
 0x5f9   :  { %2332 = vmatprep.mubr.bf16.mxu0 %v6356_v3  ;;  %2373 = vmatprep.mubr.bf16.mxu1 %v6356_v3 }
 0x5fb   :  { %2303 = vmatpush1.bf16.msra.mxu0 %v5362_v21  ;;  %2344 = vmatpush1.bf16.msra.mxu1 %v5365_v1  ;;  %v5380_v21 = vld [vmem:[#allocation7 + $0x64] ss:$16 sps:$4 sm:$0xff]  }
 0x5fc   :  { %2304 = vmatprep.subr.bf16.mxu0 %v5368_v12  ;;  %2345 = vmatprep.subr.bf16.mxu1 %v5371_v10 }
 0x5ff   :  { %2305 = vmatpush1.bf16.msra.mxu0 %v5374_v60  ;;  %2346 = vmatpush1.bf16.msra.mxu1 %v5377_v9 }
 0x600   :  { %2306 = vmatprep.subr.bf16.mxu0 %v5380_v21  ;;  %2347 = vmatprep.subr.bf16.mxu1 %v4955_v56  ;;  %v6601_v56 = vld [vmem:[#allocation41_spill] sm:$0xff] }
 0x603   :  { %2307 = vmatpush1.bf16.msra.mxu0 %v4958_v36  ;;  %2348 = vmatpush1.bf16.msra.mxu1 %v4961_v37  ;;  %v6602_v36 = vld [vmem:[#allocation47_spill] sm:$0xff]  ;;  %v6603_v37 = vld [vmem:[#allocation48_spill] sm:$0xff] }
 0x604   :  { %2308 = vmatprep.subr.bf16.mxu0 %v4964_v38  ;;  %2349 = vmatprep.subr.bf16.mxu1 %v4967_v39  ;;  %v6604_v38 = vld [vmem:[#allocation51_spill] sm:$0xff]  ;;  %v6605_v39 = vld [vmem:[#allocation62_spill] sm:$0xff] }
 0x607   :  { %2309 = vmatpush1.bf16.msra.mxu0 %v4970_v40  ;;  %2350 = vmatpush1.bf16.msra.mxu1 %v4973_v42  ;;  %v6606_v40 = vld [vmem:[#allocation64_spill] sm:$0xff]  ;;  %v6607_v42 = vld [vmem:[#allocation65_spill] sm:$0xff] }
 0x608   :  { %2310 = vmatprep.subr.bf16.mxu0 %v4976_v44  ;;  %2351 = vmatprep.subr.bf16.mxu1 %v4979_v45  ;;  %v6608_v44 = vld [vmem:[#allocation66_spill] sm:$0xff]  ;;  %v6609_v45 = vld [vmem:[#allocation67_spill] sm:$0xff] }
 0x60b   :  { %2311 = vmatpush1.bf16.msra.mxu0 %v4982_v46  ;;  %2352 = vmatpush1.bf16.msra.mxu1 %v4985_v47  ;;  %v6610_v46 = vld [vmem:[#allocation68_spill] sm:$0xff]  ;;  %v6611_v47 = vld [vmem:[#allocation69_spill] sm:$0xff] }
 0x60c   :  { %2312 = vmatprep.subr.bf16.mxu0 %v4988_v48  ;;  %2353 = vmatprep.subr.bf16.mxu1 %v4991_v57  ;;  %v6612_v48 = vld [vmem:[#allocation25_spill] sm:$0xff]  ;;  %v6613_v57 = vld [vmem:[#allocation26_spill] sm:$0xff] }
 0x60f   :  { %2313 = vmatpush1.bf16.msra.mxu0 %v4994_v4  ;;  %2354 = vmatpush1.bf16.msra.mxu1 %v4997_v49  ;;  %v6614_v4 = vld [vmem:[#allocation27_spill] sm:$0xff]  ;;  %v6615_v49 = vld [vmem:[#allocation28_spill] sm:$0xff] }
 0x610   :  { %2314 = vmatprep.subr.bf16.mxu0 %v5000_v50  ;;  %2355 = vmatprep.subr.bf16.mxu1 %v5003_v52  ;;  %v6616_v50 = vld [vmem:[#allocation29_spill] sm:$0xff]  ;;  %v6617_v52 = vld [vmem:[#allocation30_spill] sm:$0xff] }
 0x613   :  { %2315 = vmatpush1.bf16.msra.mxu0 %v5006_v53  ;;  %2356 = vmatpush1.bf16.msra.mxu1 %v5009_v13  ;;  %v6618_v53 = vld [vmem:[#allocation31_spill] sm:$0xff]  ;;  %v6619_v13 = vld [vmem:[#allocation32_spill] sm:$0xff] }
 0x614   :  { %2382 = vmatprep.subr.bf16.mxu0 %v5012_v14  ;;  %2423 = vmatprep.subr.bf16.mxu1 %v5015_v15  ;;  %v6620_v14 = vld [vmem:[#allocation33_spill] sm:$0xff]  ;;  %v6621_v15 = vld [vmem:[#allocation34_spill] sm:$0xff] }
 0x616   :  { %2333 = vmatmul.mubr.bf16.vlgmr.msra.gmra.mrb[44].mxu0 %v2195_v22  ;;  %2374 = vmatmul.mubr.bf16.vlgmr.msra.gmra.mrb[44].mxu1 %v2195_v22  ;;  %v6624_v22 = vld [vmem:[#allocation37_spill] sm:$0xff] }
 0x617   :  { %2383 = vmatpush1.bf16.msra.mxu0 %v5018_v16  ;;  %2424 = vmatpush1.bf16.msra.mxu1 %v5021_v17  ;;  %v6622_v16 = vld [vmem:[#allocation35_spill] sm:$0xff]  ;;  %v6623_v17 = vld [vmem:[#allocation36_spill] sm:$0xff] }
 0x618   :  { %2384 = vmatprep.subr.bf16.mxu0 %v6601_v56  ;;  %2425 = vmatprep.subr.bf16.mxu1 %v6602_v36  ;;  %v6625_v56 = vld [vmem:[#allocation38_spill] sm:$0xff]  ;;  %v6626_v36 = vld [vmem:[#allocation39_spill] sm:$0xff] }
 0x619   :  { %2414 = vmatprep.mubr.bf16.mxu0 %v6356_v3  ;;  %2455 = vmatprep.mubr.bf16.mxu1 %v6356_v3 }
 0x61b   :  { %2385 = vmatpush1.bf16.msra.mxu0 %v6603_v37  ;;  %2426 = vmatpush1.bf16.msra.mxu1 %v6604_v38  ;;  %v6627_v37 = vld [vmem:[#allocation18_spill] sm:$0xff] }
 0x61c   :  { %2386 = vmatprep.subr.bf16.mxu0 %v6605_v39  ;;  %2427 = vmatprep.subr.bf16.mxu1 %v6606_v40  ;;  %v6628_v38 = vld [vmem:[#allocation42_spill] sm:$0xff]  ;;  %v6629_v39 = vld [vmem:[#allocation43_spill] sm:$0xff] }
 0x61d   :  { %v6630_v40 = vld [vmem:[#allocation71_spill] sm:$0xff] }
 0x61f   :  { %2387 = vmatpush1.bf16.msra.mxu0 %v6607_v42  ;;  %2428 = vmatpush1.bf16.msra.mxu1 %v6608_v44 }
 0x620   :  { %2388 = vmatprep.subr.bf16.mxu0 %v6609_v45  ;;  %2429 = vmatprep.subr.bf16.mxu1 %v6610_v46  ;;  %v6631_v45 = vld [vmem:[#allocation17_spill] sm:$0xff] }
 0x623   :  { %2389 = vmatpush1.bf16.msra.mxu0 %v6611_v47  ;;  %2430 = vmatpush1.bf16.msra.mxu1 %v6612_v48 }
 0x624   :  { %2390 = vmatprep.subr.bf16.mxu0 %v6613_v57  ;;  %2431 = vmatprep.subr.bf16.mxu1 %v6614_v4 }
 0x627   :  { %2391 = vmatpush1.bf16.msra.mxu0 %v6615_v49  ;;  %2432 = vmatpush1.bf16.msra.mxu1 %v6616_v50 }
 0x628   :  { %2392 = vmatprep.subr.bf16.mxu0 %v6617_v52  ;;  %2433 = vmatprep.subr.bf16.mxu1 %v6618_v53 }
 0x62b   :  { %2393 = vmatpush1.bf16.msra.mxu0 %v6619_v13  ;;  %2434 = vmatpush1.bf16.msra.mxu1 %v6620_v14 }
 0x62c   :  { %2394 = vmatprep.subr.bf16.mxu0 %v6621_v15  ;;  %2435 = vmatprep.subr.bf16.mxu1 %v6622_v16 }
 0x62f   :  { %2395 = vmatpush1.bf16.msra.mxu0 %v6623_v17  ;;  %2436 = vmatpush1.bf16.msra.mxu1 %v6624_v22 }
 0x630   :  { %2396 = vmatprep.subr.bf16.mxu0 %v6625_v56  ;;  %2437 = vmatprep.subr.bf16.mxu1 %v6626_v36 }
 0x633   :  { %2397 = vmatpush1.bf16.msra.mxu0 %v6627_v37  ;;  %2438 = vmatpush1.bf16.msra.mxu1 %v6628_v38 }
 0x634   :  { %2484 = vmatprep.subr.bf16.mxu0 %v6629_v39  ;;  %2525 = vmatprep.subr.bf16.mxu1 %v6630_v40 }
 0x6c9   :  { %v2230_v42 = vpop.f32.mrb[40].mxu0  ;;  %v2271_v44 = vpop.f32.mrb[40].mxu1 }
 0x6ca   :  { %v2231_v46 = vadd.f32 %v2230_v42, %v6631_v45  ;;  %v2232_v47 = vpop.f32.mrb[41].mxu0  ;;  %v2273_v48 = vpop.f32.mrb[41].mxu1  ;;  %v2272_v13 = vadd.f32 %v2271_v44, %v6471_v51 }
 0x6cb   :  { %v2233_v57 = vadd.f32 %v2232_v47, %v4739_v2  ;;  %v2234_v4 = vpop.f32.mrb[42].mxu0  ;;  %v2275_v49 = vpop.f32.mrb[42].mxu1  ;;  %v2274_v50 = vadd.f32 %v2273_v48, %v4743_v58 }
 0x6cc   :  { %3796 = vtanh.f32 %v2231_v46  ;;  %v2235_v52 = vpop.f32.mrb[43].mxu0  ;;  %v2276_v53 = vpop.f32.mrb[43].mxu1 }
 0x6cd   :  { %3798 = vtanh.f32 %v2233_v57 }
 0x6ce   :  { %3800 = vtanh.f32 %v2274_v50 }
 0x6cf   :  { %3802 = vtanh.f32 %v2272_v13 }
 0x6d6   :  { %v3797_v14 = vpop.eup %3796 }
 0x6d7   :  { %v2286_v15 = vmul.f32 0.5, %v3797_v14  ;;  %v3799_v16 = vpop.eup %3798 }
 0x6d8   :  { %v2288_v22 = vmul.f32 0.5, %v3799_v16  ;;  %v3801_v56 = vpop.eup %3800 }
 0x6d9   :  { %v2287_v17 = vadd.f32 0.5, %v2286_v15  ;;  %v3803_v40 = vpop.eup %3802 }
 0x6da   :  { %v2289_v36 = vadd.f32 0.5, %v2288_v22  ;;  %v2290_v42 = vmul.f32 0.5, %v3803_v40  ;;  %v5504_v40 = vld [vmem:[#allocation7 + $0x60] ss:$16 sps:$4 sm:$0xff]  }
 0x6db   :  { %v2293_v37 = vmul.f32 %v3801_v56, %v2287_v17 }
 0x6dc   :  { %v2292_v38 = vmul.f32 %v2289_v36, %v5299_v7  ;;  %v2291_v44 = vadd.f32 0.5, %v2290_v42  ;;  %v5507_v42 = vld [vmem:[#allocation7 + $0x68] ss:$16 sps:$4 sm:$0xff]  }
 0x6de   :  { %v5443_v39 = vadd.f32 %v2293_v37, %v2292_v38  ;;  %v6641_v38 = vld [vmem:[#allocation23_spill] sm:$0xff] }
 0x6e0   :  { %3804 = vtanh.f32 %v5443_v39 }
 0x6e9   :  { %v2334_v46 = vpop.f32.mrb[44].mxu0  ;;  %v2375_v47 = vpop.f32.mrb[44].mxu1 }
 0x6ea   :  { %v2464_v48 = vadd.f32 %v2334_v46, %v6416_v55  ;;  %v2336_v57 = vpop.f32.mrb[45].mxu0  ;;  %v2377_v4 = vpop.f32.mrb[45].mxu1  ;;  %v2466_v17 = vadd.f32 %v2375_v47, %v6474_v43  ;;  %v5510_v46 = vld [vmem:[#allocation7 + $0x84] ss:$16 sps:$4 sm:$0xff]   ;;  %v5513_v47 = vld [vmem:[#allocation7 + $0x8c] ss:$16 sps:$4 sm:$0xff]  }
 0x6eb   :  { %v3805_v49 = vpop.eup %3804  ;;  %v2465_v50 = vadd.f32 %v2336_v57, %v4646_v61  ;;  %v2338_v52 = vpop.f32.mrb[46].mxu0  ;;  %v2467_v7 = vadd.f32 %v2377_v4, %v4648_v59  ;;  %v5522_v57 = vld [vmem:[#allocation7 + $0xa4] ss:$16 sps:$4 sm:$0xff]   ;;  %v5525_v4 = vld [vmem:[#allocation7 + $0xac] ss:$16 sps:$4 sm:$0xff]  }
 0x6ec   :  { %v2379_v53 = vpop.f32.mrb[46].mxu1  ;;  %3806 = vtanh.f32 %v2464_v48  ;;  %v2339_v13 = vpop.f32.mrb[47].mxu0  ;;  %v2296_v15 = vmul.f32 %v3805_v49, %v2291_v44  ;;  %v5516_v44 = vld [vmem:[#allocation7 + $0x80] ss:$16 sps:$4 sm:$0xff]   ;;  %v5519_v48 = vld [vmem:[#allocation7 + $0x88] ss:$16 sps:$4 sm:$0xff]  }
 0x6ed   :  { %v2380_v14 = vpop.f32.mrb[47].mxu1  ;;  %3808 = vtanh.f32 %v2465_v50  ;;  %v5528_v49 = vld [vmem:[#allocation7 + $0xa0] ss:$16 sps:$4 sm:$0xff]   ;;  %v5531_v50 = vld [vmem:[#allocation7 + $0xa8] ss:$16 sps:$4 sm:$0xff]  }
 0x6ee   :  { %2298 = vst [vmem:[#allocation2 + $0x8] sm:$0x3] %v2296_v15  ;;  %v2299_v16 = vpack.c.bf16 %v2296_v15, %v2296_v15  ;;  %3810 = vtanh.f32 %v2467_v7  ;;  %v5534_v52 = vld [vmem:[#allocation7 + $0xc4] ss:$16 sps:$4 sm:$0xff]   ;;  %v5537_v53 = vld [vmem:[#allocation7 + $0xcc] ss:$16 sps:$4 sm:$0xff]  }
 0x6ef   :  { %3812 = vtanh.f32 %v2466_v17  ;;  %v5540_v7 = vld [vmem:[#allocation7 + $0xc0] ss:$16 sps:$4 sm:$0xff]   ;;  %v5543_v13 = vld [vmem:[#allocation7 + $0xc8] ss:$16 sps:$4 sm:$0xff]   ;;  %v5546_v14 = vld [vmem:[#allocation7 + $0xe4] ss:$16 sps:$4 sm:$0xff]  }
 0x6f0   :  { %2415 = vmatmul.mubr.bf16.vlgmr.msra.gmra.mrb[48].mxu0 %v2299_v16  ;;  %2456 = vmatmul.mubr.bf16.vlgmr.msra.gmra.mrb[48].mxu1 %v2299_v16  ;;  %v5549_v15 = vld [vmem:[#allocation7 + $0xec] ss:$16 sps:$4 sm:$0xff]   ;;  %v5552_v16 = vld [vmem:[#allocation7 + $0xe0] ss:$16 sps:$4 sm:$0xff]   ;;  %v5555_v17 = vld [vmem:[#allocation7 + $0xe8] ss:$16 sps:$4 sm:$0xff]  }
 0x6f1   :  { %2485 = vmatpush1.bf16.msra.mxu0 %v5127_v8  ;;  %2526 = vmatpush1.bf16.msra.mxu1 %v5130_v24 }
 0x6f2   :  { %2486 = vmatprep.subr.bf16.mxu0 %v5133_v25  ;;  %2527 = vmatprep.subr.bf16.mxu1 %v5136_v27 }
 0x6f3   :  { %2516 = vmatprep.mubr.bf16.mxu0 %v6356_v3  ;;  %2557 = vmatprep.mubr.bf16.mxu1 %v6356_v3 }
 0x6f5   :  { %2487 = vmatpush1.bf16.msra.mxu0 %v5142_v30  ;;  %2528 = vmatpush1.bf16.msra.mxu1 %v5145_v33 }
 0x6f6   :  { %v3807_v22 = vpop.eup %3806  ;;  %2488 = vmatprep.subr.bf16.mxu0 %v6577_v54  ;;  %2529 = vmatprep.subr.bf16.mxu1 %v5151_v19  ;;  %v6632_v19 = vld [vmem:[#allocation52_spill] sm:$0xff] }
 0x6f7   :  { %v2472_v8 = vmul.f32 0.5, %v3807_v22  ;;  %v3809_v24 = vpop.eup %3808  ;;  %v5558_v22 = vld [vmem:[#allocation11 + $0x4] ss:$16 sps:$4 sm:$0xff]  }
 0x6f8   :  { %v2474_v27 = vmul.f32 0.5, %v3809_v24  ;;  %v3811_v56 = vpop.eup %3810  ;;  %v5564_v24 = vld [vmem:[#allocation11] ss:$16 sps:$4 sm:$0xff]  }
 0x6f9   :  { %v2473_v25 = vadd.f32 0.5, %v2472_v8  ;;  %2489 = vmatpush1.bf16.msra.mxu0 %v6578_v11  ;;  %2530 = vmatpush1.bf16.msra.mxu1 %v6579_v20  ;;  %v6633_v20 = vld [vmem:[#allocation53_spill] sm:$0xff]  ;;  %v5561_v8 = vld [vmem:[#allocation11 + $0xc] ss:$16 sps:$4 sm:$0xff]  }
 0x6fa   :  { %2490 = vmatprep.subr.bf16.mxu0 %v6580_v23  ;;  %2531 = vmatprep.subr.bf16.mxu1 %v5163_v34  ;;  %v2475_v30 = vadd.f32 0.5, %v2474_v27  ;;  %v6634_v34 = vld [vmem:[#allocation55_spill] sm:$0xff]  ;;  %v6635_v23 = vld [vmem:[#allocation56_spill] sm:$0xff] }
 0x6fb   :  { %v2479_v33 = vmul.f32 %v3811_v56, %v2473_v25  ;;  %v5567_v25 = vld [vmem:[#allocation11 + $0x8] ss:$16 sps:$4 sm:$0xff]   ;;  %v5570_v27 = vld [vmem:[#allocation11 + $0x24] ss:$16 sps:$4 sm:$0xff]   ;;  %v5573_v56 = vld [vmem:[#allocation11 + $0x2c] ss:$16 sps:$4 sm:$0xff]  }
 0x6fc   :  { %v2478_v54 = vmul.f32 %v2475_v30, %v5325_v6  ;;  %v3813_v6 = vpop.eup %3812  ;;  %6645 = vst [vmem:[#allocation44_spill] sm:$0xff] %v5570_v27  ;;  %6646 = vst [vmem:[#allocation45_spill] sm:$0xff] %v5573_v56  ;;  %v5578_v30 = vld [vmem:[#allocation11 + $0x20] ss:$16 sps:$4 sm:$0xff]  }
 0x6fd   :  { %2491 = vmatpush1.bf16.msra.mxu0 %v5167_v41  ;;  %2532 = vmatpush1.bf16.msra.mxu1 %v6581_v63  ;;  %v2476_v41 = vmul.f32 0.5, %v3813_v6  ;;  %v6636_v63 = vld [vmem:[#allocation60_spill] sm:$0xff]  ;;  %6647 = vst [vmem:[#allocation46_spill] sm:$0xff] %v5578_v30 }
 0x6fe   :  { %2492 = vmatprep.subr.bf16.mxu0 %v6582_v35  ;;  %2533 = vmatprep.subr.bf16.mxu1 %v6632_v19  ;;  %v5469_v11 = vadd.f32 %v2479_v33, %v2478_v54  ;;  %v6637_v35 = vld [vmem:[#allocation63_spill] sm:$0xff]  ;;  %v5581_v33 = vld [vmem:[#allocation11 + $0x28] ss:$16 sps:$4 sm:$0xff]   ;;  %v5587_v19 = vld [vmem:[#allocation11 + $0x4c] ss:$16 sps:$4 sm:$0xff]  }
 0x6ff   :  { %v2477_v36 = vadd.f32 0.5, %v2476_v41  ;;  %6648 = vst [vmem:[#allocation49_spill] sm:$0xff] %v5581_v33  ;;  %v5584_v54 = vld [vmem:[#allocation11 + $0x44] ss:$16 sps:$4 sm:$0xff]   ;;  %6650 = vst [vmem:[#allocation19_spill] sm:$0xff] %v5587_v19 }
 0x700   :  { %3814 = vtanh.f32 %v5469_v11  ;;  %6649 = vst [vmem:[#allocation50_spill] sm:$0xff] %v5584_v54  ;;  %v5599_v6 = vld [vmem:[#allocation11 + $0x6c] ss:$16 sps:$4 sm:$0xff]   ;;  %v5602_v41 = vld [vmem:[#allocation11 + $0x60] ss:$16 sps:$4 sm:$0xff]  }
 0x701   :  { %2493 = vmatpush1.bf16.msra.mxu0 %v6633_v20  ;;  %2534 = vmatpush1.bf16.msra.mxu1 %v6585_v0  ;;  %v5590_v20 = vld [vmem:[#allocation11 + $0x40] ss:$16 sps:$4 sm:$0xff]   ;;  %6654 = vst [vmem:[#allocation59_spill] sm:$0xff] %v5599_v6  ;;  %6655 = vst [vmem:[#allocation61_spill] sm:$0xff] %v5602_v41 }
 0x702   :  { %2494 = vmatprep.subr.bf16.mxu0 %v6634_v34  ;;  %2535 = vmatprep.subr.bf16.mxu1 %v6635_v23  ;;  %6651 = vst [vmem:[#allocation54_spill] sm:$0xff] %v5590_v20  ;;  %v5593_v34 = vld [vmem:[#allocation11 + $0x48] ss:$16 sps:$4 sm:$0xff]   ;;  %v5596_v23 = vld [vmem:[#allocation11 + $0x64] ss:$16 sps:$4 sm:$0xff]  }
 0x703   :  { %6652 = vst [vmem:[#allocation57_spill] sm:$0xff] %v5593_v34  ;;  %6653 = vst [vmem:[#allocation58_spill] sm:$0xff] %v5596_v23 }
 0x705   :  { %2495 = vmatpush1.bf16.msra.mxu0 %v6588_v5  ;;  %2536 = vmatpush1.bf16.msra.mxu1 %v6589_v28  ;;  %v6638_v28 = vld [vmem:[#allocation20_spill] sm:$0xff] }
 0x706   :  { %2496 = vmatprep.subr.bf16.mxu0 %v6590_v62  ;;  %2537 = vmatprep.subr.bf16.mxu1 %v6636_v63  ;;  %v6639_v62 = vld [vmem:[#allocation21_spill] sm:$0xff]  ;;  %v5605_v63 = vld [vmem:[#allocation11 + $0x68] ss:$16 sps:$4 sm:$0xff]  }
 0x707   :  { %6656 = vst [vmem:[#allocation41_spill] sm:$0xff] %v5605_v63 }
 0x709   :  { %2497 = vmatpush1.bf16.msra.mxu0 %v6592_v26  ;;  %2538 = vmatpush1.bf16.msra.mxu1 %v6637_v35  ;;  %v6640_v26 = vld [vmem:[#allocation22_spill] sm:$0xff]  ;;  %v5608_v35 = vld [vmem:[#allocation11 + $0x84] ss:$16 sps:$4 sm:$0xff]  }
 0x70a   :  { %2498 = vmatprep.subr.bf16.mxu0 %v5212_v18  ;;  %2539 = vmatprep.subr.bf16.mxu1 %v5215_v29  ;;  %v3815_v0 = vpop.eup %3814  ;;  %v6642_v18 = vld [vmem:[#allocation24_spill] sm:$0xff]  ;;  %v6643_v29 = vld [vmem:[#allocation70_spill] sm:$0xff]  ;;  %6657 = vst [vmem:[#allocation47_spill] sm:$0xff] %v5608_v35 }
 0x70b   :  { %v2482_v37 = vmul.f32 %v3815_v0, %v2477_v36  ;;  %v5611_v36 = vld [vmem:[#allocation11 + $0x8c] ss:$16 sps:$4 sm:$0xff]   ;;  %v5614_v0 = vld [vmem:[#allocation11 + $0x80] ss:$16 sps:$4 sm:$0xff]  }
 0x70c   :  { %6658 = vst [vmem:[#allocation48_spill] sm:$0xff] %v5611_v36  ;;  %6659 = vst [vmem:[#allocation51_spill] sm:$0xff] %v5614_v0 }
 0x70d   :  { %2499 = vmatpush1.bf16.msra.mxu0 %v5218_v32  ;;  %2540 = vmatpush1.bf16.msra.mxu1 %v5221_v31  ;;  %v2483_v5 = vpack.c.bf16 %v2482_v37, %v2482_v37  ;;  %v6644_v32 = vld [vmem:[#allocation40_spill] sm:$0xff] }
 0x70e   :  { %2588 = vmatprep.subr.bf16.mxu0 %v6638_v28  ;;  %2629 = vmatprep.subr.bf16.mxu1 %v6639_v62  ;;  %v5501_v31 = vld [vmem:[#allocation7 + $0x6c] ss:$16 sps:$4 sm:$0xff]  }
 0x70f   :  { %v5617_v37 = vld [vmem:[#allocation11 + $0x88] ss:$16 sps:$4 sm:$0xff]  }
 0x710   :  { %2517 = vmatmul.mubr.bf16.vlgmr.msra.gmra.mrb[48].mxu0 %v2483_v5  ;;  %2558 = vmatmul.mubr.bf16.vlgmr.msra.gmra.mrb[48].mxu1 %v2483_v5  ;;  %6660 = vst [vmem:[#allocation62_spill] sm:$0xff] %v5617_v37 }
 0x711   :  { %2589 = vmatpush1.bf16.msra.mxu0 %v6640_v26  ;;  %2630 = vmatpush1.bf16.msra.mxu1 %v6641_v38 }
 0x712   :  { %2590 = vmatprep.subr.bf16.mxu0 %v6642_v18  ;;  %2631 = vmatprep.subr.bf16.mxu1 %v6643_v29 }
 0x713   :  { %2620 = vmatprep.mubr.bf16.mxu0 %v6356_v3  ;;  %2661 = vmatprep.mubr.bf16.mxu1 %v6356_v3 }
 0x715   :  { %2591 = vmatpush1.bf16.msra.mxu0 %v6644_v32  ;;  %2632 = vmatpush1.bf16.msra.mxu1 %v5365_v1 }
 0x716   :  { %2592 = vmatprep.subr.bf16.mxu0 %v5368_v12  ;;  %2633 = vmatprep.subr.bf16.mxu1 %v5371_v10 }
 0x719   :  { %2593 = vmatpush1.bf16.msra.mxu0 %v5374_v60  ;;  %2634 = vmatpush1.bf16.msra.mxu1 %v5377_v9 }
 0x71a   :  { %2594 = vmatprep.subr.bf16.mxu0 %v5380_v21  ;;  %2635 = vmatprep.subr.bf16.mxu1 %v5501_v31 }
 0x71d   :  { %2595 = vmatpush1.bf16.msra.mxu0 %v5504_v40  ;;  %2636 = vmatpush1.bf16.msra.mxu1 %v5507_v42 }
 0x71e   :  { %2596 = vmatprep.subr.bf16.mxu0 %v5510_v46  ;;  %2637 = vmatprep.subr.bf16.mxu1 %v5513_v47 }
 0x721   :  { %2597 = vmatpush1.bf16.msra.mxu0 %v5516_v44  ;;  %2638 = vmatpush1.bf16.msra.mxu1 %v5519_v48 }
 0x722   :  { %2598 = vmatprep.subr.bf16.mxu0 %v5522_v57  ;;  %2639 = vmatprep.subr.bf16.mxu1 %v5525_v4 }
 0x725   :  { %2599 = vmatpush1.bf16.msra.mxu0 %v5528_v49  ;;  %2640 = vmatpush1.bf16.msra.mxu1 %v5531_v50 }
 0x726   :  { %2600 = vmatprep.subr.bf16.mxu0 %v5534_v52  ;;  %2641 = vmatprep.subr.bf16.mxu1 %v5537_v53 }
 0x729   :  { %2601 = vmatpush1.bf16.msra.mxu0 %v5540_v7  ;;  %2642 = vmatpush1.bf16.msra.mxu1 %v5543_v13 }
 0x72a   :  { %2602 = vmatprep.subr.bf16.mxu0 %v5546_v14  ;;  %2643 = vmatprep.subr.bf16.mxu1 %v5549_v15 }
 0x72d   :  { %2603 = vmatpush1.bf16.msra.mxu0 %v5552_v16  ;;  %2644 = vmatpush1.bf16.msra.mxu1 %v5555_v17 }
 0x72e   :  { %2670 = vmatprep.subr.bf16.mxu0 %v5558_v22  ;;  %2711 = vmatprep.subr.bf16.mxu1 %v5561_v8 }
 0x730   :  { %2621 = vmatmul.mubr.bf16.vlgmr.msra.gmra.mrb[52].mxu0 %v2483_v5  ;;  %2662 = vmatmul.mubr.bf16.vlgmr.msra.gmra.mrb[52].mxu1 %v2483_v5  ;;  %v5620_v5 = vld [vmem:[#allocation11 + $0xa4] ss:$16 sps:$4 sm:$0xff]  }
 0x731   :  { %2671 = vmatpush1.bf16.msra.mxu0 %v5564_v24  ;;  %2712 = vmatpush1.bf16.msra.mxu1 %v5567_v25  ;;  %6661 = vst [vmem:[#allocation64_spill] sm:$0xff] %v5620_v5 }
 0x732   :  { %2672 = vmatprep.subr.bf16.mxu0 %v5570_v27  ;;  %2713 = vmatprep.subr.bf16.mxu1 %v5573_v56 }
 0x733   :  { %2702 = vmatprep.mubr.bf16.mxu0 %v6356_v3  ;;  %2743 = vmatprep.mubr.bf16.mxu1 %v6356_v3 }
 0x735   :  { %2673 = vmatpush1.bf16.msra.mxu0 %v5578_v30  ;;  %2714 = vmatpush1.bf16.msra.mxu1 %v5581_v33 }
 0x736   :  { %2674 = vmatprep.subr.bf16.mxu0 %v5584_v54  ;;  %2715 = vmatprep.subr.bf16.mxu1 %v5587_v19 }
 0x739   :  { %2675 = vmatpush1.bf16.msra.mxu0 %v5590_v20  ;;  %2716 = vmatpush1.bf16.msra.mxu1 %v5593_v34 }
 0x73a   :  { %2676 = vmatprep.subr.bf16.mxu0 %v5596_v23  ;;  %2717 = vmatprep.subr.bf16.mxu1 %v5599_v6 }
 0x73d   :  { %2677 = vmatpush1.bf16.msra.mxu0 %v5602_v41  ;;  %2718 = vmatpush1.bf16.msra.mxu1 %v5605_v63  ;;  %v5623_v63 = vld [vmem:[#allocation11 + $0xac] ss:$16 sps:$4 sm:$0xff]  }
 0x73e   :  { %2678 = vmatprep.subr.bf16.mxu0 %v5608_v35  ;;  %2719 = vmatprep.subr.bf16.mxu1 %v5611_v36  ;;  %6662 = vst [vmem:[#allocation65_spill] sm:$0xff] %v5623_v63  ;;  %v5626_v35 = vld [vmem:[#allocation11 + $0xa0] ss:$16 sps:$4 sm:$0xff]   ;;  %v5629_v36 = vld [vmem:[#allocation11 + $0xa8] ss:$16 sps:$4 sm:$0xff]  }
 0x73f   :  { %6663 = vst [vmem:[#allocation66_spill] sm:$0xff] %v5626_v35  ;;  %6664 = vst [vmem:[#allocation67_spill] sm:$0xff] %v5629_v36 }
 0x741   :  { %2679 = vmatpush1.bf16.msra.mxu0 %v5614_v0  ;;  %2720 = vmatpush1.bf16.msra.mxu1 %v5617_v37  ;;  %v5632_v0 = vld [vmem:[#allocation11 + $0xc4] ss:$16 sps:$4 sm:$0xff]   ;;  %v5635_v37 = vld [vmem:[#allocation11 + $0xcc] ss:$16 sps:$4 sm:$0xff]  }
 0x742   :  { %2680 = vmatprep.subr.bf16.mxu0 %v5620_v5  ;;  %2721 = vmatprep.subr.bf16.mxu1 %v5623_v63  ;;  %6665 = vst [vmem:[#allocation68_spill] sm:$0xff] %v5632_v0  ;;  %6666 = vst [vmem:[#allocation69_spill] sm:$0xff] %v5635_v37  ;;  %v5638_v5 = vld [vmem:[#allocation11 + $0xc0] ss:$16 sps:$4 sm:$0xff]   ;;  %v5641_v63 = vld [vmem:[#allocation11 + $0xc8] ss:$16 sps:$4 sm:$0xff]  }
 0x743   :  { %6667 = vst [vmem:[#allocation25_spill] sm:$0xff] %v5638_v5  ;;  %6668 = vst [vmem:[#allocation26_spill] sm:$0xff] %v5641_v63 }
 0x745   :  { %2681 = vmatpush1.bf16.msra.mxu0 %v5626_v35  ;;  %2722 = vmatpush1.bf16.msra.mxu1 %v5629_v36  ;;  %v5644_v35 = vld [vmem:[#allocation11 + $0xe4] ss:$16 sps:$4 sm:$0xff]   ;;  %v5647_v36 = vld [vmem:[#allocation11 + $0xec] ss:$16 sps:$4 sm:$0xff]  }
 0x746   :  { %2682 = vmatprep.subr.bf16.mxu0 %v5632_v0  ;;  %2723 = vmatprep.subr.bf16.mxu1 %v5635_v37  ;;  %6669 = vst [vmem:[#allocation27_spill] sm:$0xff] %v5644_v35  ;;  %6670 = vst [vmem:[#allocation28_spill] sm:$0xff] %v5647_v36  ;;  %v5650_v0 = vld [vmem:[#allocation11 + $0xe0] ss:$16 sps:$4 sm:$0xff]   ;;  %v5653_v37 = vld [vmem:[#allocation11 + $0xe8] ss:$16 sps:$4 sm:$0xff]  }
 0x747   :  { %6671 = vst [vmem:[#allocation29_spill] sm:$0xff] %v5650_v0  ;;  %6672 = vst [vmem:[#allocation30_spill] sm:$0xff] %v5653_v37 }
 0x749   :  { %2683 = vmatpush1.bf16.msra.mxu0 %v5638_v5  ;;  %2724 = vmatpush1.bf16.msra.mxu1 %v5641_v63  ;;  %v5656_v5 = vld [vmem:[#allocation10 + $0x4] ss:$16 sps:$4 sm:$0xff]   ;;  %v5659_v63 = vld [vmem:[#allocation10 + $0xc] ss:$16 sps:$4 sm:$0xff]  }
 0x74a   :  { %2684 = vmatprep.subr.bf16.mxu0 %v5644_v35  ;;  %2725 = vmatprep.subr.bf16.mxu1 %v5647_v36  ;;  %6673 = vst [vmem:[#allocation31_spill] sm:$0xff] %v5656_v5  ;;  %6674 = vst [vmem:[#allocation32_spill] sm:$0xff] %v5659_v63 }
 0x74d   :  { %2685 = vmatpush1.bf16.msra.mxu0 %v5650_v0  ;;  %2726 = vmatpush1.bf16.msra.mxu1 %v5653_v37 }
 0x74e   :  { %2772 = vmatprep.subr.bf16.mxu0 %v5656_v5  ;;  %2813 = vmatprep.subr.bf16.mxu1 %v5659_v63 }
 0x7e3   :  { %v2518_v35 = vpop.f32.mrb[48].mxu0  ;;  %v2559_v41 = vpop.f32.mrb[48].mxu1 }
 0x7e4   :  { %v2519_v36 = vadd.f32 %v2518_v35, %v6631_v45  ;;  %v2520_v6 = vpop.f32.mrb[49].mxu0  ;;  %v2561_v23 = vpop.f32.mrb[49].mxu1  ;;  %v2560_v5 = vadd.f32 %v2559_v41, %v6471_v51 }
 0x7e5   :  { %v2521_v0 = vadd.f32 %v2520_v6, %v4739_v2  ;;  %v2522_v34 = vpop.f32.mrb[50].mxu0  ;;  %v2563_v20 = vpop.f32.mrb[50].mxu1  ;;  %v2562_v37 = vadd.f32 %v2561_v23, %v4743_v58 }
 0x7e6   :  { %3816 = vtanh.f32 %v2519_v36  ;;  %v2523_v19 = vpop.f32.mrb[51].mxu0  ;;  %v2564_v54 = vpop.f32.mrb[51].mxu1 }
 0x7e7   :  { %3818 = vtanh.f32 %v2521_v0 }
 0x7e8   :  { %3820 = vtanh.f32 %v2562_v37 }
 0x7e9   :  { %3822 = vtanh.f32 %v2560_v5 }
 0x7f0   :  { %v3817_v63 = vpop.eup %3816 }
 0x7f1   :  { %v2574_v33 = vmul.f32 0.5, %v3817_v63  ;;  %v3819_v30 = vpop.eup %3818 }
 0x7f2   :  { %v2576_v35 = vmul.f32 0.5, %v3819_v30  ;;  %v3821_v45 = vpop.eup %3820 }
 0x7f3   :  { %v2575_v56 = vadd.f32 0.5, %v2574_v33  ;;  %v3823_v54 = vpop.eup %3822 }
 0x7f4   :  { %v2577_v27 = vadd.f32 0.5, %v2576_v35  ;;  %v2578_v19 = vmul.f32 0.5, %v3823_v54  ;;  %v5676_v54 = vld [vmem:[#allocation10 + $0x8] ss:$16 sps:$4 sm:$0xff]  }
 0x7f5   :  { %v2581_v6 = vmul.f32 %v3821_v45, %v2575_v56 }
 0x7f6   :  { %v2580_v20 = vmul.f32 %v2577_v27, %v5443_v39  ;;  %v2579_v41 = vadd.f32 0.5, %v2578_v19  ;;  %v5679_v19 = vld [vmem:[#allocation10 + $0x24] ss:$16 sps:$4 sm:$0xff]  }
 0x7f8   :  { %v5667_v34 = vadd.f32 %v2581_v6, %v2580_v20  ;;  %v5673_v20 = vld [vmem:[#allocation10] ss:$16 sps:$4 sm:$0xff]  }
 0x7fa   :  { %3824 = vtanh.f32 %v5667_v34 }
 0x803   :  { %v2622_v23 = vpop.f32.mrb[52].mxu0  ;;  %v2663_v36 = vpop.f32.mrb[52].mxu1 }
 0x804   :  { %v2752_v63 = vadd.f32 %v2622_v23, %v6416_v55  ;;  %v2624_v0 = vpop.f32.mrb[53].mxu0  ;;  %v2665_v33 = vpop.f32.mrb[53].mxu1  ;;  %v5682_v23 = vld [vmem:[#allocation10 + $0x2c] ss:$16 sps:$4 sm:$0xff]  }
 0x805   :  { %v3825_v37 = vpop.eup %3824  ;;  %v2753_v30 = vadd.f32 %v2624_v0, %v4646_v61  ;;  %v2626_v5 = vpop.f32.mrb[54].mxu0  ;;  %v2755_v39 = vadd.f32 %v2665_v33, %v4648_v59  ;;  %v5691_v0 = vld [vmem:[#allocation10 + $0x28] ss:$16 sps:$4 sm:$0xff]  }
 0x806   :  { %v2667_v45 = vpop.f32.mrb[54].mxu1  ;;  %3826 = vtanh.f32 %v2752_v63  ;;  %v2627_v27 = vpop.f32.mrb[55].mxu0  ;;  %v2584_v35 = vmul.f32 %v3825_v37, %v2579_v41  ;;  %v2754_v41 = vadd.f32 %v2663_v36, %v6474_v43  ;;  %v5688_v63 = vld [vmem:[#allocation10 + $0x20] ss:$16 sps:$4 sm:$0xff]   ;;  %v5694_v37 = vld [vmem:[#allocation10 + $0x44] ss:$16 sps:$4 sm:$0xff]  }
 0x807   :  { %v2668_v56 = vpop.f32.mrb[55].mxu1  ;;  %3828 = vtanh.f32 %v2753_v30  ;;  %6675 = vst [vmem:[#allocation33_spill] sm:$0xff] %v5694_v37  ;;  %v5697_v30 = vld [vmem:[#allocation10 + $0x4c] ss:$16 sps:$4 sm:$0xff]   ;;  %v5700_v27 = vld [vmem:[#allocation10 + $0x40] ss:$16 sps:$4 sm:$0xff]  }
 0x808   :  { %2586 = vst [vmem:[#allocation2 + $0xa] sm:$0x3] %v2584_v35  ;;  %v2587_v6 = vpack.c.bf16 %v2584_v35, %v2584_v35  ;;  %3830 = vtanh.f32 %v2755_v39  ;;  %6676 = vst [vmem:[#allocation34_spill] sm:$0xff] %v5700_v27  ;;  %v5703_v56 = vld [vmem:[#allocation10 + $0x48] ss:$16 sps:$4 sm:$0xff]  }
 0x809   :  { %3832 = vtanh.f32 %v2754_v41  ;;  %6677 = vst [vmem:[#allocation35_spill] sm:$0xff] %v5703_v56 }
 0x80a   :  { %2703 = vmatmul.mubr.bf16.vlgmr.msra.gmra.mrb[56].mxu0 %v2587_v6  ;;  %2744 = vmatmul.mubr.bf16.vlgmr.msra.gmra.mrb[56].mxu1 %v2587_v6  ;;  %v5706_v6 = vld [vmem:[#allocation10 + $0x64] ss:$16 sps:$4 sm:$0xff]  }
 0x80b   :  { %2773 = vmatpush1.bf16.msra.mxu0 %v5673_v20  ;;  %2814 = vmatpush1.bf16.msra.mxu1 %v5676_v54  ;;  %6678 = vst [vmem:[#allocation36_spill] sm:$0xff] %v5706_v6 }
 0x80c   :  { %2774 = vmatprep.subr.bf16.mxu0 %v5679_v19  ;;  %2815 = vmatprep.subr.bf16.mxu1 %v5682_v23 }
 0x80d   :  { %2804 = vmatprep.mubr.bf16.mxu0 %v6356_v3  ;;  %2845 = vmatprep.mubr.bf16.mxu1 %v6356_v3 }
 0x80f   :  { %2775 = vmatpush1.bf16.msra.mxu0 %v5688_v63  ;;  %2816 = vmatpush1.bf16.msra.mxu1 %v5691_v0 }
 0x810   :  { %v3827_v33 = vpop.eup %3826  ;;  %2776 = vmatprep.subr.bf16.mxu0 %v5694_v37  ;;  %2817 = vmatprep.subr.bf16.mxu1 %v5697_v30  ;;  %v5709_v37 = vld [vmem:[#allocation10 + $0x6c] ss:$16 sps:$4 sm:$0xff]  }
 0x811   :  { %v2760_v5 = vmul.f32 0.5, %v3827_v33  ;;  %v3829_v45 = vpop.eup %3828 }
 0x812   :  { %v2762_v39 = vmul.f32 0.5, %v3829_v45  ;;  %v3831_v35 = vpop.eup %3830  ;;  %v5713_v45 = vld [vmem:[#allocation10 + $0x60] ss:$16 sps:$4 sm:$0xff]  }
 0x813   :  { %v2761_v36 = vadd.f32 0.5, %v2760_v5  ;;  %2777 = vmatpush1.bf16.msra.mxu0 %v5700_v27  ;;  %2818 = vmatpush1.bf16.msra.mxu1 %v5703_v56  ;;  %v5716_v27 = vld [vmem:[#allocation10 + $0x68] ss:$16 sps:$4 sm:$0xff]   ;;  %v5719_v56 = vld [vmem:[#allocation10 + $0x84] ss:$16 sps:$4 sm:$0xff]  }
 0x814   :  { %2778 = vmatprep.subr.bf16.mxu0 %v5706_v6  ;;  %2819 = vmatprep.subr.bf16.mxu1 %v5709_v37  ;;  %v2763_v33 = vadd.f32 0.5, %v2762_v39  ;;  %6679 = vst [vmem:[#allocation37_spill] sm:$0xff] %v5716_v27  ;;  %6680 = vst [vmem:[#allocation38_spill] sm:$0xff] %v5719_v56  ;;  %v5722_v6 = vld [vmem:[#allocation10 + $0x8c] ss:$16 sps:$4 sm:$0xff]  }
 0x815   :  { %v2767_v41 = vmul.f32 %v3831_v35, %v2761_v36  ;;  %6681 = vst [vmem:[#allocation39_spill] sm:$0xff] %v5722_v6  ;;  %v5731_v36 = vld [vmem:[#allocation10 + $0x88] ss:$16 sps:$4 sm:$0xff]   ;;  %v5734_v35 = vld [vmem:[#allocation10 + $0xa4] ss:$16 sps:$4 sm:$0xff]  }
 0x816   :  { %v2766_v5 = vmul.f32 %v2763_v33, %v5469_v11  ;;  %v5728_v11 = vld [vmem:[#allocation10 + $0x80] ss:$16 sps:$4 sm:$0xff]   ;;  %6683 = vst [vmem:[#allocation42_spill] sm:$0xff] %v5731_v36  ;;  %6684 = vst [vmem:[#allocation43_spill] sm:$0xff] %v5734_v35  ;;  %v5737_v33 = vld [vmem:[#allocation10 + $0xac] ss:$16 sps:$4 sm:$0xff]  }
 0x817   :  { %2779 = vmatpush1.bf16.msra.mxu0 %v5713_v45  ;;  %2820 = vmatpush1.bf16.msra.mxu1 %v5716_v27  ;;  %6682 = vst [vmem:[#allocation18_spill] sm:$0xff] %v5728_v11  ;;  %6685 = vst [vmem:[#allocation71_spill] sm:$0xff] %v5737_v33  ;;  %v5758_v27 = vld [vmem:[#allocation10 + $0xe4] ss:$16 sps:$4 sm:$0xff]  }
 0x818   :  { %2780 = vmatprep.subr.bf16.mxu0 %v5719_v56  ;;  %2821 = vmatprep.subr.bf16.mxu1 %v5722_v6  ;;  %v5725_v39 = vadd.f32 %v2767_v41, %v2766_v5  ;;  %v3833_v41 = vpop.eup %3832  ;;  %v5740_v5 = vld [vmem:[#allocation10 + $0xa0] ss:$16 sps:$4 sm:$0xff]   ;;  %v5743_v6 = vld [vmem:[#allocation10 + $0xa8] ss:$16 sps:$4 sm:$0xff]   ;;  %v5746_v56 = vld [vmem:[#allocation10 + $0xc4] ss:$16 sps:$4 sm:$0xff]  }
 0x819   :  { %6686 = vst [vmem:[#allocation52_spill] sm:$0xff] %v5740_v5  ;;  %6687 = vst [vmem:[#allocation53_spill] sm:$0xff] %v5743_v6 }
 0x81a   :  { %3834 = vtanh.f32 %v5725_v39  ;;  %6688 = vst [vmem:[#allocation55_spill] sm:$0xff] %v5746_v56 }
 0x81b   :  { %2781 = vmatpush1.bf16.msra.mxu0 %v5728_v11  ;;  %2822 = vmatpush1.bf16.msra.mxu1 %v5731_v36  ;;  %v2764_v11 = vmul.f32 0.5, %v3833_v41  ;;  %v5749_v36 = vld [vmem:[#allocation10 + $0xcc] ss:$16 sps:$4 sm:$0xff]  }
 0x81c   :  { %2782 = vmatprep.subr.bf16.mxu0 %v5734_v35  ;;  %2823 = vmatprep.subr.bf16.mxu1 %v5737_v33  ;;  %6689 = vst [vmem:[#allocation56_spill] sm:$0xff] %v5749_v36  ;;  %v5752_v35 = vld [vmem:[#allocation10 + $0xc0] ss:$16 sps:$4 sm:$0xff]   ;;  %v5755_v33 = vld [vmem:[#allocation10 + $0xc8] ss:$16 sps:$4 sm:$0xff]  }
 0x81d   :  { %6690 = vst [vmem:[#allocation60_spill] sm:$0xff] %v5752_v35  ;;  %v5761_v41 = vld [vmem:[#allocation10 + $0xec] ss:$16 sps:$4 sm:$0xff]  }
 0x81f   :  { %2783 = vmatpush1.bf16.msra.mxu0 %v5740_v5  ;;  %2824 = vmatpush1.bf16.msra.mxu1 %v5743_v6  ;;  %v2765_v5 = vadd.f32 0.5, %v2764_v11 }
 0x820   :  { %2784 = vmatprep.subr.bf16.mxu0 %v5746_v56  ;;  %2825 = vmatprep.subr.bf16.mxu1 %v5749_v36  ;;  %v5764_v36 = vld [vmem:[#allocation10 + $0xe0] ss:$16 sps:$4 sm:$0xff]  }
 0x823   :  { %2785 = vmatpush1.bf16.msra.mxu0 %v5752_v35  ;;  %2826 = vmatpush1.bf16.msra.mxu1 %v5755_v33  ;;  %v5767_v35 = vld [vmem:[#allocation10 + $0xe8] ss:$16 sps:$4 sm:$0xff]  }
 0x824   :  { %2786 = vmatprep.subr.bf16.mxu0 %v5758_v27  ;;  %2827 = vmatprep.subr.bf16.mxu1 %v5761_v41  ;;  %v3835_v56 = vpop.eup %3834 }
 0x825   :  { %v2770_v6 = vmul.f32 %v3835_v56, %v2765_v5 }
 0x827   :  { %2787 = vmatpush1.bf16.msra.mxu0 %v5764_v36  ;;  %2828 = vmatpush1.bf16.msra.mxu1 %v5767_v35  ;;  %v2771_v11 = vpack.c.bf16 %v2770_v6, %v2770_v6 }
 0x828   :  { %2876 = vmatprep.subr.bf16.mxu0 %v6638_v28  ;;  %2917 = vmatprep.subr.bf16.mxu1 %v6639_v62  ;;  %v6697_v28 = vld [vmem:[#allocation54_spill] sm:$0xff]  ;;  %v6698_v62 = vld [vmem:[#allocation57_spill] sm:$0xff] }
 0x82a   :  { %2805 = vmatmul.mubr.bf16.vlgmr.msra.gmra.mrb[56].mxu0 %v2771_v11  ;;  %2846 = vmatmul.mubr.bf16.vlgmr.msra.gmra.mrb[56].mxu1 %v2771_v11 }
 0x82b   :  { %2877 = vmatpush1.bf16.msra.mxu0 %v6640_v26  ;;  %2918 = vmatpush1.bf16.msra.mxu1 %v6641_v38  ;;  %v6699_v26 = vld [vmem:[#allocation58_spill] sm:$0xff]  ;;  %v6700_v38 = vld [vmem:[#allocation59_spill] sm:$0xff] }
 0x82c   :  { %2878 = vmatprep.subr.bf16.mxu0 %v6642_v18  ;;  %2919 = vmatprep.subr.bf16.mxu1 %v6643_v29  ;;  %v6701_v18 = vld [vmem:[#allocation61_spill] sm:$0xff] }
 0x82d   :  { %2908 = vmatprep.mubr.bf16.mxu0 %v6356_v3  ;;  %2949 = vmatprep.mubr.bf16.mxu1 %v6356_v3  ;;  %v6702_v29 = vld [vmem:[#allocation41_spill] sm:$0xff] }
 0x82f   :  { %2879 = vmatpush1.bf16.msra.mxu0 %v6644_v32  ;;  %2920 = vmatpush1.bf16.msra.mxu1 %v5365_v1  ;;  %v6693_v1 = vld [vmem:[#allocation46_spill] sm:$0xff]  ;;  %v6703_v32 = vld [vmem:[#allocation47_spill] sm:$0xff] }
 0x830   :  { %2880 = vmatprep.subr.bf16.mxu0 %v5368_v12  ;;  %2921 = vmatprep.subr.bf16.mxu1 %v5371_v10  ;;  %v6694_v12 = vld [vmem:[#allocation49_spill] sm:$0xff]  ;;  %v6695_v10 = vld [vmem:[#allocation50_spill] sm:$0xff] }
 0x833   :  { %2881 = vmatpush1.bf16.msra.mxu0 %v5374_v60  ;;  %2922 = vmatpush1.bf16.msra.mxu1 %v5377_v9  ;;  %v6691_v9 = vld [vmem:[#allocation44_spill] sm:$0xff]  ;;  %v6692_v60 = vld [vmem:[#allocation45_spill] sm:$0xff] }
 0x834   :  { %2882 = vmatprep.subr.bf16.mxu0 %v5380_v21  ;;  %2923 = vmatprep.subr.bf16.mxu1 %v5501_v31  ;;  %v6696_v21 = vld [vmem:[#allocation19_spill] sm:$0xff]  ;;  %v6704_v31 = vld [vmem:[#allocation48_spill] sm:$0xff] }
 0x837   :  { %2883 = vmatpush1.bf16.msra.mxu0 %v5504_v40  ;;  %2924 = vmatpush1.bf16.msra.mxu1 %v5507_v42  ;;  %v6705_v40 = vld [vmem:[#allocation51_spill] sm:$0xff]  ;;  %v6706_v42 = vld [vmem:[#allocation62_spill] sm:$0xff] }
 0x838   :  { %2884 = vmatprep.subr.bf16.mxu0 %v5510_v46  ;;  %2925 = vmatprep.subr.bf16.mxu1 %v5513_v47  ;;  %v6707_v46 = vld [vmem:[#allocation64_spill] sm:$0xff]  ;;  %v6708_v47 = vld [vmem:[#allocation65_spill] sm:$0xff] }
 0x83b   :  { %2885 = vmatpush1.bf16.msra.mxu0 %v5516_v44  ;;  %2926 = vmatpush1.bf16.msra.mxu1 %v5519_v48  ;;  %v6709_v44 = vld [vmem:[#allocation66_spill] sm:$0xff]  ;;  %v6710_v48 = vld [vmem:[#allocation67_spill] sm:$0xff] }
 0x83c   :  { %2886 = vmatprep.subr.bf16.mxu0 %v5522_v57  ;;  %2927 = vmatprep.subr.bf16.mxu1 %v5525_v4  ;;  %v6711_v57 = vld [vmem:[#allocation68_spill] sm:$0xff]  ;;  %v6712_v4 = vld [vmem:[#allocation69_spill] sm:$0xff] }
 0x83f   :  { %2887 = vmatpush1.bf16.msra.mxu0 %v5528_v49  ;;  %2928 = vmatpush1.bf16.msra.mxu1 %v5531_v50  ;;  %v6713_v49 = vld [vmem:[#allocation25_spill] sm:$0xff]  ;;  %v6714_v50 = vld [vmem:[#allocation26_spill] sm:$0xff] }
 0x840   :  { %2888 = vmatprep.subr.bf16.mxu0 %v5534_v52  ;;  %2929 = vmatprep.subr.bf16.mxu1 %v5537_v53  ;;  %v6715_v52 = vld [vmem:[#allocation27_spill] sm:$0xff]  ;;  %v6716_v53 = vld [vmem:[#allocation28_spill] sm:$0xff] }
 0x843   :  { %2889 = vmatpush1.bf16.msra.mxu0 %v5540_v7  ;;  %2930 = vmatpush1.bf16.msra.mxu1 %v5543_v13  ;;  %v6717_v7 = vld [vmem:[#allocation29_spill] sm:$0xff]  ;;  %v6718_v13 = vld [vmem:[#allocation30_spill] sm:$0xff] }
 0x844   :  { %2890 = vmatprep.subr.bf16.mxu0 %v5546_v14  ;;  %2931 = vmatprep.subr.bf16.mxu1 %v5549_v15  ;;  %v6719_v14 = vld [vmem:[#allocation31_spill] sm:$0xff]  ;;  %v6720_v15 = vld [vmem:[#allocation32_spill] sm:$0xff] }
 0x847   :  { %2891 = vmatpush1.bf16.msra.mxu0 %v5552_v16  ;;  %2932 = vmatpush1.bf16.msra.mxu1 %v5555_v17 }
 0x848   :  { %2958 = vmatprep.subr.bf16.mxu0 %v5558_v22  ;;  %2999 = vmatprep.subr.bf16.mxu1 %v5561_v8  ;;  %v6721_v22 = vld [vmem:[#allocation17_spill] sm:$0xff] }
 0x84a   :  { %2909 = vmatmul.mubr.bf16.vlgmr.msra.gmra.mrb[60].mxu0 %v2771_v11  ;;  %2950 = vmatmul.mubr.bf16.vlgmr.msra.gmra.mrb[60].mxu1 %v2771_v11 }
 0x84b   :  { %2959 = vmatpush1.bf16.msra.mxu0 %v5564_v24  ;;  %3000 = vmatpush1.bf16.msra.mxu1 %v5567_v25 }
 0x84c   :  { %2960 = vmatprep.subr.bf16.mxu0 %v6691_v9  ;;  %3001 = vmatprep.subr.bf16.mxu1 %v6692_v60 }
 0x84d   :  { %2990 = vmatprep.mubr.bf16.mxu0 %v6356_v3  ;;  %3031 = vmatprep.mubr.bf16.mxu1 %v6356_v3 }
 0x84f   :  { %2961 = vmatpush1.bf16.msra.mxu0 %v6693_v1  ;;  %3002 = vmatpush1.bf16.msra.mxu1 %v6694_v12 }
 0x850   :  { %2962 = vmatprep.subr.bf16.mxu0 %v6695_v10  ;;  %3003 = vmatprep.subr.bf16.mxu1 %v6696_v21 }
 0x853   :  { %2963 = vmatpush1.bf16.msra.mxu0 %v6697_v28  ;;  %3004 = vmatpush1.bf16.msra.mxu1 %v6698_v62 }
 0x854   :  { %2964 = vmatprep.subr.bf16.mxu0 %v6699_v26  ;;  %3005 = vmatprep.subr.bf16.mxu1 %v6700_v38 }
 0x857   :  { %2965 = vmatpush1.bf16.msra.mxu0 %v6701_v18  ;;  %3006 = vmatpush1.bf16.msra.mxu1 %v6702_v29 }
 0x858   :  { %2966 = vmatprep.subr.bf16.mxu0 %v6703_v32  ;;  %3007 = vmatprep.subr.bf16.mxu1 %v6704_v31 }
 0x85b   :  { %2967 = vmatpush1.bf16.msra.mxu0 %v6705_v40  ;;  %3008 = vmatpush1.bf16.msra.mxu1 %v6706_v42 }
 0x85c   :  { %2968 = vmatprep.subr.bf16.mxu0 %v6707_v46  ;;  %3009 = vmatprep.subr.bf16.mxu1 %v6708_v47 }
 0x85f   :  { %2969 = vmatpush1.bf16.msra.mxu0 %v6709_v44  ;;  %3010 = vmatpush1.bf16.msra.mxu1 %v6710_v48 }
 0x860   :  { %2970 = vmatprep.subr.bf16.mxu0 %v6711_v57  ;;  %3011 = vmatprep.subr.bf16.mxu1 %v6712_v4 }
 0x863   :  { %2971 = vmatpush1.bf16.msra.mxu0 %v6713_v49  ;;  %3012 = vmatpush1.bf16.msra.mxu1 %v6714_v50 }
 0x864   :  { %2972 = vmatprep.subr.bf16.mxu0 %v6715_v52  ;;  %3013 = vmatprep.subr.bf16.mxu1 %v6716_v53 }
 0x867   :  { %2973 = vmatpush1.bf16.msra.mxu0 %v6717_v7  ;;  %3014 = vmatpush1.bf16.msra.mxu1 %v6718_v13 }
 0x868   :  { %3060 = vmatprep.subr.bf16.mxu0 %v6719_v14  ;;  %3101 = vmatprep.subr.bf16.mxu1 %v6720_v15  ;;  %v6723_v15 = vld [vmem:[#allocation34_spill] sm:$0xff] }
 0x8fd   :  { %v2806_v16 = vpop.f32.mrb[56].mxu0  ;;  %v2847_v17 = vpop.f32.mrb[56].mxu1 }
 0x8fe   :  { %v2807_v8 = vadd.f32 %v2806_v16, %v6721_v22  ;;  %v2808_v24 = vpop.f32.mrb[57].mxu0  ;;  %v2849_v25 = vpop.f32.mrb[57].mxu1  ;;  %v2848_v1 = vadd.f32 %v2847_v17, %v6471_v51  ;;  %v6724_v16 = vld [vmem:[#allocation35_spill] sm:$0xff] }
 0x8ff   :  { %v2809_v56 = vadd.f32 %v2808_v24, %v4739_v2  ;;  %v2810_v6 = vpop.f32.mrb[58].mxu0  ;;  %v2851_v5 = vpop.f32.mrb[58].mxu1  ;;  %v2850_v11 = vadd.f32 %v2849_v25, %v4743_v58  ;;  %v6728_v24 = vld [vmem:[#allocation39_spill] sm:$0xff] }
 0x900   :  { %3836 = vtanh.f32 %v2807_v8  ;;  %v2811_v9 = vpop.f32.mrb[59].mxu0  ;;  %v2852_v60 = vpop.f32.mrb[59].mxu1  ;;  %v6727_v8 = vld [vmem:[#allocation38_spill] sm:$0xff]  ;;  %v6731_v5 = vld [vmem:[#allocation43_spill] sm:$0xff] }
 0x901   :  { %3838 = vtanh.f32 %v2809_v56  ;;  %v6729_v56 = vld [vmem:[#allocation18_spill] sm:$0xff]  ;;  %v6735_v60 = vld [vmem:[#allocation55_spill] sm:$0xff] }
 0x902   :  { %3840 = vtanh.f32 %v2850_v11  ;;  %v6730_v6 = vld [vmem:[#allocation42_spill] sm:$0xff] }
 0x903   :  { %3842 = vtanh.f32 %v2848_v1  ;;  %v6736_v1 = vld [vmem:[#allocation56_spill] sm:$0xff] }
 0x90a   :  { %v3837_v12 = vpop.eup %3836 }
 0x90b   :  { %v2862_v10 = vmul.f32 0.5, %v3837_v12  ;;  %v3839_v21 = vpop.eup %3838  ;;  %v6737_v12 = vld [vmem:[#allocation60_spill] sm:$0xff] }
 0x90c   :  { %v2864_v62 = vmul.f32 0.5, %v3839_v21  ;;  %v3841_v26 = vpop.eup %3840 }
 0x90d   :  { %v2863_v28 = vadd.f32 0.5, %v2862_v10  ;;  %v3843_v31 = vpop.eup %3842 }
 0x90e   :  { %v2865_v38 = vadd.f32 0.5, %v2864_v62  ;;  %v2866_v40 = vmul.f32 0.5, %v3843_v31 }
 0x90f   :  { %v2869_v18 = vmul.f32 %v3841_v26, %v2863_v28 }
 0x910   :  { %v2868_v29 = vmul.f32 %v2865_v38, %v5667_v34  ;;  %v2867_v47 = vadd.f32 0.5, %v2866_v40 }
 0x912   :  { %v5845_v32 = vadd.f32 %v2869_v18, %v2868_v29 }
 0x914   :  { %3844 = vtanh.f32 %v5845_v32 }
 0x91d   :  { %v2910_v42 = vpop.f32.mrb[60].mxu0  ;;  %v2951_v46 = vpop.f32.mrb[60].mxu1 }
 0x91e   :  { %v3040_v44 = vadd.f32 %v2910_v42, %v6416_v55  ;;  %v2912_v48 = vpop.f32.mrb[61].mxu0  ;;  %v2953_v57 = vpop.f32.mrb[61].mxu1  ;;  %v6722_v55 = vld [vmem:[#allocation33_spill] sm:$0xff] }
 0x91f   :  { %v3845_v4 = vpop.eup %3844  ;;  %v3041_v49 = vadd.f32 %v2912_v48, %v4646_v61  ;;  %v2914_v50 = vpop.f32.mrb[62].mxu0  ;;  %v3043_v34 = vadd.f32 %v2953_v57, %v4648_v59  ;;  %v3042_v59 = vadd.f32 %v2951_v46, %v6474_v43  ;;  %v6725_v43 = vld [vmem:[#allocation36_spill] sm:$0xff] }
 0x920   :  { %v2955_v52 = vpop.f32.mrb[62].mxu1  ;;  %3846 = vtanh.f32 %v3040_v44  ;;  %v2915_v53 = vpop.f32.mrb[63].mxu0  ;;  %v2872_v13 = vmul.f32 %v3845_v4, %v2867_v47 }
 0x921   :  { %v2956_v7 = vpop.f32.mrb[63].mxu1  ;;  %3848 = vtanh.f32 %v3041_v49 }
 0x922   :  { %2874 = vst [vmem:[#allocation2 + $0xc] sm:$0x3] %v2872_v13  ;;  %v2875_v14 = vpack.c.bf16 %v2872_v13, %v2872_v13  ;;  %3850 = vtanh.f32 %v3043_v34  ;;  %v3164_v7 = vld [vmem:[#allocation2 + $0x2] sm:$0x3] }
 0x923   :  { %3852 = vtanh.f32 %v3042_v59  ;;  %v3167_v59 = vld [vmem:[#allocation2 + $0x8] sm:$0x3] }
 0x924   :  { %2991 = vmatmul.mubr.bf16.vlgmr.msra.gmra.mrb[64].mxu0 %v2875_v14  ;;  %3032 = vmatmul.mubr.bf16.vlgmr.msra.gmra.mrb[64].mxu1 %v2875_v14  ;;  %v3166_v14 = vld [vmem:[#allocation2 + $0x6] sm:$0x3] }
 0x925   :  { %3061 = vmatpush1.bf16.msra.mxu0 %v5673_v20  ;;  %3102 = vmatpush1.bf16.msra.mxu1 %v5676_v54 }
 0x926   :  { %3062 = vmatprep.subr.bf16.mxu0 %v5679_v19  ;;  %3103 = vmatprep.subr.bf16.mxu1 %v5682_v23 }
 0x927   :  { %3092 = vmatprep.mubr.bf16.mxu0 %v6356_v3  ;;  %3133 = vmatprep.mubr.bf16.mxu1 %v6356_v3 }
 0x929   :  { %3063 = vmatpush1.bf16.msra.mxu0 %v5688_v63  ;;  %3104 = vmatpush1.bf16.msra.mxu1 %v5691_v0 }
 0x92a   :  { %v3847_v61 = vpop.eup %3846  ;;  %3064 = vmatprep.subr.bf16.mxu0 %v6722_v55  ;;  %3105 = vmatprep.subr.bf16.mxu1 %v5697_v30  ;;  %v6726_v30 = vld [vmem:[#allocation37_spill] sm:$0xff]  ;;  %v3168_v55 = vld [vmem:[#allocation2 + $0xa] sm:$0x3] }
 0x92b   :  { %v3048_v20 = vmul.f32 0.5, %v3847_v61  ;;  %v3849_v54 = vpop.eup %3848  ;;  %v3179_v61 = vrot.slane %v3164_v7, 7 }
 0x92c   :  { %v3050_v23 = vmul.f32 0.5, %v3849_v54  ;;  %v3851_v3 = vpop.eup %3850  ;;  %v3169_v54 = vld [vmem:[#allocation2 + $0xc] sm:$0x3] }
 0x92d   :  { %v3049_v19 = vadd.f32 0.5, %v3048_v20  ;;  %3065 = vmatpush1.bf16.msra.mxu0 %v6723_v15  ;;  %3106 = vmatpush1.bf16.msra.mxu1 %v6724_v16  ;;  %v3853_v11 = vpop.eup %3852  ;;  %v3191_v16 = vrot.slane %v3168_v55, 3 }
 0x92e   :  { %3066 = vmatprep.subr.bf16.mxu0 %v6725_v43  ;;  %3107 = vmatprep.subr.bf16.mxu1 %v5709_v37  ;;  %v3051_v63 = vadd.f32 0.5, %v3050_v23  ;;  %v6732_v37 = vld [vmem:[#allocation71_spill] sm:$0xff]  ;;  %v3052_v9 = vmul.f32 0.5, %v3853_v11  ;;  %v3163_v23 = vld [vmem:[#allocation2] sm:$0x3]  ;;  %v3194_v43 = vrot.slane %v3169_v54, 2 }
 0x92f   :  { %v3055_v0 = vmul.f32 %v3851_v3, %v3049_v19  ;;  %v3185_v19 = vrot.slane %v3166_v14, 5  ;;  %v3181_v15 = vsel %vm3180_vm2, %v3179_v61, %v3163_v23 }
 0x930   :  { %v3054_v17 = vmul.f32 %v3051_v63, %v5725_v39  ;;  %v6733_v39 = vld [vmem:[#allocation52_spill] sm:$0xff]  ;;  %v3053_v10 = vadd.f32 0.5, %v3052_v9  ;;  %v3260_v9 = vrot.slane %v3169_v54, 3 }
 0x931   :  { %3067 = vmatpush1.bf16.msra.mxu0 %v5713_v45  ;;  %3108 = vmatpush1.bf16.msra.mxu1 %v6726_v30  ;;  %v6734_v45 = vld [vmem:[#allocation53_spill] sm:$0xff] }
 0x932   :  { %3068 = vmatprep.subr.bf16.mxu0 %v6727_v8  ;;  %3109 = vmatprep.subr.bf16.mxu1 %v6728_v24  ;;  %v3056_v25 = vadd.f32 %v3055_v0, %v3054_v17 }
 0x934   :  { %3854 = vtanh.f32 %v3056_v25 }
 0x935   :  { %3069 = vmatpush1.bf16.msra.mxu0 %v6729_v56  ;;  %3110 = vmatpush1.bf16.msra.mxu1 %v6730_v6  ;;  %v3250_v6 = vrot.slane %v3163_v23, 1 }
 0x936   :  { %3070 = vmatprep.subr.bf16.mxu0 %v6731_v5  ;;  %3111 = vmatprep.subr.bf16.mxu1 %v6732_v37  ;;  %v3254_v5 = vrot.slane %v3166_v14, 6  ;;  %v3256_v37 = vrot.slane %v3167_v59, 5 }
 0x937   :  { %v3251_v11 = vsel %vm3180_vm2, %v3164_v7, %v3250_v6 }
 0x939   :  { %3071 = vmatpush1.bf16.msra.mxu0 %v6733_v39  ;;  %3112 = vmatpush1.bf16.msra.mxu1 %v6734_v45  ;;  %v3258_v39 = vrot.slane %v3168_v55, 4 }
 0x93a   :  { %3072 = vmatprep.subr.bf16.mxu0 %v6735_v60  ;;  %3113 = vmatprep.subr.bf16.mxu1 %v6736_v1 }
 0x93d   :  { %3073 = vmatpush1.bf16.msra.mxu0 %v6737_v12  ;;  %3114 = vmatpush1.bf16.msra.mxu1 %v5755_v33 }
 0x93e   :  { %3074 = vmatprep.subr.bf16.mxu0 %v5758_v27  ;;  %3115 = vmatprep.subr.bf16.mxu1 %v5761_v41  ;;  %v3855_v21 = vpop.eup %3854 }
 0x93f   :  { %v3058_v28 = vmul.f32 %v3855_v21, %v3053_v10 }
 0x941   :  { %3075 = vmatpush1.bf16.msra.mxu0 %v5764_v36  ;;  %3116 = vmatpush1.bf16.msra.mxu1 %v5767_v35  ;;  %v3059_v62 = vpack.c.bf16 %v3058_v28, %v3058_v28 }
 0x944   :  { %3093 = vmatmul.mubr.bf16.vlgmr.msra.gmra.mrb[64].mxu0 %v3059_v62  ;;  %3134 = vmatmul.mubr.bf16.vlgmr.msra.gmra.mrb[64].mxu1 %v3059_v62 }
 0xa17   :  { %v3094_v26 = vpop.f32.mrb[64].mxu0  ;;  %v3135_v38 = vpop.f32.mrb[64].mxu1 }
 0xa18   :  { %v3095_v18 = vadd.f32 %v3094_v26, %v6721_v22  ;;  %v3096_v29 = vpop.f32.mrb[65].mxu0  ;;  %v3137_v33 = vpop.f32.mrb[65].mxu1  ;;  %v3136_v35 = vadd.f32 %v3135_v38, %v6471_v51  ;;  %v3165_v51 = vld [vmem:[#allocation2 + $0x4] sm:$0x3] }
 0xa19   :  { %v3097_v31 = vadd.f32 %v3096_v29, %v4739_v2  ;;  %v3098_v27 = vpop.f32.mrb[66].mxu0  ;;  %v3139_v40 = vpop.f32.mrb[66].mxu1  ;;  %v3138_v41 = vadd.f32 %v3137_v33, %v4743_v58  ;;  %v3182_v20 = vrot.slane %v3165_v51, 6  ;;  %v3252_v56 = vrot.slane %v3165_v51, 7 }
 0xa1a   :  { %3856 = vtanh.f32 %v3095_v18  ;;  %v3099_v42 = vpop.f32.mrb[67].mxu0  ;;  %v3140_v36 = vpop.f32.mrb[67].mxu1 }
 0xa1b   :  { %3858 = vtanh.f32 %v3097_v31  ;;  %v3184_v3 = vsel %vm3183_vm1, %v3182_v20, %v3181_v15  ;;  %v3253_v45 = vsel %vm3183_vm1, %v3252_v56, %v3251_v11 }
 0xa1c   :  { %3860 = vtanh.f32 %v3138_v41  ;;  %v3187_v63 = vsel %vm3186_vm3, %v3185_v19, %v3184_v3  ;;  %v3255_v60 = vsel %vm3186_vm3, %v3254_v5, %v3253_v45 }
 0xa1d   :  { %3862 = vtanh.f32 %v3136_v35  ;;  %v3257_v12 = vsel %vm3189_vm4, %v3256_v37, %v3255_v60 }
 0xa1e   :  { %v3259_v10 = vsel %vm3192_vm5, %v3258_v39, %v3257_v12 }
 0xa1f   :  { %v3261_v21 = vsel %vm3195_vm6, %v3260_v9, %v3259_v10 }
 0xa24   :  { %v3857_v46 = vpop.eup %3856 }
 0xa25   :  { %v3150_v47 = vmul.f32 0.5, %v3857_v46  ;;  %v3859_v44 = vpop.eup %3858 }
 0xa26   :  { %v3152_v22 = vmul.f32 0.5, %v3859_v44  ;;  %v3861_v57 = vpop.eup %3860 }
 0xa27   :  { %v3151_v48 = vadd.f32 0.5, %v3150_v47  ;;  %v3863_v58 = vpop.eup %3862 }
 0xa28   :  { %v3153_v4 = vadd.f32 0.5, %v3152_v22  ;;  %v3154_v52 = vmul.f32 0.5, %v3863_v58 }
 0xa29   :  { %v3157_v2 = vmul.f32 %v3861_v57, %v3151_v48 }
 0xa2a   :  { %v3156_v49 = vmul.f32 %v3153_v4, %v5845_v32  ;;  %v3155_v34 = vadd.f32 0.5, %v3154_v52  ;;  %v3188_v32 = vrot.slane %v3167_v59, 4 }
 0xa2c   :  { %v3158_v50 = vadd.f32 %v3157_v2, %v3156_v49  ;;  %v3190_v17 = vsel %vm3189_vm4, %v3188_v32, %v3187_v63 }
 0xa2d   :  { %v3193_v30 = vsel %vm3192_vm5, %v3191_v16, %v3190_v17 }
 0xa2e   :  { %3864 = vtanh.f32 %v3158_v50  ;;  %v3196_v24 = vsel %vm3195_vm6, %v3194_v43, %v3193_v30 }
 0xa38   :  { %v3865_v53 = vpop.eup %3864 }
 0xa39   :  { %v3160_v13 = vmul.f32 %v3865_v53, %v3155_v34 }
 0xa3b   :  { %3162 = vst [vmem:[#allocation2 + $0xe] sm:$0x3] %v3160_v13 }
 0xa42   :  { %v3170_v0 = vld [vmem:[#allocation2 + $0xe] sm:$0x3] }
 0xa43   :  { %v3197_v8 = vrot.slane %v3170_v0, 1  ;;  %v3262_v1 = vrot.slane %v3170_v0, 2 }
 0xa45   :  { %v3199_v25 = vsel %vm3198_vm7, %v3197_v8, %v3196_v24  ;;  %v3263_v28 = vsel %vm3198_vm7, %v3262_v1, %v3261_v21 }
 0xa46   :  { %3201 = vxpose.xlu0.b32.start.end [1/1] (short) %v3199_v25, 128 }
 0xa83   :  { %3265 = vxpose.xlu0.b32.start.end [1/1] (short) %v3263_v28, 128 }
 0xac6   :  { %v3217_v62 = vpop.trf.xlu0 }
 0xac7   :  { %3234 = vst.msk [vmem:[%s6039_s7] sm:$0xff] %vm3233_vm8, %v3217_v62 }
 0xaca   :  { %v3218_v26 = vpop.trf.xlu0 }
 0xacb   :  { %3235 = vst.msk [vmem:[%s6039_s7 + $0x8] sm:$0xff] %vm3233_vm8, %v3218_v26 }
 0xace   :  { %v3219_v38 = vpop.trf.xlu0 }
 0xacf   :  { %3236 = vst.msk [vmem:[%s6039_s7 + $0x10] sm:$0xff] %vm3233_vm8, %v3219_v38 }
 0xad2   :  { %v3220_v18 = vpop.trf.xlu0 }
 0xad3   :  { %3237 = vst.msk [vmem:[%s6039_s7 + $0x18] sm:$0xff] %vm3233_vm8, %v3220_v18 }
 0xad6   :  { %v3221_v29 = vpop.trf.xlu0 }
 0xad7   :  { %3238 = vst.msk [vmem:[%s6039_s7 + $0x20] sm:$0xff] %vm3233_vm8, %v3221_v29 }
 0xada   :  { %v3222_v33 = vpop.trf.xlu0 }
 0xadb   :  { %3239 = vst.msk [vmem:[%s6039_s7 + $0x28] sm:$0xff] %vm3233_vm8, %v3222_v33 }
 0xade   :  { %v3223_v31 = vpop.trf.xlu0 }
 0xadf   :  { %3240 = vst.msk [vmem:[%s6039_s7 + $0x30] sm:$0xff] %vm3233_vm8, %v3223_v31 }
 0xae2   :  { %v3224_v27 = vpop.trf.xlu0 }
 0xae3   :  { %3241 = vst.msk [vmem:[%s6039_s7 + $0x38] sm:$0xff] %vm3233_vm8, %v3224_v27 }
 0xae6   :  { %v3225_v40 = vpop.trf.xlu0 }
 0xae7   :  { %3242 = vst.msk [vmem:[%s6039_s7 + $0x40] sm:$0xff] %vm3233_vm8, %v3225_v40 }
 0xaea   :  { %v3226_v41 = vpop.trf.xlu0 }
 0xaeb   :  { %3243 = vst.msk [vmem:[%s6039_s7 + $0x48] sm:$0xff] %vm3233_vm8, %v3226_v41 }
 0xaee   :  { %v3227_v42 = vpop.trf.xlu0 }
 0xaef   :  { %3244 = vst.msk [vmem:[%s6039_s7 + $0x50] sm:$0xff] %vm3233_vm8, %v3227_v42 }
 0xaf2   :  { %v3228_v36 = vpop.trf.xlu0 }
 0xaf3   :  { %3245 = vst.msk [vmem:[%s6039_s7 + $0x58] sm:$0xff] %vm3233_vm8, %v3228_v36 }
 0xaf6   :  { %v3229_v35 = vpop.trf.xlu0 }
 0xaf7   :  { %3246 = vst.msk [vmem:[%s6039_s7 + $0x60] sm:$0xff] %vm3233_vm8, %v3229_v35 }
 0xafa   :  { %v3230_v46 = vpop.trf.xlu0 }
 0xafb   :  { %3247 = vst.msk [vmem:[%s6039_s7 + $0x68] sm:$0xff] %vm3233_vm8, %v3230_v46 }
 0xafe   :  { %v3231_v47 = vpop.trf.xlu0 }
 0xaff   :  { %3248 = vst.msk [vmem:[%s6039_s7 + $0x70] sm:$0xff] %vm3233_vm8, %v3231_v47 }
 0xb02   :  { %v3232_v44 = vpop.trf.xlu0 }
 0xb03   :  { %3249 = vst.msk [vmem:[%s6039_s7 + $0x78] sm:$0xff] %vm3233_vm8, %v3232_v44 }
 0xb06   :  { %v3281_v48 = vpop.trf.xlu0 }
 0xb07   :  { %3428 = vst.msk [vmem:[%s6039_s7 + $0x80] sm:$0xff] %vm3233_vm8, %v3281_v48 }
 0xb0a   :  { %v3282_v22 = vpop.trf.xlu0 }
 0xb0b   :  { %3429 = vst.msk [vmem:[%s6039_s7 + $0x88] sm:$0xff] %vm3233_vm8, %v3282_v22 }
 0xb0e   :  { %v3283_v57 = vpop.trf.xlu0 }
 0xb0f   :  { %3430 = vst.msk [vmem:[%s6039_s7 + $0x90] sm:$0xff] %vm3233_vm8, %v3283_v57 }
 0xb12   :  { %v3284_v4 = vpop.trf.xlu0 }
 0xb13   :  { %3431 = vst.msk [vmem:[%s6039_s7 + $0x98] sm:$0xff] %vm3233_vm8, %v3284_v4 }
 0xb16   :  { %v3285_v2 = vpop.trf.xlu0 }
 0xb17   :  { %3432 = vst.msk [vmem:[%s6039_s7 + $0xa0] sm:$0xff] %vm3233_vm8, %v3285_v2 }
 0xb1a   :  { %v3286_v49 = vpop.trf.xlu0 }
 0xb1b   :  { %3433 = vst.msk [vmem:[%s6039_s7 + $0xa8] sm:$0xff] %vm3233_vm8, %v3286_v49 }
 0xb1e   :  { %v3287_v50 = vpop.trf.xlu0 }
 0xb1f   :  { %3434 = vst.msk [vmem:[%s6039_s7 + $0xb0] sm:$0xff] %vm3233_vm8, %v3287_v50 }
 0xb22   :  { %v3288_v58 = vpop.trf.xlu0 }
 0xb23   :  { %3435 = vst.msk [vmem:[%s6039_s7 + $0xb8] sm:$0xff] %vm3233_vm8, %v3288_v58 }
 0xb26   :  { %v3289_v52 = vpop.trf.xlu0 }
 0xb27   :  { %3436 = vst.msk [vmem:[%s6039_s7 + $0xc0] sm:$0xff] %vm3233_vm8, %v3289_v52 }
 0xb2a   :  { %v3290_v34 = vpop.trf.xlu0 }
 0xb2b   :  { %3437 = vst.msk [vmem:[%s6039_s7 + $0xc8] sm:$0xff] %vm3233_vm8, %v3290_v34 }
 0xb2e   :  { %v3291_v53 = vpop.trf.xlu0 }
 0xb2f   :  { %3438 = vst.msk [vmem:[%s6039_s7 + $0xd0] sm:$0xff] %vm3233_vm8, %v3291_v53 }
 0xb32   :  { %v3292_v7 = vpop.trf.xlu0 }
 0xb33   :  { %3439 = vst.msk [vmem:[%s6039_s7 + $0xd8] sm:$0xff] %vm3233_vm8, %v3292_v7 }
 0xb36   :  { %v3293_v13 = vpop.trf.xlu0 }
 0xb37   :  { %3440 = vst.msk [vmem:[%s6039_s7 + $0xe0] sm:$0xff] %vm3233_vm8, %v3293_v13 }
 0xb3a   :  { %v3294_v51 = vpop.trf.xlu0 }
 0xb3b   :  { %3441 = vst.msk [vmem:[%s6039_s7 + $0xe8] sm:$0xff] %vm3233_vm8, %v3294_v51 }
 0xb3e   :  { %v3295_v14 = vpop.trf.xlu0 }
 0xb3f   :  { %3442 = vst.msk [vmem:[%s6039_s7 + $0xf0] sm:$0xff] %vm3233_vm8, %v3295_v14 }
 0xb42   :  { %v3296_v59 = vpop.trf.xlu0 }
 0xb43   :  { %3443 = vst.msk [vmem:[%s6039_s7 + $0xf8] sm:$0xff] %vm3233_vm8, %v3296_v59 }
 0xb44   :  { %3318 = vsyncpa [#allocation4], 1 }
 0xb45   :  { %3319 = vsyncpa [#allocation6], 1 }
 0xb46   :  { %3320 = vsyncpa [#allocation9], 1 }
 0xb47   :  { %3321 = vsyncpa [#allocation12], 1 }

</bundles_post_ra>
